<compile_context>
chip_gen: v7x
topology: tpu7x:2x2x1
jax: 0.10.0
libtpu: 0.0.40
codegen_flags: <defaults>
</compile_context>

<pallas_src>
import functools

import jax
import jax.numpy as jnp
from jax.experimental import pallas as pl
from jax.experimental.pallas import tpu as pltpu


def _round_up(x, m):
    return ((x + m - 1) // m) * m


def _cdiv(a, b):
    return -(-a // b)


# ---------------- fused conv + bias + 2x2 max-pool + ReLU (per stage) ----------------

def _conv_pool_relu_kernel(cols_ref, w_ref, b_ref, o_ref):
    # cols_ref: (4, K, TQ) bf16 -- im2col columns for the 4 pool-window corners.
    # w_ref: (Cout, K) bf16, b_ref: (Cout, 1) f32, o_ref: (Cout, TQ) f32.
    w = w_ref[...]
    m = jnp.dot(w, cols_ref[0], preferred_element_type=jnp.float32)
    for c in range(1, 4):
        m = jnp.maximum(m, jnp.dot(w, cols_ref[c],
                                   preferred_element_type=jnp.float32))
    # Bias is constant over a pool window, so adding it after the max is exact.
    # Zero-padded tail columns end up holding relu(bias); the caller slices them off.
    o_ref[...] = jnp.maximum(m + b_ref[...], 0.0)


def _pick_tile(q, max_tile=1024):
    if _round_up(q, 128) <= 128:
        return 128
    # >=2 grid steps whenever possible (v7x megacore); capped so the bf16
    # (4, K, TQ) block stays ~2 MB even at K=250 (fits default scoped VMEM).
    return min(max_tile, _round_up(_cdiv(q, 2), 128))


def conv_pool_relu(x_cf, w_mat, b_col):
    """relu(max_pool2d(conv2d_valid(x) + b, 2, stride=2)).

    x_cf: (Cin, N, H, W) f32, w_mat: (Cout, Cin*k*k) bf16 (PyTorch row order),
    b_col: (Cout, 1) f32.  Returns (Cout, N, PH, PW) f32."""
    Cout, K = w_mat.shape
    Cin, N, H, W = x_cf.shape
    k = int(round((K // Cin) ** 0.5))
    assert Cin * k * k == K
    OH, OW = H - k + 1, W - k + 1
    PH, PW = OH // 2, OW // 2
    Q = N * PH * PW
    TQ = _pick_tile(Q)
    Q_pad = _round_up(Q, TQ)

    # Corner-major im2col, built once by XLA as a single fused bf16 copy:
    #   cols[(dy,dx), (cin,ky,kx), (n,ph,pw)] = x[cin, n, 2*ph+dy+ky, 2*pw+dx+kx]
    # TODO(synk): fold this patch extraction into the kernel (pl.Element-offset
    # blocks / shifted in-kernel reads); kept in XLA because the required
    # in-kernel reshapes of non-lane-aligned minor dims are not Mosaic-safe.
    xb = x_cf.astype(jnp.bfloat16)
    blocks = []
    for ky in range(k):
        for kx in range(k):
            s = xb[:, :, ky:ky + 2 * PH, kx:kx + 2 * PW]       # (Cin, N, 2PH, 2PW)
            blocks.append(s.reshape(Cin, N, PH, 2, PW, 2))
    cols = jnp.stack(blocks, axis=1)                           # (Cin, kk, N, PH, 2, PW, 2)
    cols = cols.transpose(4, 6, 0, 1, 2, 3, 5).reshape(4, K, Q)
    if Q_pad != Q:
        cols = jnp.pad(cols, ((0, 0), (0, 0), (0, Q_pad - Q)))

    out = pl.pallas_call(
        _conv_pool_relu_kernel,
        out_shape=jax.ShapeDtypeStruct((Cout, Q_pad), jnp.float32),
        grid=(Q_pad // TQ,),
        in_specs=[pl.BlockSpec((4, K, TQ), lambda j: (0, 0, j)),
                  pl.BlockSpec((Cout, K), lambda j: (0, 0)),
                  pl.BlockSpec((Cout, 1), lambda j: (0, 0))],
        out_specs=pl.BlockSpec((Cout, TQ), lambda j: (0, j)),
        compiler_params=pltpu.CompilerParams(
            dimension_semantics=("parallel",)),
    )(cols, w_mat, b_col)
    return out[:, :Q].reshape(Cout, N, PH, PW)


# ------------------- affine_grid + bilinear grid_sample (batched) -------------------

def _build_taps(ta, tb, tc, size, scale, H, W, P_pad):
    """M[s, p] = bilinear weight of source index s (0..size-1) for output pixel p,
    with source coordinate coord(p) = ((ta*gx(p) + tb*gy(p) + tc + 1)*scale - 1)/2
    (align_corners=False).  Out-of-range taps get weight 0 (zeros padding)."""
    shape = (size, P_pad)
    pf = jax.lax.broadcasted_iota(jnp.int32, shape, 1).astype(jnp.float32)
    oh = jnp.floor((pf + 0.5) * (1.0 / W))      # p // W, exact for these magnitudes
    ow = pf - oh * W                            # p %  W
    gx = (2.0 * ow + 1.0) / W - 1.0
    gy = (2.0 * oh + 1.0) / H - 1.0
    coord = ((ta * gx + tb * gy + tc + 1.0) * scale - 1.0) * 0.5
    sidx = jax.lax.broadcasted_iota(jnp.int32, shape, 0).astype(jnp.float32)
    c0 = jnp.floor(coord)
    w1 = coord - c0
    # Rows only exist for valid source indices, so out-of-range taps never match.
    return (jnp.where(sidx == c0, 1.0 - w1, 0.0) +
            jnp.where(sidx == c0 + 1.0, w1, 0.0))


def _grid_sample_kernel(theta_ref, x_ref, o_ref, *, H, W, NT, P_pad):
    # theta_ref: SMEM (N_pad, 6) f32; x_ref: (NT, 1, H, W) f32; o_ref: (NT, 1, P_pad) f32
    tile = pl.program_id(0)
    for i in range(NT):
        n = tile * NT + i
        t0 = theta_ref[n, 0]
        t1 = theta_ref[n, 1]
        t2 = theta_ref[n, 2]
        t3 = theta_ref[n, 3]
        t4 = theta_ref[n, 4]
        t5 = theta_ref[n, 5]
        cx = _build_taps(t0, t1, t2, W, W, H, W, P_pad)              # (W, P_pad)
        ry = _build_taps(t3, t4, t5, H, H, H, W, P_pad)              # (H, P_pad)
        img = x_ref[i, 0]                                            # (H, W) f32
        u = jnp.dot(img, cx, preferred_element_type=jnp.float32)     # (H, P_pad)
        o_ref[pl.ds(i, 1)] = jnp.sum(ry * u, axis=0, keepdims=True)[None]


def grid_sample_bilinear(x_nchw, theta):
    """F.grid_sample(x, F.affine_grid(theta, x.size())), bilinear,
    align_corners=False, zeros padding.  x: (N, 1, H, W) f32, theta: (N, 6) f32.
    Returns (1, N, H, W) f32."""
    N, C, H, W = x_nchw.shape
    assert C == 1
    P = H * W
    P_pad = _round_up(P, 128)                       # lane-dense output (784 -> 896)
    num_tiles = 1 if N == 1 else max(2, _cdiv(N, 4))  # >=2 parallel steps for v7x
    NT = _cdiv(N, num_tiles)
    N_pad = num_tiles * NT
    xp = x_nchw if N_pad == N else jnp.pad(
        x_nchw, ((0, N_pad - N), (0, 0), (0, 0), (0, 0)))
    tp = theta if N_pad == N else jnp.pad(theta, ((0, N_pad - N), (0, 0)))

    out = pl.pallas_call(
        functools.partial(_grid_sample_kernel, H=H, W=W, NT=NT, P_pad=P_pad),
        out_shape=jax.ShapeDtypeStruct((N_pad, 1, P_pad), jnp.float32),
        grid=(num_tiles,),
        in_specs=[pl.BlockSpec(memory_space=pltpu.MemorySpace.SMEM),
                  pl.BlockSpec((NT, 1, H, W), lambda j: (j, 0, 0, 0))],
        out_specs=pl.BlockSpec((NT, 1, P_pad), lambda j: (j, 0, 0)),
        compiler_params=pltpu.CompilerParams(
            dimension_semantics=("parallel",)),
    )(tp, xp)
    return out[:N, 0, :P].reshape(N, H, W)[None]


# --------------------------------- fused MLP heads ----------------------------------

def _mlp_head_kernel(x_ref, w1_ref, b1_ref, w2_ref, b2_ref, o_ref, *,
                     final_log_softmax):
    h = jnp.dot(x_ref[...], w1_ref[...], preferred_element_type=jnp.float32)
    h = jnp.maximum(h + b1_ref[...], 0.0)
    y = jnp.dot(h.astype(w2_ref.dtype), w2_ref[...],
                preferred_element_type=jnp.float32) + b2_ref[...]
    if final_log_softmax:
        z = y - jnp.max(y, axis=-1, keepdims=True)
        y = z - jnp.log(jnp.sum(jnp.exp(z), axis=-1, keepdims=True))
    o_ref[...] = y


def mlp_head(x, w1, b1, w2, b2, final_log_softmax=False):
    """Fused relu(x @ w1 + b1) @ w2 + b2 (+ optional log_softmax).  x: (N, K1)."""
    N, K1 = x.shape
    D1 = w1.shape[1]
    D2 = w2.shape[1]
    return pl.pallas_call(
        functools.partial(_mlp_head_kernel, final_log_softmax=final_log_softmax),
        out_shape=jax.ShapeDtypeStruct((N, D2), jnp.float32),
        grid=(1,),
        in_specs=[pl.BlockSpec((N, K1), lambda i: (0, 0)),
                  pl.BlockSpec((K1, D1), lambda i: (0, 0)),
                  pl.BlockSpec((1, D1), lambda i: (0, 0)),
                  pl.BlockSpec((D1, D2), lambda i: (0, 0)),
                  pl.BlockSpec((1, D2), lambda i: (0, 0))],
        out_specs=pl.BlockSpec((N, D2), lambda i: (0, 0)),
    )(x.astype(jnp.bfloat16), w1, b1, w2, b2)


# ----------------------------------- model forward ----------------------------------

def forward(params, x):
    """params from prepare_params(); x: (N, 1, 28, 28) f32 NCHW."""
    N, C, H, W = x.shape
    x_cf = jnp.transpose(x, (1, 0, 2, 3))                                    # (1, N, H, W)

    # --- stn: localization network (conv+pool+relu fused per stage) ---
    xs = conv_pool_relu(x_cf, params['loc_conv1_w'], params['loc_conv1_b'])  # (8, N, 11, 11)
    xs = conv_pool_relu(xs, params['loc_conv2_w'], params['loc_conv2_b'])    # (10, N, 3, 3)
    xs_flat = jnp.transpose(xs, (1, 0, 2, 3)).reshape(N, 90)
    theta = mlp_head(xs_flat, params['fc_loc1_w'], params['fc_loc1_b'],
                     params['fc_loc2_w'], params['fc_loc2_b'])               # (N, 6)

    # --- affine_grid + grid_sample, batched over N, taps built in-kernel ---
    x_s = grid_sample_bilinear(x, theta)                                     # (1, N, H, W)

    # --- main classifier (conv+pool+relu fused per stage) ---
    y = conv_pool_relu(x_s, params['conv1_w'], params['conv1_b'])            # (10, N, 12, 12)
    y = conv_pool_relu(y, params['conv2_w'], params['conv2_b'])              # (20, N, 4, 4)
    # TODO(synk): Dropout2d / F.dropout are identity here (eval-mode semantics).
    y_flat = jnp.transpose(y, (1, 0, 2, 3)).reshape(N, 320)
    return mlp_head(y_flat, params['fc1_w'], params['fc1_b'],
                    params['fc2_w'], params['fc2_b'], final_log_softmax=True)


# -------------------------------------- params --------------------------------------

def init_params(key):
    """PyTorch-shaped parameters (same init scheme / shapes as the nn.Module)."""
    ks = jax.random.split(key, 14)

    def u(k, shape, fan_in):
        bound = float(fan_in) ** -0.5
        return jax.random.uniform(k, shape, jnp.float32, -bound, bound)

    return {
        'conv1_w': u(ks[0], (10, 1, 5, 5), 1 * 5 * 5),
        'conv1_b': u(ks[1], (10,), 1 * 5 * 5),
        'conv2_w': u(ks[2], (20, 10, 5, 5), 10 * 5 * 5),
        'conv2_b': u(ks[3], (20,), 10 * 5 * 5),
        'fc1_w': u(ks[4], (50, 320), 320),
        'fc1_b': u(ks[5], (50,), 320),
        'fc2_w': u(ks[6], (10, 50), 50),
        'fc2_b': u(ks[7], (10,), 50),
        'loc_conv1_w': u(ks[8], (8, 1, 7, 7), 1 * 7 * 7),
        'loc_conv1_b': u(ks[9], (8,), 1 * 7 * 7),
        'loc_conv2_w': u(ks[10], (10, 8, 5, 5), 8 * 5 * 5),
        'loc_conv2_b': u(ks[11], (10,), 8 * 5 * 5),
        'fc_loc1_w': u(ks[12], (32, 90), 90),
        'fc_loc1_b': u(ks[13], (32,), 90),
        # exactly as in __init__: zero weight, identity-transform bias
        'fc_loc2_w': jnp.zeros((6, 32), jnp.float32),
        'fc_loc2_b': jnp.array([1, 0, 0, 0, 1, 0], jnp.float32),
    }


def prepare_params(params):
    """One-time conversion to kernel-ready layouts: conv weights flattened to
    (Cout, Cin*k*k) bf16, fc weights pre-transposed to (in, out) bf16, biases as
    broadcastable f32 columns/rows (accumulation / epilogues stay f32 in-kernel)."""
    bf = jnp.bfloat16
    f32 = jnp.float32

    def conv_w(w):
        return w.reshape(w.shape[0], -1).astype(bf)

    def col(b):
        return b.reshape(-1, 1).astype(f32)

    def row(b):
        return b.reshape(1, -1).astype(f32)

    return {
        'loc_conv1_w': conv_w(params['loc_conv1_w']),
        'loc_conv1_b': col(params['loc_conv1_b']),
        'loc_conv2_w': conv_w(params['loc_conv2_w']),
        'loc_conv2_b': col(params['loc_conv2_b']),
        'conv1_w': conv_w(params['conv1_w']),
        'conv1_b': col(params['conv1_b']),
        'conv2_w': conv_w(params['conv2_w']),
        'conv2_b': col(params['conv2_b']),
        'fc_loc1_w': params['fc_loc1_w'].T.astype(bf),
        'fc_loc1_b': row(params['fc_loc1_b']),
        'fc_loc2_w': params['fc_loc2_w'].T.astype(bf),
        'fc_loc2_b': row(params['fc_loc2_b']),
        'fc1_w': params['fc1_w'].T.astype(bf),
        'fc1_b': row(params['fc1_b']),
        'fc2_w': params['fc2_w'].T.astype(bf),
        'fc2_b': row(params['fc2_b']),
    }


if __name__ == "__main__":
    key = jax.random.PRNGKey(0)
    pkey, xkey = jax.random.split(key)
    params = prepare_params(init_params(pkey))
    # MNIST-style input: the 320-wide flatten forces 28x28 spatial size, 1 channel.
    x = jax.random.normal(xkey, (2, 1, 28, 28), dtype=jnp.float32)

    out = jax.jit(forward)(params, x)
    out = jax.block_until_ready(out)

    assert out.shape == (2, 10), out.shape
    assert bool(jnp.all(jnp.isfinite(out)))
    # rows of log_softmax should exponentiate-and-sum to ~1
    assert bool(jnp.all(jnp.abs(jnp.sum(jnp.exp(out), axis=1) - 1.0) < 1e-4))
    print("KERNEL_OK")
</pallas_src>

<mosaic_0001>
module attributes {stable_mosaic.version = 11 : i64} {
  func.func @_conv_pool_relu_kernel(%arg0: i32, %arg1: memref<4x49x128xbf16, #tpu.memory_space<vmem>>, %arg2: memref<8x49xbf16, #tpu.memory_space<vmem>>, %arg3: memref<8x1xf32, #tpu.memory_space<vmem>>, %arg4: memref<8x128xf32, #tpu.memory_space<vmem>>) attributes {dimension_semantics = [#tpu.dimension_semantics<parallel>], iteration_bounds = array<i64: 2>, scalar_prefetch = 0 : i64, scratch_operands = 0 : i64, tpu.core_type = #tpu.core_type<tc>, window_params = [{transform_indices = @transform_0, window_bounds = array<i64: 4, 49, 128>}, {pipeline_mode = #tpu.pipeline_mode<synchronous>, transform_indices = @transform_1, window_bounds = array<i64: 8, 49>}, {pipeline_mode = #tpu.pipeline_mode<synchronous>, transform_indices = @transform_2, window_bounds = array<i64: 8, 1>}, {transform_indices = @transform_3, window_bounds = array<i64: 8, 128>}]} {
    %c0 = arith.constant 0 : index
    %c0_0 = arith.constant 0 : index
    %0 = vector.load %arg2[%c0, %c0_0] : memref<8x49xbf16, #tpu.memory_space<vmem>>, vector<8x49xbf16>
    %c0_1 = arith.constant 0 : index
    %c0_2 = arith.constant 0 : index
    %c0_3 = arith.constant 0 : index
    %1 = vector.load %arg1[%c0_1, %c0_2, %c0_3] : memref<4x49x128xbf16, #tpu.memory_space<vmem>>, vector<1x49x128xbf16>
    %2 = vector.shape_cast %1 : vector<1x49x128xbf16> to vector<49x128xbf16>
    %cst = arith.constant dense<0.000000e+00> : vector<8x128xf32>
    %3 = tpu.matmul %0, %2, %cst {dimension_numbers = #tpu.dot_dimension_numbers<[1], [0], [0], [1], [0, 0, 1, 1], [], []>} : vector<8x49xbf16>, vector<49x128xbf16>, vector<8x128xf32> -> vector<8x128xf32>
    %c1 = arith.constant 1 : index
    %c0_4 = arith.constant 0 : index
    %c0_5 = arith.constant 0 : index
    %4 = vector.load %arg1[%c1, %c0_4, %c0_5] : memref<4x49x128xbf16, #tpu.memory_space<vmem>>, vector<1x49x128xbf16>
    %5 = vector.shape_cast %4 : vector<1x49x128xbf16> to vector<49x128xbf16>
    %cst_6 = arith.constant dense<0.000000e+00> : vector<8x128xf32>
    %6 = tpu.matmul %0, %5, %cst_6 {dimension_numbers = #tpu.dot_dimension_numbers<[1], [0], [0], [1], [0, 0, 1, 1], [], []>} : vector<8x49xbf16>, vector<49x128xbf16>, vector<8x128xf32> -> vector<8x128xf32>
    %7 = arith.maximumf %3, %6 : vector<8x128xf32>
    %c2 = arith.constant 2 : index
    %c0_7 = arith.constant 0 : index
    %c0_8 = arith.constant 0 : index
    %8 = vector.load %arg1[%c2, %c0_7, %c0_8] : memref<4x49x128xbf16, #tpu.memory_space<vmem>>, vector<1x49x128xbf16>
    %9 = vector.shape_cast %8 : vector<1x49x128xbf16> to vector<49x128xbf16>
    %cst_9 = arith.constant dense<0.000000e+00> : vector<8x128xf32>
    %10 = tpu.matmul %0, %9, %cst_9 {dimension_numbers = #tpu.dot_dimension_numbers<[1], [0], [0], [1], [0, 0, 1, 1], [], []>} : vector<8x49xbf16>, vector<49x128xbf16>, vector<8x128xf32> -> vector<8x128xf32>
    %11 = arith.maximumf %7, %10 : vector<8x128xf32>
    %c3 = arith.constant 3 : index
    %c0_10 = arith.constant 0 : index
    %c0_11 = arith.constant 0 : index
    %12 = vector.load %arg1[%c3, %c0_10, %c0_11] : memref<4x49x128xbf16, #tpu.memory_space<vmem>>, vector<1x49x128xbf16>
    %13 = vector.shape_cast %12 : vector<1x49x128xbf16> to vector<49x128xbf16>
    %cst_12 = arith.constant dense<0.000000e+00> : vector<8x128xf32>
    %14 = tpu.matmul %0, %13, %cst_12 {dimension_numbers = #tpu.dot_dimension_numbers<[1], [0], [0], [1], [0, 0, 1, 1], [], []>} : vector<8x49xbf16>, vector<49x128xbf16>, vector<8x128xf32> -> vector<8x128xf32>
    %15 = arith.maximumf %11, %14 : vector<8x128xf32>
    %c0_13 = arith.constant 0 : index
    %c0_14 = arith.constant 0 : index
    %16 = vector.load %arg3[%c0_13, %c0_14] : memref<8x1xf32, #tpu.memory_space<vmem>>, vector<8x1xf32>
    %17 = vector.broadcast %16 : vector<8x1xf32> to vector<8x128xf32>
    %18 = arith.addf %15, %17 : vector<8x128xf32>
    %cst_15 = arith.constant 0.000000e+00 : f32
    %19 = vector.broadcast %cst_15 : f32 to vector<8x128xf32>
    %20 = arith.maximumf %18, %19 : vector<8x128xf32>
    %c0_16 = arith.constant 0 : index
    %c0_17 = arith.constant 0 : index
    %21 = vector.load %arg4[%c0_16, %c0_17] : memref<8x128xf32, #tpu.memory_space<vmem>>, vector<8x128xf32>
    tpu.vector_store %arg4[%c0_16, %c0_17], %20 {strides = array<i32>} : memref<8x128xf32, #tpu.memory_space<vmem>>, vector<8x128xf32>,
    return
  }
  func.func @transform_0(%arg0: i32) -> (i32, i32, i32) {
    %c0_i32 = arith.constant 0 : i32
    %c0_i32_0 = arith.constant 0 : i32
    %c0_i32_1 = arith.constant 0 : i32
    return %c0_i32, %c0_i32_0, %arg0 : i32, i32, i32
  }
  func.func @transform_1(%arg0: i32) -> (i32, i32) {
    %c0_i32 = arith.constant 0 : i32
    %c0_i32_0 = arith.constant 0 : i32
    %c0_i32_1 = arith.constant 0 : i32
    return %c0_i32, %c0_i32_0 : i32, i32
  }
  func.func @transform_2(%arg0: i32) -> (i32, i32) {
    %c0_i32 = arith.constant 0 : i32
    %c0_i32_0 = arith.constant 0 : i32
    %c0_i32_1 = arith.constant 0 : i32
    return %c0_i32, %c0_i32_0 : i32, i32
  }
  func.func @transform_3(%arg0: i32) -> (i32, i32) {
    %c0_i32 = arith.constant 0 : i32
    %c0_i32_0 = arith.constant 0 : i32
    return %c0_i32, %arg0 : i32, i32
  }
}

module attributes {stable_mosaic.version = 11 : i64} {
  func.func @_conv_pool_relu_kernel(%arg0: i32, %arg1: memref<4x200x128xbf16, #tpu.memory_space<vmem>>, %arg2: memref<10x200xbf16, #tpu.memory_space<vmem>>, %arg3: memref<10x1xf32, #tpu.memory_space<vmem>>, %arg4: memref<10x128xf32, #tpu.memory_space<vmem>>) attributes {dimension_semantics = [#tpu.dimension_semantics<parallel>], iteration_bounds = array<i64: 1>, scalar_prefetch = 0 : i64, scratch_operands = 0 : i64, tpu.core_type = #tpu.core_type<tc>, window_params = [{transform_indices = @transform_0, window_bounds = array<i64: 4, 200, 128>}, {pipeline_mode = #tpu.pipeline_mode<synchronous>, transform_indices = @transform_1, window_bounds = array<i64: 10, 200>}, {pipeline_mode = #tpu.pipeline_mode<synchronous>, transform_indices = @transform_2, window_bounds = array<i64: 10, 1>}, {transform_indices = @transform_3, window_bounds = array<i64: 10, 128>}]} {
    %c0 = arith.constant 0 : index
    %c0_0 = arith.constant 0 : index
    %0 = vector.load %arg2[%c0, %c0_0] : memref<10x200xbf16, #tpu.memory_space<vmem>>, vector<10x200xbf16>
    %c0_1 = arith.constant 0 : index
    %c0_2 = arith.constant 0 : index
    %c0_3 = arith.constant 0 : index
    %1 = vector.load %arg1[%c0_1, %c0_2, %c0_3] : memref<4x200x128xbf16, #tpu.memory_space<vmem>>, vector<1x200x128xbf16>
    %2 = vector.shape_cast %1 : vector<1x200x128xbf16> to vector<200x128xbf16>
    %cst = arith.constant dense<0.000000e+00> : vector<10x128xf32>
    %3 = tpu.matmul %0, %2, %cst {dimension_numbers = #tpu.dot_dimension_numbers<[1], [0], [0], [1], [0, 0, 1, 1], [], []>} : vector<10x200xbf16>, vector<200x128xbf16>, vector<10x128xf32> -> vector<10x128xf32>
    %c1 = arith.constant 1 : index
    %c0_4 = arith.constant 0 : index
    %c0_5 = arith.constant 0 : index
    %4 = vector.load %arg1[%c1, %c0_4, %c0_5] : memref<4x200x128xbf16, #tpu.memory_space<vmem>>, vector<1x200x128xbf16>
    %5 = vector.shape_cast %4 : vector<1x200x128xbf16> to vector<200x128xbf16>
    %cst_6 = arith.constant dense<0.000000e+00> : vector<10x128xf32>
    %6 = tpu.matmul %0, %5, %cst_6 {dimension_numbers = #tpu.dot_dimension_numbers<[1], [0], [0], [1], [0, 0, 1, 1], [], []>} : vector<10x200xbf16>, vector<200x128xbf16>, vector<10x128xf32> -> vector<10x128xf32>
    %7 = arith.maximumf %3, %6 : vector<10x128xf32>
    %c2 = arith.constant 2 : index
    %c0_7 = arith.constant 0 : index
    %c0_8 = arith.constant 0 : index
    %8 = vector.load %arg1[%c2, %c0_7, %c0_8] : memref<4x200x128xbf16, #tpu.memory_space<vmem>>, vector<1x200x128xbf16>
    %9 = vector.shape_cast %8 : vector<1x200x128xbf16> to vector<200x128xbf16>
    %cst_9 = arith.constant dense<0.000000e+00> : vector<10x128xf32>
    %10 = tpu.matmul %0, %9, %cst_9 {dimension_numbers = #tpu.dot_dimension_numbers<[1], [0], [0], [1], [0, 0, 1, 1], [], []>} : vector<10x200xbf16>, vector<200x128xbf16>, vector<10x128xf32> -> vector<10x128xf32>
    %11 = arith.maximumf %7, %10 : vector<10x128xf32>
    %c3 = arith.constant 3 : index
    %c0_10 = arith.constant 0 : index
    %c0_11 = arith.constant 0 : index
    %12 = vector.load %arg1[%c3, %c0_10, %c0_11] : memref<4x200x128xbf16, #tpu.memory_space<vmem>>, vector<1x200x128xbf16>
    %13 = vector.shape_cast %12 : vector<1x200x128xbf16> to vector<200x128xbf16>
    %cst_12 = arith.constant dense<0.000000e+00> : vector<10x128xf32>
    %14 = tpu.matmul %0, %13, %cst_12 {dimension_numbers = #tpu.dot_dimension_numbers<[1], [0], [0], [1], [0, 0, 1, 1], [], []>} : vector<10x200xbf16>, vector<200x128xbf16>, vector<10x128xf32> -> vector<10x128xf32>
    %15 = arith.maximumf %11, %14 : vector<10x128xf32>
    %c0_13 = arith.constant 0 : index
    %c0_14 = arith.constant 0 : index
    %16 = vector.load %arg3[%c0_13, %c0_14] : memref<10x1xf32, #tpu.memory_space<vmem>>, vector<10x1xf32>
    %17 = vector.broadcast %16 : vector<10x1xf32> to vector<10x128xf32>
    %18 = arith.addf %15, %17 : vector<10x128xf32>
    %cst_15 = arith.constant 0.000000e+00 : f32
    %19 = vector.broadcast %cst_15 : f32 to vector<10x128xf32>
    %20 = arith.maximumf %18, %19 : vector<10x128xf32>
    %c0_16 = arith.constant 0 : index
    %c0_17 = arith.constant 0 : index
    %21 = vector.load %arg4[%c0_16, %c0_17] : memref<10x128xf32, #tpu.memory_space<vmem>>, vector<10x128xf32>
    tpu.vector_store %arg4[%c0_16, %c0_17], %20 {strides = array<i32>} : memref<10x128xf32, #tpu.memory_space<vmem>>, vector<10x128xf32>,
    return
  }
  func.func @transform_0(%arg0: i32) -> (i32, i32, i32) {
    %c0_i32 = arith.constant 0 : i32
    %c0_i32_0 = arith.constant 0 : i32
    %c0_i32_1 = arith.constant 0 : i32
    return %c0_i32, %c0_i32_0, %arg0 : i32, i32, i32
  }
  func.func @transform_1(%arg0: i32) -> (i32, i32) {
    %c0_i32 = arith.constant 0 : i32
    %c0_i32_0 = arith.constant 0 : i32
    %c0_i32_1 = arith.constant 0 : i32
    return %c0_i32, %c0_i32_0 : i32, i32
  }
  func.func @transform_2(%arg0: i32) -> (i32, i32) {
    %c0_i32 = arith.constant 0 : i32
    %c0_i32_0 = arith.constant 0 : i32
    %c0_i32_1 = arith.constant 0 : i32
    return %c0_i32, %c0_i32_0 : i32, i32
  }
  func.func @transform_3(%arg0: i32) -> (i32, i32) {
    %c0_i32 = arith.constant 0 : i32
    %c0_i32_0 = arith.constant 0 : i32
    return %c0_i32, %arg0 : i32, i32
  }
}

module attributes {stable_mosaic.version = 11 : i64} {
  func.func @_mlp_head_kernel(%arg0: i32, %arg1: memref<2x90xbf16, #tpu.memory_space<vmem>>, %arg2: memref<90x32xbf16, #tpu.memory_space<vmem>>, %arg3: memref<1x32xf32, #tpu.memory_space<vmem>>, %arg4: memref<32x6xbf16, #tpu.memory_space<vmem>>, %arg5: memref<1x6xf32, #tpu.memory_space<vmem>>, %arg6: memref<2x6xf32, #tpu.memory_space<vmem>>) attributes {dimension_semantics = [#tpu.dimension_semantics<arbitrary>], iteration_bounds = array<i64: 1>, scalar_prefetch = 0 : i64, scratch_operands = 0 : i64, tpu.core_type = #tpu.core_type<tc>, window_params = [{pipeline_mode = #tpu.pipeline_mode<synchronous>, transform_indices = @transform_0, window_bounds = array<i64: 2, 90>}, {pipeline_mode = #tpu.pipeline_mode<synchronous>, transform_indices = @transform_1, window_bounds = array<i64: 90, 32>}, {pipeline_mode = #tpu.pipeline_mode<synchronous>, transform_indices = @transform_2, window_bounds = array<i64: 1, 32>}, {pipeline_mode = #tpu.pipeline_mode<synchronous>, transform_indices = @transform_3, window_bounds = array<i64: 32, 6>}, {pipeline_mode = #tpu.pipeline_mode<synchronous>, transform_indices = @transform_4, window_bounds = array<i64: 1, 6>}, {pipeline_mode = #tpu.pipeline_mode<synchronous>, transform_indices = @transform_5, window_bounds = array<i64: 2, 6>}]} {
    %c0 = arith.constant 0 : index
    %c0_0 = arith.constant 0 : index
    %0 = vector.load %arg1[%c0, %c0_0] : memref<2x90xbf16, #tpu.memory_space<vmem>>, vector<2x90xbf16>
    %c0_1 = arith.constant 0 : index
    %c0_2 = arith.constant 0 : index
    %1 = vector.load %arg2[%c0_1, %c0_2] : memref<90x32xbf16, #tpu.memory_space<vmem>>, vector<90x32xbf16>
    %cst = arith.constant dense<0.000000e+00> : vector<2x32xf32>
    %2 = tpu.matmul %0, %1, %cst {dimension_numbers = #tpu.dot_dimension_numbers<[1], [0], [0], [1], [0, 0, 1, 1], [], []>} : vector<2x90xbf16>, vector<90x32xbf16>, vector<2x32xf32> -> vector<2x32xf32>
    %c0_3 = arith.constant 0 : index
    %c0_4 = arith.constant 0 : index
    %3 = vector.load %arg3[%c0_3, %c0_4] : memref<1x32xf32, #tpu.memory_space<vmem>>, vector<1x32xf32>
    %4 = vector.broadcast %3 : vector<1x32xf32> to vector<2x32xf32>
    %5 = arith.addf %2, %4 : vector<2x32xf32>
    %cst_5 = arith.constant 0.000000e+00 : f32
    %6 = vector.broadcast %cst_5 : f32 to vector<2x32xf32>
    %7 = arith.maximumf %5, %6 : vector<2x32xf32>
    %8 = arith.truncf %7 : vector<2x32xf32> to vector<2x32xbf16>
    %c0_6 = arith.constant 0 : index
    %c0_7 = arith.constant 0 : index
    %9 = vector.load %arg4[%c0_6, %c0_7] : memref<32x6xbf16, #tpu.memory_space<vmem>>, vector<32x6xbf16>
    %cst_8 = arith.constant dense<0.000000e+00> : vector<2x6xf32>
    %10 = tpu.matmul %8, %9, %cst_8 {dimension_numbers = #tpu.dot_dimension_numbers<[1], [0], [0], [1], [0, 0, 1, 1], [], []>} : vector<2x32xbf16>, vector<32x6xbf16>, vector<2x6xf32> -> vector<2x6xf32>
    %c0_9 = arith.constant 0 : index
    %c0_10 = arith.constant 0 : index
    %11 = vector.load %arg5[%c0_9, %c0_10] : memref<1x6xf32, #tpu.memory_space<vmem>>, vector<1x6xf32>
    %12 = vector.broadcast %11 : vector<1x6xf32> to vector<2x6xf32>
    %13 = arith.addf %10, %12 : vector<2x6xf32>
    %c0_11 = arith.constant 0 : index
    %c0_12 = arith.constant 0 : index
    %14 = vector.load %arg6[%c0_11, %c0_12] : memref<2x6xf32, #tpu.memory_space<vmem>>, vector<2x6xf32>
    tpu.vector_store %arg6[%c0_11, %c0_12], %13 {strides = array<i32>} : memref<2x6xf32, #tpu.memory_space<vmem>>, vector<2x6xf32>,
    return
  }
  func.func @transform_0(%arg0: i32) -> (i32, i32) {
    %c0_i32 = arith.constant 0 : i32
    %c0_i32_0 = arith.constant 0 : i32
    %c0_i32_1 = arith.constant 0 : i32
    return %c0_i32, %c0_i32_0 : i32, i32
  }
  func.func @transform_1(%arg0: i32) -> (i32, i32) {
    %c0_i32 = arith.constant 0 : i32
    %c0_i32_0 = arith.constant 0 : i32
    %c0_i32_1 = arith.constant 0 : i32
    return %c0_i32, %c0_i32_0 : i32, i32
  }
  func.func @transform_2(%arg0: i32) -> (i32, i32) {
    %c0_i32 = arith.constant 0 : i32
    %c0_i32_0 = arith.constant 0 : i32
    %c0_i32_1 = arith.constant 0 : i32
    return %c0_i32, %c0_i32_0 : i32, i32
  }
  func.func @transform_3(%arg0: i32) -> (i32, i32) {
    %c0_i32 = arith.constant 0 : i32
    %c0_i32_0 = arith.constant 0 : i32
    %c0_i32_1 = arith.constant 0 : i32
    return %c0_i32, %c0_i32_0 : i32, i32
  }
  func.func @transform_4(%arg0: i32) -> (i32, i32) {
    %c0_i32 = arith.constant 0 : i32
    %c0_i32_0 = arith.constant 0 : i32
    %c0_i32_1 = arith.constant 0 : i32
    return %c0_i32, %c0_i32_0 : i32, i32
  }
  func.func @transform_5(%arg0: i32) -> (i32, i32) {
    %c0_i32 = arith.constant 0 : i32
    %c0_i32_0 = arith.constant 0 : i32
    %c0_i32_1 = arith.constant 0 : i32
    return %c0_i32, %c0_i32_0 : i32, i32
  }
}

module attributes {stable_mosaic.version = 11 : i64} {
  func.func @_grid_sample_kernel(%arg0: i32, %arg1: memref<2x6xf32, #tpu.memory_space<smem>>, %arg2: memref<1x1x28x28xf32, #tpu.memory_space<vmem>>, %arg3: memref<1x1x896xf32, #tpu.memory_space<vmem>>) attributes {dimension_semantics = [#tpu.dimension_semantics<parallel>], iteration_bounds = array<i64: 2>, scalar_prefetch = 0 : i64, scratch_operands = 0 : i64, tpu.core_type = #tpu.core_type<tc>, window_params = [{transform_indices = @transform_0, window_bounds = array<i64: 2, 6>}, {transform_indices = @transform_1, window_bounds = array<i64: 1, 1, 28, 28>}, {transform_indices = @transform_2, window_bounds = array<i64: 1, 1, 896>}]} {
    %c1_i32 = arith.constant 1 : i32
    %0 = arith.muli %arg0, %c1_i32 : i32
    %c0_i32 = arith.constant 0 : i32
    %1 = arith.addi %0, %c0_i32 : i32
    %2 = arith.index_cast %1 : i32 to index
    %c0 = arith.constant 0 : index
    %3 = memref.load %arg1[%2, %c0] : memref<2x6xf32, #tpu.memory_space<smem>>
    %4 = arith.index_cast %1 : i32 to index
    %c1 = arith.constant 1 : index
    %5 = memref.load %arg1[%4, %c1] : memref<2x6xf32, #tpu.memory_space<smem>>
    %6 = arith.index_cast %1 : i32 to index
    %c2 = arith.constant 2 : index
    %7 = memref.load %arg1[%6, %c2] : memref<2x6xf32, #tpu.memory_space<smem>>
    %8 = arith.index_cast %1 : i32 to index
    %c3 = arith.constant 3 : index
    %9 = memref.load %arg1[%8, %c3] : memref<2x6xf32, #tpu.memory_space<smem>>
    %10 = arith.index_cast %1 : i32 to index
    %c4 = arith.constant 4 : index
    %11 = memref.load %arg1[%10, %c4] : memref<2x6xf32, #tpu.memory_space<smem>>
    %12 = arith.index_cast %1 : i32 to index
    %c5 = arith.constant 5 : index
    %13 = memref.load %arg1[%12, %c5] : memref<2x6xf32, #tpu.memory_space<smem>>
    %14 = tpu.iota {dimensions = array<i32: 1>} : vector<28x896xi32>
    %15 = arith.sitofp %14 : vector<28x896xi32> to vector<28x896xf32>
    %cst = arith.constant 5.000000e-01 : f32
    %16 = vector.broadcast %cst : f32 to vector<28x896xf32>
    %17 = arith.addf %15, %16 : vector<28x896xf32>
    %cst_0 = arith.constant 0.0357142873 : f32
    %18 = vector.broadcast %cst_0 : f32 to vector<28x896xf32>
    %19 = arith.mulf %17, %18 : vector<28x896xf32>
    %20 = math.floor %19 : vector<28x896xf32>
    %cst_1 = arith.constant 2.800000e+01 : f32
    %21 = vector.broadcast %cst_1 : f32 to vector<28x896xf32>
    %22 = arith.mulf %20, %21 : vector<28x896xf32>
    %23 = arith.subf %15, %22 : vector<28x896xf32>
    %cst_2 = arith.constant 2.000000e+00 : f32
    %24 = vector.broadcast %cst_2 : f32 to vector<28x896xf32>
    %25 = arith.mulf %24, %23 : vector<28x896xf32>
    %cst_3 = arith.constant 1.000000e+00 : f32
    %26 = vector.broadcast %cst_3 : f32 to vector<28x896xf32>
    %27 = arith.addf %25, %26 : vector<28x896xf32>
    %cst_4 = arith.constant 2.800000e+01 : f32
    %28 = vector.broadcast %cst_4 : f32 to vector<28x896xf32>
    %29 = arith.divf %27, %28 : vector<28x896xf32>
    %cst_5 = arith.constant 1.000000e+00 : f32
    %30 = vector.broadcast %cst_5 : f32 to vector<28x896xf32>
    %31 = arith.subf %29, %30 : vector<28x896xf32>
    %cst_6 = arith.constant 2.000000e+00 : f32
    %32 = vector.broadcast %cst_6 : f32 to vector<28x896xf32>
    %33 = arith.mulf %32, %20 : vector<28x896xf32>
    %cst_7 = arith.constant 1.000000e+00 : f32
    %34 = vector.broadcast %cst_7 : f32 to vector<28x896xf32>
    %35 = arith.addf %33, %34 : vector<28x896xf32>
    %cst_8 = arith.constant 2.800000e+01 : f32
    %36 = vector.broadcast %cst_8 : f32 to vector<28x896xf32>
    %37 = arith.divf %35, %36 : vector<28x896xf32>
    %cst_9 = arith.constant 1.000000e+00 : f32
    %38 = vector.broadcast %cst_9 : f32 to vector<28x896xf32>
    %39 = arith.subf %37, %38 : vector<28x896xf32>
    %40 = vector.broadcast %3 : f32 to vector<28x896xf32>
    %41 = arith.mulf %40, %31 : vector<28x896xf32>
    %42 = vector.broadcast %5 : f32 to vector<28x896xf32>
    %43 = arith.mulf %42, %39 : vector<28x896xf32>
    %44 = arith.addf %41, %43 : vector<28x896xf32>
    %45 = vector.broadcast %7 : f32 to vector<28x896xf32>
    %46 = arith.addf %44, %45 : vector<28x896xf32>
    %cst_10 = arith.constant 1.000000e+00 : f32
    %47 = vector.broadcast %cst_10 : f32 to vector<28x896xf32>
    %48 = arith.addf %46, %47 : vector<28x896xf32>
    %cst_11 = arith.constant 2.800000e+01 : f32
    %49 = vector.broadcast %cst_11 : f32 to vector<28x896xf32>
    %50 = arith.mulf %48, %49 : vector<28x896xf32>
    %cst_12 = arith.constant 1.000000e+00 : f32
    %51 = vector.broadcast %cst_12 : f32 to vector<28x896xf32>
    %52 = arith.subf %50, %51 : vector<28x896xf32>
    %cst_13 = arith.constant 5.000000e-01 : f32
    %53 = vector.broadcast %cst_13 : f32 to vector<28x896xf32>
    %54 = arith.mulf %52, %53 : vector<28x896xf32>
    %55 = tpu.iota {dimensions = array<i32: 0>} : vector<28x896xi32>
    %56 = arith.sitofp %55 : vector<28x896xi32> to vector<28x896xf32>
    %57 = math.floor %54 : vector<28x896xf32>
    %58 = arith.subf %54, %57 : vector<28x896xf32>
    %59 = arith.cmpf oeq, %56, %57 : vector<28x896xf32>
    %cst_14 = arith.constant 1.000000e+00 : f32
    %60 = vector.broadcast %cst_14 : f32 to vector<28x896xf32>
    %61 = arith.subf %60, %58 : vector<28x896xf32>
    %cst_15 = arith.constant 0.000000e+00 : f32
    %62 = vector.broadcast %cst_15 : f32 to vector<28x896xf32>
    %63 = arith.select %59, %61, %62 : vector<28x896xi1>, vector<28x896xf32>
    %cst_16 = arith.constant 1.000000e+00 : f32
    %64 = vector.broadcast %cst_16 : f32 to vector<28x896xf32>
    %65 = arith.addf %57, %64 : vector<28x896xf32>
    %66 = arith.cmpf oeq, %56, %65 : vector<28x896xf32>
    %cst_17 = arith.constant 0.000000e+00 : f32
    %67 = vector.broadcast %cst_17 : f32 to vector<28x896xf32>
    %68 = arith.select %66, %58, %67 : vector<28x896xi1>, vector<28x896xf32>
    %69 = arith.addf %63, %68 : vector<28x896xf32>
    %70 = tpu.iota {dimensions = array<i32: 1>} : vector<28x896xi32>
    %71 = arith.sitofp %70 : vector<28x896xi32> to vector<28x896xf32>
    %cst_18 = arith.constant 5.000000e-01 : f32
    %72 = vector.broadcast %cst_18 : f32 to vector<28x896xf32>
    %73 = arith.addf %71, %72 : vector<28x896xf32>
    %cst_19 = arith.constant 0.0357142873 : f32
    %74 = vector.broadcast %cst_19 : f32 to vector<28x896xf32>
    %75 = arith.mulf %73, %74 : vector<28x896xf32>
    %76 = math.floor %75 : vector<28x896xf32>
    %cst_20 = arith.constant 2.800000e+01 : f32
    %77 = vector.broadcast %cst_20 : f32 to vector<28x896xf32>
    %78 = arith.mulf %76, %77 : vector<28x896xf32>
    %79 = arith.subf %71, %78 : vector<28x896xf32>
    %cst_21 = arith.constant 2.000000e+00 : f32
    %80 = vector.broadcast %cst_21 : f32 to vector<28x896xf32>
    %81 = arith.mulf %80, %79 : vector<28x896xf32>
    %cst_22 = arith.constant 1.000000e+00 : f32
    %82 = vector.broadcast %cst_22 : f32 to vector<28x896xf32>
    %83 = arith.addf %81, %82 : vector<28x896xf32>
    %cst_23 = arith.constant 2.800000e+01 : f32
    %84 = vector.broadcast %cst_23 : f32 to vector<28x896xf32>
    %85 = arith.divf %83, %84 : vector<28x896xf32>
    %cst_24 = arith.constant 1.000000e+00 : f32
    %86 = vector.broadcast %cst_24 : f32 to vector<28x896xf32>
    %87 = arith.subf %85, %86 : vector<28x896xf32>
    %cst_25 = arith.constant 2.000000e+00 : f32
    %88 = vector.broadcast %cst_25 : f32 to vector<28x896xf32>
    %89 = arith.mulf %88, %76 : vector<28x896xf32>
    %cst_26 = arith.constant 1.000000e+00 : f32
    %90 = vector.broadcast %cst_26 : f32 to vector<28x896xf32>
    %91 = arith.addf %89, %90 : vector<28x896xf32>
    %cst_27 = arith.constant 2.800000e+01 : f32
    %92 = vector.broadcast %cst_27 : f32 to vector<28x896xf32>
    %93 = arith.divf %91, %92 : vector<28x896xf32>
    %cst_28 = arith.constant 1.000000e+00 : f32
    %94 = vector.broadcast %cst_28 : f32 to vector<28x896xf32>
    %95 = arith.subf %93, %94 : vector<28x896xf32>
    %96 = vector.broadcast %9 : f32 to vector<28x896xf32>
    %97 = arith.mulf %96, %87 : vector<28x896xf32>
    %98 = vector.broadcast %11 : f32 to vector<28x896xf32>
    %99 = arith.mulf %98, %95 : vector<28x896xf32>
    %100 = arith.addf %97, %99 : vector<28x896xf32>
    %101 = vector.broadcast %13 : f32 to vector<28x896xf32>
    %102 = arith.addf %100, %101 : vector<28x896xf32>
    %cst_29 = arith.constant 1.000000e+00 : f32
    %103 = vector.broadcast %cst_29 : f32 to vector<28x896xf32>
    %104 = arith.addf %102, %103 : vector<28x896xf32>
    %cst_30 = arith.constant 2.800000e+01 : f32
    %105 = vector.broadcast %cst_30 : f32 to vector<28x896xf32>
    %106 = arith.mulf %104, %105 : vector<28x896xf32>
    %cst_31 = arith.constant 1.000000e+00 : f32
    %107 = vector.broadcast %cst_31 : f32 to vector<28x896xf32>
    %108 = arith.subf %106, %107 : vector<28x896xf32>
    %cst_32 = arith.constant 5.000000e-01 : f32
    %109 = vector.broadcast %cst_32 : f32 to vector<28x896xf32>
    %110 = arith.mulf %108, %109 : vector<28x896xf32>
    %111 = tpu.iota {dimensions = array<i32: 0>} : vector<28x896xi32>
    %112 = arith.sitofp %111 : vector<28x896xi32> to vector<28x896xf32>
    %113 = math.floor %110 : vector<28x896xf32>
    %114 = arith.subf %110, %113 : vector<28x896xf32>
    %115 = arith.cmpf oeq, %112, %113 : vector<28x896xf32>
    %cst_33 = arith.constant 1.000000e+00 : f32
    %116 = vector.broadcast %cst_33 : f32 to vector<28x896xf32>
    %117 = arith.subf %116, %114 : vector<28x896xf32>
    %cst_34 = arith.constant 0.000000e+00 : f32
    %118 = vector.broadcast %cst_34 : f32 to vector<28x896xf32>
    %119 = arith.select %115, %117, %118 : vector<28x896xi1>, vector<28x896xf32>
    %cst_35 = arith.constant 1.000000e+00 : f32
    %120 = vector.broadcast %cst_35 : f32 to vector<28x896xf32>
    %121 = arith.addf %113, %120 : vector<28x896xf32>
    %122 = arith.cmpf oeq, %112, %121 : vector<28x896xf32>
    %cst_36 = arith.constant 0.000000e+00 : f32
    %123 = vector.broadcast %cst_36 : f32 to vector<28x896xf32>
    %124 = arith.select %122, %114, %123 : vector<28x896xi1>, vector<28x896xf32>
    %125 = arith.addf %119, %124 : vector<28x896xf32>
    %c0_37 = arith.constant 0 : index
    %c0_38 = arith.constant 0 : index
    %c0_39 = arith.constant 0 : index
    %c0_40 = arith.constant 0 : index
    %126 = vector.load %arg2[%c0_37, %c0_38, %c0_39, %c0_40] : memref<1x1x28x28xf32, #tpu.memory_space<vmem>>, vector<1x1x28x28xf32>
    %127 = vector.shape_cast %126 : vector<1x1x28x28xf32> to vector<28x28xf32>
    %cst_41 = arith.constant dense<0.000000e+00> : vector<28x896xf32>
    %128 = tpu.matmul %127, %69, %cst_41 {dimension_numbers = #tpu.dot_dimension_numbers<[1], [0], [0], [1], [0, 0, 1, 1], [], []>} : vector<28x28xf32>, vector<28x896xf32>, vector<28x896xf32> -> vector<28x896xf32>
    %129 = arith.mulf %125, %128 : vector<28x896xf32>
    %cst_42 = arith.constant dense<0.000000e+00> : vector<896xf32>
    %130 = vector.multi_reduction <add>, %129, %cst_42 [0] : vector<28x896xf32> to vector<896xf32>
    %131 = vector.shape_cast %130 : vector<896xf32> to vector<1x896xf32>
    %132 = vector.shape_cast %131 : vector<1x896xf32> to vector<1x1x896xf32>
    %c0_43 = arith.constant 0 : index
    %c0_44 = arith.constant 0 : index
    %c0_45 = arith.constant 0 : index
    %133 = vector.load %arg3[%c0_43, %c0_44, %c0_45] : memref<1x1x896xf32, #tpu.memory_space<vmem>>, vector<1x1x896xf32>
    tpu.vector_store %arg3[%c0_43, %c0_44, %c0_45], %132 {strides = array<i32>} : memref<1x1x896xf32, #tpu.memory_space<vmem>>, vector<1x1x896xf32>,
    return
  }
  func.func @transform_0(%arg0: i32) -> (i32, i32) {
    %c0_i32 = arith.constant 0 : i32
    %c0_i32_0 = arith.constant 0 : i32
    %c0_i32_1 = arith.constant 0 : i32
    return %c0_i32, %c0_i32_0 : i32, i32
  }
  func.func @transform_1(%arg0: i32) -> (i32, i32, i32, i32) {
    %c0_i32 = arith.constant 0 : i32
    %c0_i32_0 = arith.constant 0 : i32
    %c0_i32_1 = arith.constant 0 : i32
    %c0_i32_2 = arith.constant 0 : i32
    return %arg0, %c0_i32, %c0_i32_0, %c0_i32_1 : i32, i32, i32, i32
  }
  func.func @transform_2(%arg0: i32) -> (i32, i32, i32) {
    %c0_i32 = arith.constant 0 : i32
    %c0_i32_0 = arith.constant 0 : i32
    %c0_i32_1 = arith.constant 0 : i32
    return %arg0, %c0_i32, %c0_i32_0 : i32, i32, i32
  }
}

module attributes {stable_mosaic.version = 11 : i64} {
  func.func @_conv_pool_relu_kernel(%arg0: i32, %arg1: memref<4x25x256xbf16, #tpu.memory_space<vmem>>, %arg2: memref<10x25xbf16, #tpu.memory_space<vmem>>, %arg3: memref<10x1xf32, #tpu.memory_space<vmem>>, %arg4: memref<10x256xf32, #tpu.memory_space<vmem>>) attributes {dimension_semantics = [#tpu.dimension_semantics<parallel>], iteration_bounds = array<i64: 2>, scalar_prefetch = 0 : i64, scratch_operands = 0 : i64, tpu.core_type = #tpu.core_type<tc>, window_params = [{transform_indices = @transform_0, window_bounds = array<i64: 4, 25, 256>}, {pipeline_mode = #tpu.pipeline_mode<synchronous>, transform_indices = @transform_1, window_bounds = array<i64: 10, 25>}, {pipeline_mode = #tpu.pipeline_mode<synchronous>, transform_indices = @transform_2, window_bounds = array<i64: 10, 1>}, {transform_indices = @transform_3, window_bounds = array<i64: 10, 256>}]} {
    %c0 = arith.constant 0 : index
    %c0_0 = arith.constant 0 : index
    %0 = vector.load %arg2[%c0, %c0_0] : memref<10x25xbf16, #tpu.memory_space<vmem>>, vector<10x25xbf16>
    %c0_1 = arith.constant 0 : index
    %c0_2 = arith.constant 0 : index
    %c0_3 = arith.constant 0 : index
    %1 = vector.load %arg1[%c0_1, %c0_2, %c0_3] : memref<4x25x256xbf16, #tpu.memory_space<vmem>>, vector<1x25x256xbf16>
    %2 = vector.shape_cast %1 : vector<1x25x256xbf16> to vector<25x256xbf16>
    %cst = arith.constant dense<0.000000e+00> : vector<10x256xf32>
    %3 = tpu.matmul %0, %2, %cst {dimension_numbers = #tpu.dot_dimension_numbers<[1], [0], [0], [1], [0, 0, 1, 1], [], []>} : vector<10x25xbf16>, vector<25x256xbf16>, vector<10x256xf32> -> vector<10x256xf32>
    %c1 = arith.constant 1 : index
    %c0_4 = arith.constant 0 : index
    %c0_5 = arith.constant 0 : index
    %4 = vector.load %arg1[%c1, %c0_4, %c0_5] : memref<4x25x256xbf16, #tpu.memory_space<vmem>>, vector<1x25x256xbf16>
    %5 = vector.shape_cast %4 : vector<1x25x256xbf16> to vector<25x256xbf16>
    %cst_6 = arith.constant dense<0.000000e+00> : vector<10x256xf32>
    %6 = tpu.matmul %0, %5, %cst_6 {dimension_numbers = #tpu.dot_dimension_numbers<[1], [0], [0], [1], [0, 0, 1, 1], [], []>} : vector<10x25xbf16>, vector<25x256xbf16>, vector<10x256xf32> -> vector<10x256xf32>
    %7 = arith.maximumf %3, %6 : vector<10x256xf32>
    %c2 = arith.constant 2 : index
    %c0_7 = arith.constant 0 : index
    %c0_8 = arith.constant 0 : index
    %8 = vector.load %arg1[%c2, %c0_7, %c0_8] : memref<4x25x256xbf16, #tpu.memory_space<vmem>>, vector<1x25x256xbf16>
    %9 = vector.shape_cast %8 : vector<1x25x256xbf16> to vector<25x256xbf16>
    %cst_9 = arith.constant dense<0.000000e+00> : vector<10x256xf32>
    %10 = tpu.matmul %0, %9, %cst_9 {dimension_numbers = #tpu.dot_dimension_numbers<[1], [0], [0], [1], [0, 0, 1, 1], [], []>} : vector<10x25xbf16>, vector<25x256xbf16>, vector<10x256xf32> -> vector<10x256xf32>
    %11 = arith.maximumf %7, %10 : vector<10x256xf32>
    %c3 = arith.constant 3 : index
    %c0_10 = arith.constant 0 : index
    %c0_11 = arith.constant 0 : index
    %12 = vector.load %arg1[%c3, %c0_10, %c0_11] : memref<4x25x256xbf16, #tpu.memory_space<vmem>>, vector<1x25x256xbf16>
    %13 = vector.shape_cast %12 : vector<1x25x256xbf16> to vector<25x256xbf16>
    %cst_12 = arith.constant dense<0.000000e+00> : vector<10x256xf32>
    %14 = tpu.matmul %0, %13, %cst_12 {dimension_numbers = #tpu.dot_dimension_numbers<[1], [0], [0], [1], [0, 0, 1, 1], [], []>} : vector<10x25xbf16>, vector<25x256xbf16>, vector<10x256xf32> -> vector<10x256xf32>
    %15 = arith.maximumf %11, %14 : vector<10x256xf32>
    %c0_13 = arith.constant 0 : index
    %c0_14 = arith.constant 0 : index
    %16 = vector.load %arg3[%c0_13, %c0_14] : memref<10x1xf32, #tpu.memory_space<vmem>>, vector<10x1xf32>
    %17 = vector.broadcast %16 : vector<10x1xf32> to vector<10x256xf32>
    %18 = arith.addf %15, %17 : vector<10x256xf32>
    %cst_15 = arith.constant 0.000000e+00 : f32
    %19 = vector.broadcast %cst_15 : f32 to vector<10x256xf32>
    %20 = arith.maximumf %18, %19 : vector<10x256xf32>
    %c0_16 = arith.constant 0 : index
    %c0_17 = arith.constant 0 : index
    %21 = vector.load %arg4[%c0_16, %c0_17] : memref<10x256xf32, #tpu.memory_space<vmem>>, vector<10x256xf32>
    tpu.vector_store %arg4[%c0_16, %c0_17], %20 {strides = array<i32>} : memref<10x256xf32, #tpu.memory_space<vmem>>, vector<10x256xf32>,
    return
  }
  func.func @transform_0(%arg0: i32) -> (i32, i32, i32) {
    %c0_i32 = arith.constant 0 : i32
    %c0_i32_0 = arith.constant 0 : i32
    %c0_i32_1 = arith.constant 0 : i32
    return %c0_i32, %c0_i32_0, %arg0 : i32, i32, i32
  }
  func.func @transform_1(%arg0: i32) -> (i32, i32) {
    %c0_i32 = arith.constant 0 : i32
    %c0_i32_0 = arith.constant 0 : i32
    %c0_i32_1 = arith.constant 0 : i32
    return %c0_i32, %c0_i32_0 : i32, i32
  }
  func.func @transform_2(%arg0: i32) -> (i32, i32) {
    %c0_i32 = arith.constant 0 : i32
    %c0_i32_0 = arith.constant 0 : i32
    %c0_i32_1 = arith.constant 0 : i32
    return %c0_i32, %c0_i32_0 : i32, i32
  }
  func.func @transform_3(%arg0: i32) -> (i32, i32) {
    %c0_i32 = arith.constant 0 : i32
    %c0_i32_0 = arith.constant 0 : i32
    return %c0_i32, %arg0 : i32, i32
  }
}

module attributes {stable_mosaic.version = 11 : i64} {
  func.func @_conv_pool_relu_kernel(%arg0: i32, %arg1: memref<4x250x128xbf16, #tpu.memory_space<vmem>>, %arg2: memref<20x250xbf16, #tpu.memory_space<vmem>>, %arg3: memref<20x1xf32, #tpu.memory_space<vmem>>, %arg4: memref<20x128xf32, #tpu.memory_space<vmem>>) attributes {dimension_semantics = [#tpu.dimension_semantics<parallel>], iteration_bounds = array<i64: 1>, scalar_prefetch = 0 : i64, scratch_operands = 0 : i64, tpu.core_type = #tpu.core_type<tc>, window_params = [{transform_indices = @transform_0, window_bounds = array<i64: 4, 250, 128>}, {pipeline_mode = #tpu.pipeline_mode<synchronous>, transform_indices = @transform_1, window_bounds = array<i64: 20, 250>}, {pipeline_mode = #tpu.pipeline_mode<synchronous>, transform_indices = @transform_2, window_bounds = array<i64: 20, 1>}, {transform_indices = @transform_3, window_bounds = array<i64: 20, 128>}]} {
    %c0 = arith.constant 0 : index
    %c0_0 = arith.constant 0 : index
    %0 = vector.load %arg2[%c0, %c0_0] : memref<20x250xbf16, #tpu.memory_space<vmem>>, vector<20x250xbf16>
    %c0_1 = arith.constant 0 : index
    %c0_2 = arith.constant 0 : index
    %c0_3 = arith.constant 0 : index
    %1 = vector.load %arg1[%c0_1, %c0_2, %c0_3] : memref<4x250x128xbf16, #tpu.memory_space<vmem>>, vector<1x250x128xbf16>
    %2 = vector.shape_cast %1 : vector<1x250x128xbf16> to vector<250x128xbf16>
    %cst = arith.constant dense<0.000000e+00> : vector<20x128xf32>
    %3 = tpu.matmul %0, %2, %cst {dimension_numbers = #tpu.dot_dimension_numbers<[1], [0], [0], [1], [0, 0, 1, 1], [], []>} : vector<20x250xbf16>, vector<250x128xbf16>, vector<20x128xf32> -> vector<20x128xf32>
    %c1 = arith.constant 1 : index
    %c0_4 = arith.constant 0 : index
    %c0_5 = arith.constant 0 : index
    %4 = vector.load %arg1[%c1, %c0_4, %c0_5] : memref<4x250x128xbf16, #tpu.memory_space<vmem>>, vector<1x250x128xbf16>
    %5 = vector.shape_cast %4 : vector<1x250x128xbf16> to vector<250x128xbf16>
    %cst_6 = arith.constant dense<0.000000e+00> : vector<20x128xf32>
    %6 = tpu.matmul %0, %5, %cst_6 {dimension_numbers = #tpu.dot_dimension_numbers<[1], [0], [0], [1], [0, 0, 1, 1], [], []>} : vector<20x250xbf16>, vector<250x128xbf16>, vector<20x128xf32> -> vector<20x128xf32>
    %7 = arith.maximumf %3, %6 : vector<20x128xf32>
    %c2 = arith.constant 2 : index
    %c0_7 = arith.constant 0 : index
    %c0_8 = arith.constant 0 : index
    %8 = vector.load %arg1[%c2, %c0_7, %c0_8] : memref<4x250x128xbf16, #tpu.memory_space<vmem>>, vector<1x250x128xbf16>
    %9 = vector.shape_cast %8 : vector<1x250x128xbf16> to vector<250x128xbf16>
    %cst_9 = arith.constant dense<0.000000e+00> : vector<20x128xf32>
    %10 = tpu.matmul %0, %9, %cst_9 {dimension_numbers = #tpu.dot_dimension_numbers<[1], [0], [0], [1], [0, 0, 1, 1], [], []>} : vector<20x250xbf16>, vector<250x128xbf16>, vector<20x128xf32> -> vector<20x128xf32>
    %11 = arith.maximumf %7, %10 : vector<20x128xf32>
    %c3 = arith.constant 3 : index
    %c0_10 = arith.constant 0 : index
    %c0_11 = arith.constant 0 : index
    %12 = vector.load %arg1[%c3, %c0_10, %c0_11] : memref<4x250x128xbf16, #tpu.memory_space<vmem>>, vector<1x250x128xbf16>
    %13 = vector.shape_cast %12 : vector<1x250x128xbf16> to vector<250x128xbf16>
    %cst_12 = arith.constant dense<0.000000e+00> : vector<20x128xf32>
    %14 = tpu.matmul %0, %13, %cst_12 {dimension_numbers = #tpu.dot_dimension_numbers<[1], [0], [0], [1], [0, 0, 1, 1], [], []>} : vector<20x250xbf16>, vector<250x128xbf16>, vector<20x128xf32> -> vector<20x128xf32>
    %15 = arith.maximumf %11, %14 : vector<20x128xf32>
    %c0_13 = arith.constant 0 : index
    %c0_14 = arith.constant 0 : index
    %16 = vector.load %arg3[%c0_13, %c0_14] : memref<20x1xf32, #tpu.memory_space<vmem>>, vector<20x1xf32>
    %17 = vector.broadcast %16 : vector<20x1xf32> to vector<20x128xf32>
    %18 = arith.addf %15, %17 : vector<20x128xf32>
    %cst_15 = arith.constant 0.000000e+00 : f32
    %19 = vector.broadcast %cst_15 : f32 to vector<20x128xf32>
    %20 = arith.maximumf %18, %19 : vector<20x128xf32>
    %c0_16 = arith.constant 0 : index
    %c0_17 = arith.constant 0 : index
    %21 = vector.load %arg4[%c0_16, %c0_17] : memref<20x128xf32, #tpu.memory_space<vmem>>, vector<20x128xf32>
    tpu.vector_store %arg4[%c0_16, %c0_17], %20 {strides = array<i32>} : memref<20x128xf32, #tpu.memory_space<vmem>>, vector<20x128xf32>,
    return
  }
  func.func @transform_0(%arg0: i32) -> (i32, i32, i32) {
    %c0_i32 = arith.constant 0 : i32
    %c0_i32_0 = arith.constant 0 : i32
    %c0_i32_1 = arith.constant 0 : i32
    return %c0_i32, %c0_i32_0, %arg0 : i32, i32, i32
  }
  func.func @transform_1(%arg0: i32) -> (i32, i32) {
    %c0_i32 = arith.constant 0 : i32
    %c0_i32_0 = arith.constant 0 : i32
    %c0_i32_1 = arith.constant 0 : i32
    return %c0_i32, %c0_i32_0 : i32, i32
  }
  func.func @transform_2(%arg0: i32) -> (i32, i32) {
    %c0_i32 = arith.constant 0 : i32
    %c0_i32_0 = arith.constant 0 : i32
    %c0_i32_1 = arith.constant 0 : i32
    return %c0_i32, %c0_i32_0 : i32, i32
  }
  func.func @transform_3(%arg0: i32) -> (i32, i32) {
    %c0_i32 = arith.constant 0 : i32
    %c0_i32_0 = arith.constant 0 : i32
    return %c0_i32, %arg0 : i32, i32
  }
}

module attributes {stable_mosaic.version = 11 : i64} {
  func.func @_mlp_head_kernel(%arg0: i32, %arg1: memref<2x320xbf16, #tpu.memory_space<vmem>>, %arg2: memref<320x50xbf16, #tpu.memory_space<vmem>>, %arg3: memref<1x50xf32, #tpu.memory_space<vmem>>, %arg4: memref<50x10xbf16, #tpu.memory_space<vmem>>, %arg5: memref<1x10xf32, #tpu.memory_space<vmem>>, %arg6: memref<2x10xf32, #tpu.memory_space<vmem>>) attributes {dimension_semantics = [#tpu.dimension_semantics<arbitrary>], iteration_bounds = array<i64: 1>, scalar_prefetch = 0 : i64, scratch_operands = 0 : i64, tpu.core_type = #tpu.core_type<tc>, window_params = [{pipeline_mode = #tpu.pipeline_mode<synchronous>, transform_indices = @transform_0, window_bounds = array<i64: 2, 320>}, {pipeline_mode = #tpu.pipeline_mode<synchronous>, transform_indices = @transform_1, window_bounds = array<i64: 320, 50>}, {pipeline_mode = #tpu.pipeline_mode<synchronous>, transform_indices = @transform_2, window_bounds = array<i64: 1, 50>}, {pipeline_mode = #tpu.pipeline_mode<synchronous>, transform_indices = @transform_3, window_bounds = array<i64: 50, 10>}, {pipeline_mode = #tpu.pipeline_mode<synchronous>, transform_indices = @transform_4, window_bounds = array<i64: 1, 10>}, {pipeline_mode = #tpu.pipeline_mode<synchronous>, transform_indices = @transform_5, window_bounds = array<i64: 2, 10>}]} {
    %c0 = arith.constant 0 : index
    %c0_0 = arith.constant 0 : index
    %0 = vector.load %arg1[%c0, %c0_0] : memref<2x320xbf16, #tpu.memory_space<vmem>>, vector<2x320xbf16>
    %c0_1 = arith.constant 0 : index
    %c0_2 = arith.constant 0 : index
    %1 = vector.load %arg2[%c0_1, %c0_2] : memref<320x50xbf16, #tpu.memory_space<vmem>>, vector<320x50xbf16>
    %cst = arith.constant dense<0.000000e+00> : vector<2x50xf32>
    %2 = tpu.matmul %0, %1, %cst {dimension_numbers = #tpu.dot_dimension_numbers<[1], [0], [0], [1], [0, 0, 1, 1], [], []>} : vector<2x320xbf16>, vector<320x50xbf16>, vector<2x50xf32> -> vector<2x50xf32>
    %c0_3 = arith.constant 0 : index
    %c0_4 = arith.constant 0 : index
    %3 = vector.load %arg3[%c0_3, %c0_4] : memref<1x50xf32, #tpu.memory_space<vmem>>, vector<1x50xf32>
    %4 = vector.broadcast %3 : vector<1x50xf32> to vector<2x50xf32>
    %5 = arith.addf %2, %4 : vector<2x50xf32>
    %cst_5 = arith.constant 0.000000e+00 : f32
    %6 = vector.broadcast %cst_5 : f32 to vector<2x50xf32>
    %7 = arith.maximumf %5, %6 : vector<2x50xf32>
    %8 = arith.truncf %7 : vector<2x50xf32> to vector<2x50xbf16>
    %c0_6 = arith.constant 0 : index
    %c0_7 = arith.constant 0 : index
    %9 = vector.load %arg4[%c0_6, %c0_7] : memref<50x10xbf16, #tpu.memory_space<vmem>>, vector<50x10xbf16>
    %cst_8 = arith.constant dense<0.000000e+00> : vector<2x10xf32>
    %10 = tpu.matmul %8, %9, %cst_8 {dimension_numbers = #tpu.dot_dimension_numbers<[1], [0], [0], [1], [0, 0, 1, 1], [], []>} : vector<2x50xbf16>, vector<50x10xbf16>, vector<2x10xf32> -> vector<2x10xf32>
    %c0_9 = arith.constant 0 : index
    %c0_10 = arith.constant 0 : index
    %11 = vector.load %arg5[%c0_9, %c0_10] : memref<1x10xf32, #tpu.memory_space<vmem>>, vector<1x10xf32>
    %12 = vector.broadcast %11 : vector<1x10xf32> to vector<2x10xf32>
    %13 = arith.addf %10, %12 : vector<2x10xf32>
    %cst_11 = arith.constant dense<0xFF800000> : vector<2xf32>
    %14 = vector.multi_reduction <maximumf>, %13, %cst_11 [1] : vector<2x10xf32> to vector<2xf32>
    %15 = vector.shape_cast %14 : vector<2xf32> to vector<2x1xf32>
    %16 = vector.broadcast %15 : vector<2x1xf32> to vector<2x10xf32>
    %17 = arith.subf %13, %16 : vector<2x10xf32>
    %18 = math.exp %17 : vector<2x10xf32>
    %cst_12 = arith.constant dense<0.000000e+00> : vector<2xf32>
    %19 = vector.multi_reduction <add>, %18, %cst_12 [1] : vector<2x10xf32> to vector<2xf32>
    %20 = vector.shape_cast %19 : vector<2xf32> to vector<2x1xf32>
    %21 = math.log %20 : vector<2x1xf32>
    %22 = vector.broadcast %21 : vector<2x1xf32> to vector<2x10xf32>
    %23 = arith.subf %17, %22 : vector<2x10xf32>
    %c0_13 = arith.constant 0 : index
    %c0_14 = arith.constant 0 : index
    %24 = vector.load %arg6[%c0_13, %c0_14] : memref<2x10xf32, #tpu.memory_space<vmem>>, vector<2x10xf32>
    tpu.vector_store %arg6[%c0_13, %c0_14], %23 {strides = array<i32>} : memref<2x10xf32, #tpu.memory_space<vmem>>, vector<2x10xf32>,
    return
  }
  func.func @transform_0(%arg0: i32) -> (i32, i32) {
    %c0_i32 = arith.constant 0 : i32
    %c0_i32_0 = arith.constant 0 : i32
    %c0_i32_1 = arith.constant 0 : i32
    return %c0_i32, %c0_i32_0 : i32, i32
  }
  func.func @transform_1(%arg0: i32) -> (i32, i32) {
    %c0_i32 = arith.constant 0 : i32
    %c0_i32_0 = arith.constant 0 : i32
    %c0_i32_1 = arith.constant 0 : i32
    return %c0_i32, %c0_i32_0 : i32, i32
  }
  func.func @transform_2(%arg0: i32) -> (i32, i32) {
    %c0_i32 = arith.constant 0 : i32
    %c0_i32_0 = arith.constant 0 : i32
    %c0_i32_1 = arith.constant 0 : i32
    return %c0_i32, %c0_i32_0 : i32, i32
  }
  func.func @transform_3(%arg0: i32) -> (i32, i32) {
    %c0_i32 = arith.constant 0 : i32
    %c0_i32_0 = arith.constant 0 : i32
    %c0_i32_1 = arith.constant 0 : i32
    return %c0_i32, %c0_i32_0 : i32, i32
  }
  func.func @transform_4(%arg0: i32) -> (i32, i32) {
    %c0_i32 = arith.constant 0 : i32
    %c0_i32_0 = arith.constant 0 : i32
    %c0_i32_1 = arith.constant 0 : i32
    return %c0_i32, %c0_i32_0 : i32, i32
  }
  func.func @transform_5(%arg0: i32) -> (i32, i32) {
    %c0_i32 = arith.constant 0 : i32
    %c0_i32_0 = arith.constant 0 : i32
    %c0_i32_1 = arith.constant 0 : i32
    return %c0_i32, %c0_i32_0 : i32, i32
  }
}

</mosaic_0001>

<bundles_post_ra>
// kernel: forward.7
= control target key start
LH: loop header
LB: loop body
LE: loop exit
PB: predicated region body
PF: predicated region fallthrough
CT: control target
= control target key end

     0   :  { %s896_s12 = smov 0   ;;  %s898_s13 = smov 0   ;;  %s1062_s0 = inlined_call_operand.vmem [shape: bf16[4,49,256], index: 0, kind: input, shape index: {}]   ;;  %s1063_s1 = inlined_call_operand.vmem [shape: bf16[8,49], index: 1, kind: input, shape index: {}]   ;;  %s1064_s2 = inlined_call_operand.vmem [shape: f32[8,1], index: 2, kind: input, shape index: {}]   ;;  %s1065_s3 = inlined_call_operand.vmem [shape: f32[8,256], index: 3, kind: output, shape index: {}]  }
   0x1   :  { %s900_s14 = smov 0  }
   0x2 LB: > { %s685_s15 = sadd.s32 4294967295, %s871_s14   ;;  %s913_s16 = sadd.s32 1, %s871_s14   ;;  %s871_s14 = sphi %s900_s14, %s1068_s14   ;;  %s867_s13 = sphi %s898_s13, %s1067_s13   ;;  %s863_s12 = sphi %s896_s12, %s1066_s12  }
   0x3   : > { %s17_s17 = ssub.s32 %s871_s14, %s913_s16  ;;  %s20_s18 = sadd.s32 1, %s867_s13 }
   0x4   : > { %p18_p0 = scmp.eq.s32.totalorder %s17_s17, 0  ;;  %p27_p1 = scmp.ne.s32.totalorder %s867_s13, %s863_s12 }
   0x5   : > { %p28_p2 = scmp.eq.s32.totalorder %s871_s14, 0  ;;  %p688_p4 = scmp.ge.s32.totalorder %s871_s14, 2 }
   0x6   : > { %s922_s19 = scalar_select %p18_p0, %s867_s13, %s20_s18  }
   0x7   : > { %p29_p3 = por %p28_p2, %p27_p1  ;;  %127 = sbr.rel (%p688_p4) target bundleno = 37 (0x25), region = 24 }
   0xe   : > { %130 = sbr.rel (!%p29_p3) target bundleno = 37 (0x25), region = 28  ;;  %s132_s20 = sand.u32 (%p29_p3), 1, %s867_s13  }
   0xf   : > { %s689_s21 = sshll.u32 (%p29_p3), %s871_s14, 2  ;;  %s803_s22 = smul.u32 (%p29_p3), 112, %s132_s20 }
  0x10   : > { %s930_s25 = scalar_lea.vmem (%p29_p3), %s1062_s0, %s689_s21 }
  0x11   : > { %v152_v0 = vld [vmem:[%s930_s25] sm:$0xf] (%p29_p3)  ;;  %v154_v1 = vld [vmem:[%s930_s25 + $0x8] sm:$0xf] (%p29_p3)  ;;  %v156_v2 = vld [vmem:[%s930_s25 + $0x10] sm:$0xf] (%p29_p3) }
  0x12   : > { %v158_v3 = vld [vmem:[%s930_s25 + $0x18] sm:$0xf] (%p29_p3)  ;;  %v160_v4 = vld [vmem:[%s930_s25 + $0x20] sm:$0xf] (%p29_p3)  ;;  %s937_s26 = scalar_lea.vmem (%p29_p3), [#allocation2], %s803_s22 }
  0x13   : > { %153 = vst [vmem:[%s937_s26] sm:$0xf] (%p29_p3), %v152_v0  ;;  %155 = vst [vmem:[%s937_s26 + $0x4] sm:$0xf] (%p29_p3), %v154_v1  ;;  %v162_v5 = vld [vmem:[%s930_s25 + $0x28] sm:$0xf] (%p29_p3) }
  0x14   : > { %157 = vst [vmem:[%s937_s26 + $0x8] sm:$0xf] (%p29_p3), %v156_v2  ;;  %159 = vst [vmem:[%s937_s26 + $0xc] sm:$0xf] (%p29_p3), %v158_v3  ;;  %v164_v6 = vld [vmem:[%s930_s25 + $0x30] sm:$0xf] (%p29_p3) }
  0x15   : > { %161 = vst [vmem:[%s937_s26 + $0x10] sm:$0xf] %v160_v4  ;;  %v166_v7 = vld [vmem:[%s930_s25 + $0x38] sm:$0xf]  ;;  %163 = vst [vmem:[%s937_s26 + $0x14] sm:$0xf] %v162_v5 }
  0x16   : > { %165 = vst [vmem:[%s937_s26 + $0x18] sm:$0xf] %v164_v6  ;;  %167 = vst [vmem:[%s937_s26 + $0x1c] sm:$0xf] %v166_v7  ;;  %v168_v8 = vld [vmem:[%s930_s25 + $0x40] sm:$0xf] }
  0x17   : > { %v170_v9 = vld [vmem:[%s930_s25 + $0x48] sm:$0xf]  ;;  %v172_v10 = vld [vmem:[%s930_s25 + $0x50] sm:$0xf]  ;;  %169 = vst [vmem:[%s937_s26 + $0x20] sm:$0xf] %v168_v8 }
  0x18   : > { %171 = vst [vmem:[%s937_s26 + $0x24] sm:$0xf] %v170_v9  ;;  %173 = vst [vmem:[%s937_s26 + $0x28] sm:$0xf] %v172_v10  ;;  %v174_v11 = vld [vmem:[%s930_s25 + $0x58] sm:$0xf] }
  0x19   : > { %v176_v12 = vld [vmem:[%s930_s25 + $0x60] sm:$0xf]  ;;  %v178_v13 = vld [vmem:[%s930_s25 + $0x68] sm:$0xf]  ;;  %175 = vst [vmem:[%s937_s26 + $0x2c] sm:$0xf] %v174_v11 }
  0x1a   : > { %177 = vst [vmem:[%s937_s26 + $0x30] sm:$0xf] %v176_v12  ;;  %179 = vst [vmem:[%s937_s26 + $0x34] sm:$0xf] %v178_v13  ;;  %v180_v14 = vld [vmem:[%s930_s25 + $0x70] sm:$0xf] }
  0x1b   : > { %v182_v15 = vld [vmem:[%s930_s25 + $0x78] sm:$0xf]  ;;  %v184_v16 = vld [vmem:[%s930_s25 + $0x80] sm:$0xf]  ;;  %181 = vst [vmem:[%s937_s26 + $0x38] sm:$0xf] %v180_v14 }
  0x1c   : > { %183 = vst [vmem:[%s937_s26 + $0x3c] sm:$0xf] %v182_v15  ;;  %185 = vst [vmem:[%s937_s26 + $0x40] sm:$0xf] %v184_v16  ;;  %v186_v17 = vld [vmem:[%s930_s25 + $0x88] sm:$0xf] }
  0x1d   : > { %v188_v18 = vld [vmem:[%s930_s25 + $0x90] sm:$0xf]  ;;  %v190_v19 = vld [vmem:[%s930_s25 + $0x98] sm:$0xf]  ;;  %187 = vst [vmem:[%s937_s26 + $0x44] sm:$0xf] %v186_v17 }
  0x1e   : > { %189 = vst [vmem:[%s937_s26 + $0x48] sm:$0xf] %v188_v18  ;;  %191 = vst [vmem:[%s937_s26 + $0x4c] sm:$0xf] %v190_v19  ;;  %v192_v20 = vld [vmem:[%s930_s25 + $0xa0] sm:$0xf] }
  0x1f   : > { %v194_v21 = vld [vmem:[%s930_s25 + $0xa8] sm:$0xf]  ;;  %v196_v22 = vld [vmem:[%s930_s25 + $0xb0] sm:$0xf]  ;;  %193 = vst [vmem:[%s937_s26 + $0x50] sm:$0xf] %v192_v20 }
  0x20   : > { %195 = vst [vmem:[%s937_s26 + $0x54] sm:$0xf] %v194_v21  ;;  %197 = vst [vmem:[%s937_s26 + $0x58] sm:$0xf] %v196_v22  ;;  %v198_v23 = vld [vmem:[%s930_s25 + $0xb8] sm:$0xf] }
  0x21   : > { %v200_v24 = vld [vmem:[%s930_s25 + $0xc0] sm:$0xf]  ;;  %v202_v25 = vld [vmem:[%s930_s25 + $0xc8] sm:$0xf]  ;;  %199 = vst [vmem:[%s937_s26 + $0x5c] sm:$0xf] %v198_v23 }
  0x22   : > { %201 = vst [vmem:[%s937_s26 + $0x60] sm:$0xf] %v200_v24  ;;  %203 = vst [vmem:[%s937_s26 + $0x64] sm:$0xf] %v202_v25  ;;  %v204_v26 = vld [vmem:[%s930_s25 + $0xd0] sm:$0xf] }
  0x23   : > { %v206_v27 = vld [vmem:[%s930_s25 + $0xd8] sm:$0xf]  ;;  %205 = vst [vmem:[%s937_s26 + $0x68] sm:$0xf] %v204_v26 }
  0x24   : > { %207 = vst [vmem:[%s937_s26 + $0x6c] sm:$0xf] %v206_v27 }
  0x25 PF: > { %p690_p5 = scmp.ge.s32.totalorder %s871_s14, 1  ;;  %p285_p6 = scmp.lt.s32.totalorder %s871_s14, 3 }
  0x27   : > { %p286_p7 = pnand %p690_p5, %p285_p6 }
  0x28   : > { %s292_s27 = sand.u32 (!%p286_p7), 1, %s863_s12   ;;  %v873_v28 = vmov (!%p286_p7), 0.0   ;;  %v617_v29 = vld [vmem:[%s1064_s2] sm:$0xff] (!%p286_p7)  ;;  %vm874_vm0 = vmmov (!%p286_p7), 0   ;;  %v875_v30 = vmov (!%p286_p7), 0   ;;  %vm352_vm1 = vcmask (!%p286_p7), 1040384  }
  0x29   : > { %289 = sbr.rel (%p286_p7) target bundleno = 298 (0x12a), region = 69  ;;  %755 = vmatprep.subr.bf16.mxu0 (!%p286_p7), %v873_v28  ;;  %767 = vmatprep.subr.bf16.mxu1 (!%p286_p7), %v873_v28  ;;  %v354_v35 = vsel (!%p286_p7), %vm352_vm1, 65535, %v875_v30  ;;  %v319_v42 = vld [vmem:[%s1063_s1] sm:$0xf] (!%p286_p7)  ;;  %vm348_vm2 = vcmask (!%p286_p7), 400384   ;;  %p314_p8 = scmp.lt.s32.totalorder (!%p286_p7), %s685_s15, 1 }
  0x2a   : > { %s804_s28 = smul.u32 (!%p286_p7), 112, %s292_s27  ;;  %763 = vmatprep.mubr.msk.bf16.mxu0 (!%p286_p7), %vm874_vm0, %v873_v28  ;;  %775 = vmatprep.mubr.msk.bf16.mxu1 (!%p286_p7), %vm874_vm0, %v873_v28 }
  0x2b   : > { %832 = vset.pattern.permute.xlu0 (!%p286_p7), %v875_v30 }
  0x2c   : > { %s1002_s4 = scalar_lea.vmem (!%p286_p7), [#allocation2], %s804_s28  ;;  %620 = vperm.xlu0 (!%p286_p7), %832, %v617_v29  }
  0x2d   : > { %v833_v31 = vld [vmem:[%s1002_s4] sm:$0xff] (!%p286_p7)   ;;  %v835_v33 = vld [vmem:[%s1002_s4 + $0x8] sm:$0xff] (!%p286_p7)   ;;  %v837_v36 = vld [vmem:[%s1002_s4 + $0x10] sm:$0xff] (!%p286_p7)  }
  0x2e   : > { %v834_v32 = vld [vmem:[%s1002_s4 + $0x1c] sm:$0xff] (!%p286_p7)   ;;  %756 = vmatpush3.bf16.msra.mxu0 (!%p286_p7), %v833_v31  ;;  %v836_v34 = vld [vmem:[%s1002_s4 + $0x24] sm:$0xff] (!%p286_p7)   ;;  %v839_v37 = vld [vmem:[%s1002_s4 + $0x18] ss:$0 sps:$4 sm:$0x11] (!%p286_p7)  }
  0x2f   : > { %768 = vmatpush3.bf16.msra.mxu1 (!%p286_p7), %v834_v32  ;;  %757 = vmatprep.subr.bf16.mxu0 (!%p286_p7), %v873_v28  ;;  %v838_v38 = vld [vmem:[%s1002_s4 + $0x2c] sm:$0xff] (!%p286_p7)   ;;  %v840_v39 = vld [vmem:[%s1002_s4 + $0x34] ss:$0 sps:$4 sm:$0x11] (!%p286_p7)   ;;  %v356_v40 = vand.u32 (!%p286_p7), %v839_v37, %v354_v35  ;;  %v841_v43 = vld [vmem:[%s1002_s4 + $0x38] sm:$0xff] (!%p286_p7)  }
  0x30   : > { %769 = vmatprep.subr.bf16.mxu1 %v873_v28  ;;  %v428_v41 = vand.u32 %v840_v39, %v354_v35  ;;  %v842_v44 = vld [vmem:[%s1002_s4 + $0x54] sm:$0xff]   ;;  %v843_v45 = vld [vmem:[%s1002_s4 + $0x40] sm:$0xff]   ;;  %v845_v47 = vld [vmem:[%s1002_s4 + $0x48] sm:$0xff]   ;;  %s1070_s15 = smov (!%p314_p8, %s685_s15), 1 }
  0x31   : > { %v844_v46 = vld [vmem:[%s1002_s4 + $0x5c] sm:$0xff]   ;;  %v847_v48 = vld [vmem:[%s1002_s4 + $0x50] ss:$0 sps:$4 sm:$0x11]   ;;  %v846_v49 = vld [vmem:[%s1002_s4 + $0x64] sm:$0xff]   ;;  %s691_s7 = sshll.u32 %s1070_s15, 3 }
  0x32   : > { %758 = vmatpush3.bf16.msra.mxu0 %v835_v33  ;;  %v848_v50 = vld [vmem:[%s1002_s4 + $0x6c] ss:$0 sps:$4 sm:$0x11]   ;;  %v501_v51 = vand.u32 %v847_v48, %v354_v35  ;;  %s317_s10 = scalar_lea.vmem %s1065_s3, %s691_s7 }
  0x33   : > { %770 = vmatpush3.bf16.msra.mxu1 %v836_v34  ;;  %759 = vmatprep.subr.bf16.mxu0 %v873_v28  ;;  %v574_v52 = vand.u32 %v848_v50, %v354_v35 }
  0x34   : > { %771 = vmatprep.subr.bf16.mxu1 %v873_v28 }
  0x36   : > { %760 = vmatpush3.bf16.msra.mxu0 %v837_v36 }
  0x37   : > { %772 = vmatpush3.bf16.msra.mxu1 %v838_v38  ;;  %761 = vmatprep.subr.bf16.mxu0 %v873_v28 }
  0x38   : > { %773 = vmatprep.subr.bf16.mxu1 %v873_v28 }
  0x3a   : > { %762 = vmatpush3.bf16.msra.mxu0 %v356_v40 }
  0x3b   : > { %774 = vmatpush3.bf16.msra.mxu1 %v428_v41  ;;  %779 = vmatprep.subr.bf16.mxu0 %v873_v28 }
  0x3c   : > { %791 = vmatprep.subr.bf16.mxu1 %v873_v28 }
  0x3d   : > { %764 = vmatmul.mubr.msk.bf16.vlgmr.msra.gmra.mrb[0].mxu0 %vm348_vm2, %v319_v42 }
  0x3e   : > { %776 = vmatmul.mubr.msk.bf16.vlgmr.msra.gmra.mrb[0].mxu1 %vm348_vm2, %v319_v42  ;;  %780 = vmatpush3.bf16.msra.mxu0 %v841_v43 }
  0x3f   : > { %792 = vmatpush3.bf16.msra.mxu1 %v842_v44  ;;  %781 = vmatprep.subr.bf16.mxu0 %v873_v28 }
  0x40   : > { %793 = vmatprep.subr.bf16.mxu1 %v873_v28  ;;  %787 = vmatprep.mubr.msk.bf16.mxu0 %vm874_vm0, %v873_v28 }
  0x41   : > { %799 = vmatprep.mubr.msk.bf16.mxu1 %vm874_vm0, %v873_v28 }
  0x42   : > { %782 = vmatpush3.bf16.msra.mxu0 %v843_v45 }
  0x43   : > { %794 = vmatpush3.bf16.msra.mxu1 %v844_v46  ;;  %783 = vmatprep.subr.bf16.mxu0 %v873_v28 }
  0x44   : > { %795 = vmatprep.subr.bf16.mxu1 %v873_v28 }
  0x46   : > { %784 = vmatpush3.bf16.msra.mxu0 %v845_v47 }
  0x47   : > { %796 = vmatpush3.bf16.msra.mxu1 %v846_v49  ;;  %785 = vmatprep.subr.bf16.mxu0 %v873_v28 }
  0x48   : > { %797 = vmatprep.subr.bf16.mxu1 %v873_v28 }
  0x4a   : > { %786 = vmatpush3.bf16.msra.mxu0 %v501_v51 }
  0x4b   : > { %798 = vmatpush3.bf16.msra.mxu1 %v574_v52 }
  0x4d   : > { %788 = vmatmul.mubr.msk.bf16.vlgmr.msra.gmra.mrb[4].mxu0 %vm348_vm2, %v319_v42 }
  0x4e   : > { %800 = vmatmul.mubr.msk.bf16.vlgmr.msra.gmra.mrb[4].mxu1 %vm348_vm2, %v319_v42 }
  0xab   : > { %v621_v63 = vpop.permute.xlu0 %620 }
 0x110   : > { %v392_v53 = vpop.f32.mrb[0].mxu0 }
 0x111   : > { %v464_v54 = vpop.f32.mrb[0].mxu1  ;;  %v765_v55 = vpop.f32.mrb[1].mxu0 }
 0x112   : > { %v470_v56 = vmax.f32 %v392_v53, %v464_v54  ;;  %v777_v57 = vpop.f32.mrb[1].mxu1  ;;  %v395_v58 = vpop.f32.mrb[2].mxu0 }
 0x113   : > { %v467_v59 = vpop.f32.mrb[2].mxu1  ;;  %v766_v60 = vpop.f32.mrb[3].mxu0 }
 0x114   : > { %v778_v61 = vpop.f32.mrb[3].mxu1 }
 0x120   : > { %v537_v62 = vpop.f32.mrb[4].mxu0 }
 0x121   : > { %v543_v0 = vmax.f32 %v470_v56, %v537_v62  ;;  %v610_v1 = vpop.f32.mrb[4].mxu1  ;;  %v789_v2 = vpop.f32.mrb[5].mxu0 }
 0x122   : > { %v801_v3 = vpop.f32.mrb[5].mxu1  ;;  %v540_v4 = vpop.f32.mrb[6].mxu0 }
 0x123   : > { %v616_v5 = vmax.f32 %v543_v0, %v610_v1  ;;  %v613_v6 = vpop.f32.mrb[6].mxu1  ;;  %v790_v7 = vpop.f32.mrb[7].mxu0 }
 0x124   : > { %v802_v8 = vpop.f32.mrb[7].mxu1 }
 0x125   : > { %v623_v9 = vadd.f32 %v621_v63, %v616_v5 }
 0x127   : > { %v624_v10 = vmax.f32 %v623_v9, 0.0 }
 0x129   : > { %625 = vst [vmem:[%s317_s10] sm:$0xff] %v624_v10 }
 0x12a PF: > { %p10_p9 = scmp.ge.s32.totalorder %s913_s16, 4   ;;  %s1066_s12 = smov %s867_s13 }
 0x12b   : > { %s1067_s13 = smov %s922_s19  ;;  %s1068_s14 = smov %s913_s16 }
 0x12c   :  { %12 = sbr.rel (!%p10_p9) target bundleno = 2 (0x2), region = 111 }

// kernel: forward.8
= control target key start
LH: loop header
LB: loop body
LE: loop exit
PB: predicated region body
PF: predicated region fallthrough
CT: control target
= control target key end

     0   :  { %v828_v0 = vmov 0   ;;  %vm126_vm0 = vcmask 588800   ;;  %vm130_vm1 = vcmask 1043456   ;;  %s1090_s0 = inlined_call_operand.vmem [shape: bf16[4,200,128], index: 0, kind: input, shape index: {}]   ;;  %s1091_s1 = inlined_call_operand.vmem [shape: bf16[10,200], index: 1, kind: input, shape index: {}]   ;;  %s1092_s2 = inlined_call_operand.vmem [shape: f32[10,1], index: 2, kind: input, shape index: {}]   ;;  %s1093_s3 = inlined_call_operand.vmem [shape: f32[10,128], index: 3, kind: output, shape index: {}]  }
   0x1   :  { %134 = vmatprep.subr.bf16.mxu0 %v828_v0  ;;  %279 = vmatprep.subr.bf16.mxu1 %v828_v0  ;;  %v773_v1 = vld [vmem:[%s1090_s0] sm:$0xff]   ;;  %v775_v3 = vld [vmem:[%s1090_s0 + $0x8] sm:$0xff]   ;;  %v777_v5 = vld [vmem:[%s1090_s0 + $0x10] sm:$0xff]  }
   0x2   :  { %v774_v2 = vld [vmem:[%s1090_s0 + $0x64] sm:$0xff]   ;;  %772 = vset.pattern.permute.xlu0 %v828_v0  ;;  %135 = vmatpush1.bf16.msra.mxu0 %v773_v1  ;;  %v776_v4 = vld [vmem:[%s1090_s0 + $0x6c] sm:$0xff]   ;;  %v778_v6 = vld [vmem:[%s1090_s0 + $0x74] sm:$0xff]  }
   0x3   :  { %280 = vmatpush1.bf16.msra.mxu1 %v774_v2  ;;  %136 = vmatprep.subr.bf16.mxu0 %v828_v0  ;;  %v779_v7 = vld [vmem:[%s1090_s0 + $0x18] sm:$0xff]   ;;  %v781_v9 = vld [vmem:[%s1090_s0 + $0x20] sm:$0xff]   ;;  %v783_v11 = vld [vmem:[%s1090_s0 + $0x28] sm:$0xff]  }
   0x4   :  { %281 = vmatprep.subr.bf16.mxu1 %v828_v0  ;;  %v780_v8 = vld [vmem:[%s1090_s0 + $0x7c] sm:$0xff]   ;;  %v782_v10 = vld [vmem:[%s1090_s0 + $0x84] sm:$0xff]   ;;  %v784_v12 = vld [vmem:[%s1090_s0 + $0x8c] sm:$0xff]  }
   0x5   :  { %v785_v13 = vld [vmem:[%s1090_s0 + $0x30] sm:$0xff]   ;;  %v787_v15 = vld [vmem:[%s1090_s0 + $0x38] sm:$0xff]   ;;  %v799_v16 = vld [vmem:[%s1091_s1 + $0x4] ss:$8 sps:$4 sm:$0x1f]  }
   0x6   :  { %137 = vmatpush1.bf16.msra.mxu0 %v775_v3  ;;  %v786_v14 = vld [vmem:[%s1090_s0 + $0x94] sm:$0xff]   ;;  %v788_v17 = vld [vmem:[%s1090_s0 + $0x9c] sm:$0xff]   ;;  %653 = vmatprep.mubr.msk.bf16.mxu0 %vm126_vm0, %v799_v16  ;;  %v790_v19 = vld [vmem:[%s1090_s0 + $0xa4] sm:$0xff]  }
   0x7   :  { %282 = vmatpush1.bf16.msra.mxu1 %v776_v4  ;;  %138 = vmatprep.subr.bf16.mxu0 %v828_v0  ;;  %v789_v18 = vld [vmem:[%s1090_s0 + $0x40] sm:$0xff]   ;;  %v791_v20 = vld [vmem:[%s1090_s0 + $0x48] sm:$0xff]   ;;  %v793_v22 = vld [vmem:[%s1090_s0 + $0x50] sm:$0xff]  }
   0x8   :  { %283 = vmatprep.subr.bf16.mxu1 %v828_v0  ;;  %692 = vmatprep.mubr.msk.bf16.mxu1 %vm126_vm0, %v799_v16  ;;  %v792_v21 = vld [vmem:[%s1090_s0 + $0xac] sm:$0xff]   ;;  %v794_v23 = vld [vmem:[%s1090_s0 + $0xb4] sm:$0xff]   ;;  %v796_v25 = vld [vmem:[%s1090_s0 + $0xbc] sm:$0xff]  }
   0x9   :  { %v795_v24 = vld [vmem:[%s1090_s0 + $0x58] sm:$0xff]   ;;  %v797_v26 = vld [vmem:[%s1090_s0 + $0x60] ss:$0 sps:$4 sm:$0xff]   ;;  %v798_v27 = vld [vmem:[%s1090_s0 + $0xc4] ss:$0 sps:$4 sm:$0xff]  }
   0xa   :  { %139 = vmatpush1.bf16.msra.mxu0 %v777_v5  ;;  %v132_v28 = vsel %vm130_vm1, %v797_v26, 0  ;;  %v962_v29 = vld [vmem:[%s1091_s1] ss:$8 sps:$4 sm:$0x1f]   ;;  %v277_v30 = vsel %vm130_vm1, %v798_v27, 0  ;;  %v803_v32 = vld [vmem:[%s1090_s0 + $0x12c] sm:$0xff]  }
   0xb   :  { %284 = vmatpush1.bf16.msra.mxu1 %v778_v6  ;;  %140 = vmatprep.subr.bf16.mxu0 %v828_v0  ;;  %v802_v31 = vld [vmem:[%s1090_s0 + $0xc8] sm:$0xff]   ;;  %v616_v33 = vld [vmem:[%s1092_s2] sm:$0xff]  ;;  %v804_v34 = vld [vmem:[%s1090_s0 + $0xd0] sm:$0xff]  }
   0xc   :  { %285 = vmatprep.subr.bf16.mxu1 %v828_v0  ;;  %620 = vperm.xlu0 %772, %v616_v33   ;;  %v617_v35 = vld [vmem:[%s1092_s2 + $0x8] sm:$0x3]  ;;  %v805_v36 = vld [vmem:[%s1090_s0 + $0x134] sm:$0xff]   ;;  %v807_v38 = vld [vmem:[%s1090_s0 + $0x13c] sm:$0xff]  }
   0xd   :  { %v806_v37 = vld [vmem:[%s1090_s0 + $0xd8] sm:$0xff]   ;;  %v808_v39 = vld [vmem:[%s1090_s0 + $0xe0] sm:$0xff]   ;;  %v810_v41 = vld [vmem:[%s1090_s0 + $0xe8] sm:$0xff]  }
   0xe   :  { %141 = vmatpush1.bf16.msra.mxu0 %v779_v7  ;;  %v809_v40 = vld [vmem:[%s1090_s0 + $0x144] sm:$0xff]   ;;  %v811_v42 = vld [vmem:[%s1090_s0 + $0x14c] sm:$0xff]   ;;  %v813_v44 = vld [vmem:[%s1090_s0 + $0x154] sm:$0xff]  }
   0xf   :  { %286 = vmatpush1.bf16.msra.mxu1 %v780_v8  ;;  %142 = vmatprep.subr.bf16.mxu0 %v828_v0  ;;  %v812_v43 = vld [vmem:[%s1090_s0 + $0xf0] sm:$0xff]   ;;  %v814_v45 = vld [vmem:[%s1090_s0 + $0xf8] sm:$0xff]   ;;  %v816_v47 = vld [vmem:[%s1090_s0 + $0x100] sm:$0xff]  }
  0x10   :  { %287 = vmatprep.subr.bf16.mxu1 %v828_v0  ;;  %625 = vperm.xlu0 %772, %v617_v35   ;;  %v815_v46 = vld [vmem:[%s1090_s0 + $0x15c] sm:$0xff]   ;;  %v817_v48 = vld [vmem:[%s1090_s0 + $0x164] sm:$0xff]   ;;  %v819_v50 = vld [vmem:[%s1090_s0 + $0x16c] sm:$0xff]  }
  0x11   :  { %v818_v49 = vld [vmem:[%s1090_s0 + $0x108] sm:$0xff]   ;;  %v820_v51 = vld [vmem:[%s1090_s0 + $0x110] sm:$0xff]   ;;  %v822_v53 = vld [vmem:[%s1090_s0 + $0x118] sm:$0xff]  }
  0x12   :  { %143 = vmatpush1.bf16.msra.mxu0 %v781_v9  ;;  %v821_v52 = vld [vmem:[%s1090_s0 + $0x174] sm:$0xff]   ;;  %v823_v54 = vld [vmem:[%s1090_s0 + $0x17c] sm:$0xff]   ;;  %v825_v56 = vld [vmem:[%s1090_s0 + $0x184] sm:$0xff]  }
  0x13   :  { %288 = vmatpush1.bf16.msra.mxu1 %v782_v10  ;;  %144 = vmatprep.subr.bf16.mxu0 %v828_v0  ;;  %v824_v55 = vld [vmem:[%s1090_s0 + $0x120] sm:$0xff]   ;;  %v826_v57 = vld [vmem:[%s1090_s0 + $0x128] ss:$0 sps:$4 sm:$0xff]   ;;  %v827_v58 = vld [vmem:[%s1090_s0 + $0x18c] ss:$0 sps:$4 sm:$0xff]  }
  0x14   :  { %289 = vmatprep.subr.bf16.mxu1 %v828_v0  ;;  %v424_v59 = vsel %vm130_vm1, %v826_v57, 0  ;;  %v571_v60 = vsel %vm130_vm1, %v827_v58, 0 }
  0x16   :  { %145 = vmatpush1.bf16.msra.mxu0 %v783_v11 }
  0x17   :  { %290 = vmatpush1.bf16.msra.mxu1 %v784_v12  ;;  %146 = vmatprep.subr.bf16.mxu0 %v828_v0 }
  0x18   :  { %291 = vmatprep.subr.bf16.mxu1 %v828_v0 }
  0x1a   :  { %147 = vmatpush1.bf16.msra.mxu0 %v785_v13 }
  0x1b   :  { %292 = vmatpush1.bf16.msra.mxu1 %v786_v14  ;;  %148 = vmatprep.subr.bf16.mxu0 %v828_v0 }
  0x1c   :  { %293 = vmatprep.subr.bf16.mxu1 %v828_v0 }
  0x1e   :  { %149 = vmatpush1.bf16.msra.mxu0 %v787_v15 }
  0x1f   :  { %294 = vmatpush1.bf16.msra.mxu1 %v788_v17  ;;  %150 = vmatprep.subr.bf16.mxu0 %v828_v0 }
  0x20   :  { %295 = vmatprep.subr.bf16.mxu1 %v828_v0 }
  0x22   :  { %151 = vmatpush1.bf16.msra.mxu0 %v789_v18 }
  0x23   :  { %296 = vmatpush1.bf16.msra.mxu1 %v790_v19  ;;  %152 = vmatprep.subr.bf16.mxu0 %v828_v0 }
  0x24   :  { %297 = vmatprep.subr.bf16.mxu1 %v828_v0 }
  0x26   :  { %153 = vmatpush1.bf16.msra.mxu0 %v791_v20 }
  0x27   :  { %298 = vmatpush1.bf16.msra.mxu1 %v792_v21  ;;  %154 = vmatprep.subr.bf16.mxu0 %v828_v0 }
  0x28   :  { %299 = vmatprep.subr.bf16.mxu1 %v828_v0 }
  0x2a   :  { %155 = vmatpush1.bf16.msra.mxu0 %v793_v22 }
  0x2b   :  { %300 = vmatpush1.bf16.msra.mxu1 %v794_v23  ;;  %156 = vmatprep.subr.bf16.mxu0 %v828_v0 }
  0x2c   :  { %301 = vmatprep.subr.bf16.mxu1 %v828_v0 }
  0x2e   :  { %157 = vmatpush1.bf16.msra.mxu0 %v795_v24 }
  0x2f   :  { %302 = vmatpush1.bf16.msra.mxu1 %v796_v25  ;;  %158 = vmatprep.subr.bf16.mxu0 %v828_v0 }
  0x30   :  { %303 = vmatprep.subr.bf16.mxu1 %v828_v0 }
  0x32   :  { %159 = vmatpush1.bf16.msra.mxu0 %v132_v28 }
  0x33   :  { %304 = vmatpush1.bf16.msra.mxu1 %v277_v30  ;;  %426 = vmatprep.subr.bf16.mxu0 %v828_v0 }
  0x34   :  { %573 = vmatprep.subr.bf16.mxu1 %v828_v0 }
  0x35   :  { %167 = vmatmul.mubr.bf16.vlgmr.msra.gmra.mrb[0].mxu0 %v962_v29 }
  0x36   :  { %312 = vmatmul.mubr.bf16.vlgmr.msra.gmra.mrb[0].mxu1 %v962_v29  ;;  %427 = vmatpush1.bf16.msra.mxu0 %v802_v31 }
  0x37   :  { %574 = vmatpush1.bf16.msra.mxu1 %v803_v32  ;;  %428 = vmatprep.subr.bf16.mxu0 %v828_v0 }
  0x38   :  { %575 = vmatprep.subr.bf16.mxu1 %v828_v0  ;;  %731 = vmatprep.mubr.msk.bf16.mxu0 %vm126_vm0, %v799_v16 }
  0x39   :  { %770 = vmatprep.mubr.msk.bf16.mxu1 %vm126_vm0, %v799_v16 }
  0x3a   :  { %429 = vmatpush1.bf16.msra.mxu0 %v804_v34 }
  0x3b   :  { %576 = vmatpush1.bf16.msra.mxu1 %v805_v36  ;;  %430 = vmatprep.subr.bf16.mxu0 %v828_v0 }
  0x3c   :  { %577 = vmatprep.subr.bf16.mxu1 %v828_v0 }
  0x3e   :  { %431 = vmatpush1.bf16.msra.mxu0 %v806_v37 }
  0x3f   :  { %578 = vmatpush1.bf16.msra.mxu1 %v807_v38  ;;  %432 = vmatprep.subr.bf16.mxu0 %v828_v0 }
  0x40   :  { %579 = vmatprep.subr.bf16.mxu1 %v828_v0 }
  0x42   :  { %433 = vmatpush1.bf16.msra.mxu0 %v808_v39 }
  0x43   :  { %580 = vmatpush1.bf16.msra.mxu1 %v809_v40  ;;  %434 = vmatprep.subr.bf16.mxu0 %v828_v0 }
  0x44   :  { %581 = vmatprep.subr.bf16.mxu1 %v828_v0 }
  0x46   :  { %435 = vmatpush1.bf16.msra.mxu0 %v810_v41 }
  0x47   :  { %582 = vmatpush1.bf16.msra.mxu1 %v811_v42  ;;  %436 = vmatprep.subr.bf16.mxu0 %v828_v0 }
  0x48   :  { %583 = vmatprep.subr.bf16.mxu1 %v828_v0 }
  0x4a   :  { %437 = vmatpush1.bf16.msra.mxu0 %v812_v43 }
  0x4b   :  { %584 = vmatpush1.bf16.msra.mxu1 %v813_v44  ;;  %438 = vmatprep.subr.bf16.mxu0 %v828_v0 }
  0x4c   :  { %585 = vmatprep.subr.bf16.mxu1 %v828_v0 }
  0x4e   :  { %439 = vmatpush1.bf16.msra.mxu0 %v814_v45 }
  0x4f   :  { %586 = vmatpush1.bf16.msra.mxu1 %v815_v46  ;;  %440 = vmatprep.subr.bf16.mxu0 %v828_v0 }
  0x50   :  { %587 = vmatprep.subr.bf16.mxu1 %v828_v0 }
  0x52   :  { %441 = vmatpush1.bf16.msra.mxu0 %v816_v47 }
  0x53   :  { %588 = vmatpush1.bf16.msra.mxu1 %v817_v48  ;;  %442 = vmatprep.subr.bf16.mxu0 %v828_v0 }
  0x54   :  { %589 = vmatprep.subr.bf16.mxu1 %v828_v0 }
  0x56   :  { %443 = vmatpush1.bf16.msra.mxu0 %v818_v49 }
  0x57   :  { %590 = vmatpush1.bf16.msra.mxu1 %v819_v50  ;;  %444 = vmatprep.subr.bf16.mxu0 %v828_v0 }
  0x58   :  { %591 = vmatprep.subr.bf16.mxu1 %v828_v0 }
  0x5a   :  { %445 = vmatpush1.bf16.msra.mxu0 %v820_v51 }
  0x5b   :  { %592 = vmatpush1.bf16.msra.mxu1 %v821_v52  ;;  %446 = vmatprep.subr.bf16.mxu0 %v828_v0 }
  0x5c   :  { %593 = vmatprep.subr.bf16.mxu1 %v828_v0 }
  0x5e   :  { %447 = vmatpush1.bf16.msra.mxu0 %v822_v53 }
  0x5f   :  { %594 = vmatpush1.bf16.msra.mxu1 %v823_v54  ;;  %448 = vmatprep.subr.bf16.mxu0 %v828_v0 }
  0x60   :  { %595 = vmatprep.subr.bf16.mxu1 %v828_v0 }
  0x62   :  { %449 = vmatpush1.bf16.msra.mxu0 %v824_v55 }
  0x63   :  { %596 = vmatpush1.bf16.msra.mxu1 %v825_v56  ;;  %450 = vmatprep.subr.bf16.mxu0 %v828_v0 }
  0x64   :  { %597 = vmatprep.subr.bf16.mxu1 %v828_v0 }
  0x66   :  { %451 = vmatpush1.bf16.msra.mxu0 %v424_v59 }
  0x67   :  { %598 = vmatpush1.bf16.msra.mxu1 %v571_v60 }
  0x69   :  { %459 = vmatmul.mubr.bf16.vlgmr.msra.gmra.mrb[4].mxu0 %v962_v29 }
  0x6a   :  { %606 = vmatmul.mubr.bf16.vlgmr.msra.gmra.mrb[4].mxu1 %v962_v29 }
  0x8b   :  { %v621_v8 = vpop.permute.xlu0 %620 }
  0x8f   :  { %v626_v21 = vpop.permute.xlu0 %625 }
 0x108   :  { %v168_v61 = vpop.f32.mrb[0].mxu0 }
 0x109   :  { %v313_v62 = vpop.f32.mrb[0].mxu1  ;;  %v170_v63 = vpop.f32.mrb[1].mxu0 }
 0x10a   :  { %v320_v1 = vmax.f32 %v168_v61, %v313_v62  ;;  %v315_v2 = vpop.f32.mrb[1].mxu1  ;;  %v171_v3 = vpop.f32.mrb[2].mxu0 }
 0x10b   :  { %v316_v4 = vpop.f32.mrb[2].mxu1  ;;  %v173_v5 = vpop.f32.mrb[3].mxu0 }
 0x10c   :  { %v321_v6 = vmax.f32 %v171_v3, %v316_v4  ;;  %v318_v7 = vpop.f32.mrb[3].mxu1 }
 0x13c   :  { %v460_v0 = vpop.f32.mrb[4].mxu0 }
 0x13d   :  { %v467_v9 = vmax.f32 %v320_v1, %v460_v0  ;;  %v607_v10 = vpop.f32.mrb[4].mxu1  ;;  %v462_v11 = vpop.f32.mrb[5].mxu0 }
 0x13e   :  { %v609_v12 = vpop.f32.mrb[5].mxu1  ;;  %v463_v13 = vpop.f32.mrb[6].mxu0 }
 0x13f   :  { %v614_v14 = vmax.f32 %v467_v9, %v607_v10  ;;  %v468_v15 = vmax.f32 %v321_v6, %v463_v13  ;;  %v610_v16 = vpop.f32.mrb[6].mxu1  ;;  %v465_v17 = vpop.f32.mrb[7].mxu0 }
 0x140   :  { %v612_v18 = vpop.f32.mrb[7].mxu1 }
 0x141   :  { %v628_v19 = vadd.f32 %v621_v8, %v614_v14  ;;  %v615_v20 = vmax.f32 %v468_v15, %v610_v16 }
 0x143   :  { %v630_v22 = vmax.f32 %v628_v19, 0.0  ;;  %v629_v23 = vadd.f32 %v626_v21, %v615_v20 }
 0x145   :  { %632 = vst [vmem:[%s1093_s3] sm:$0xff] %v630_v22  ;;  %v631_v24 = vmax.f32 %v629_v23, 0.0 }
 0x147   :  { %633 = vst [vmem:[%s1093_s3 + $0x8] sm:$0x3] %v631_v24 }

// kernel: forward.9
= control target key start
LH: loop header
LB: loop body
LE: loop exit
PB: predicated region body
PF: predicated region fallthrough
CT: control target
= control target key end

     0   :  { %v255_v0 = vmov 0.0   ;;  %vm256_vm0 = vmmov 0   ;;  %vm80_vm1 = vcmask 1044480   ;;  %vm76_vm2 = vcmask 736256   ;;  %s323_s1 = inlined_call_operand.vmem [shape: bf16[90,32], index: 1, kind: input, shape index: {}]   ;;  %s324_s0 = inlined_call_operand.vmem [shape: bf16[2,90], index: 0, kind: input, shape index: {}]   ;;  %s325_s3 = inlined_call_operand.vmem [shape: bf16[32,6], index: 3, kind: input, shape index: {}]   ;;  %s326_s2 = inlined_call_operand.vmem [shape: f32[1,32], index: 2, kind: input, shape index: {}]   ;;  %s327_s4 = inlined_call_operand.vmem [shape: f32[1,6], index: 4, kind: input, shape index: {}]   ;;  %s328_s5 = inlined_call_operand.vmem [shape: f32[2,6], index: 5, kind: output, shape index: {}]  }
   0x1   :  { %221 = vmatprep.subr.bf16.mxu0 %v255_v0  ;;  %v247_v1 = vld [vmem:[%s323_s1] sm:$0xff]   ;;  %233 = vmatprep.mubr.msk.bf16.mxu0 %vm256_vm0, %v255_v0  ;;  %v248_v2 = vld [vmem:[%s323_s1 + $0x8] sm:$0xff]   ;;  %v249_v3 = vld [vmem:[%s323_s1 + $0x10] sm:$0xff]   ;;  %vm149_vm3 = vcmask 261120   ;;  %vm193_vm4 = vcmask 41984  }
   0x2   :  { %237 = vmatprep.subr.bf16.mxu1 %v255_v0  ;;  %241 = vmatprep.mubr.msk.bf16.mxu1 %vm256_vm0, %v255_v0  ;;  %v250_v4 = vld [vmem:[%s323_s1 + $0x18] sm:$0xff]   ;;  %v251_v5 = vld [vmem:[%s323_s1 + $0x20] sm:$0xff]   ;;  %v252_v6 = vld [vmem:[%s323_s1 + $0x28] sm:$0x1f]  }
   0x3   :  { %222 = vmatpush3.bf16.msra.mxu0 %v247_v1  ;;  %v82_v7 = vsel %vm80_vm1, %v252_v6, 0  ;;  %v21_v8 = vld [vmem:[%s324_s0] sm:$0x1]  ;;  %v254_v10 = vld [vmem:[%s325_s3 + $0x8] sm:$0xff]  }
   0x4   :  { %223 = vmatprep.subr.bf16.mxu0 %v255_v0  ;;  %v253_v9 = vld [vmem:[%s325_s3] sm:$0xff]  }
   0x5   :  { %238 = vmatpush3.bf16.msra.mxu1 %v253_v9  ;;  %v199_v11 = vld [vmem:[%s326_s2] ss:$0 sm:$0xff] }
   0x6   :  { %239 = vmatprep.subr.bf16.mxu1 %v255_v0  ;;  %v207_v19 = vld [vmem:[%s327_s4] ss:$0 sm:$0xff] }
   0x7   :  { %224 = vmatpush3.bf16.msra.mxu0 %v248_v2 }
   0x8   :  { %225 = vmatprep.subr.bf16.mxu0 %v255_v0 }
   0x9   :  { %240 = vmatpush3.bf16.msra.mxu1 %v254_v10 }
   0xb   :  { %226 = vmatpush3.bf16.msra.mxu0 %v249_v3 }
   0xc   :  { %227 = vmatprep.subr.bf16.mxu0 %v255_v0 }
   0xf   :  { %228 = vmatpush3.bf16.msra.mxu0 %v250_v4 }
  0x10   :  { %229 = vmatprep.subr.bf16.mxu0 %v255_v0 }
  0x13   :  { %230 = vmatpush3.bf16.msra.mxu0 %v251_v5 }
  0x14   :  { %231 = vmatprep.subr.bf16.mxu0 %v255_v0 }
  0x17   :  { %232 = vmatpush3.bf16.msra.mxu0 %v82_v7 }
  0x1a   :  { %234 = vmatmul.mubr.msk.bf16.vlgmr.msra.gmra.mrb[0].mxu0 %vm76_vm2, %v21_v8 }
  0xed   :  { %v118_v12 = vpop.f32.mrb[0].mxu0 }
  0xee   :  { %v119_v13 = vadd.f32 %v199_v11, %v118_v12  ;;  %v235_v14 = vpop.f32.mrb[1].mxu0 }
  0xef   :  { %v121_v15 = vpop.f32.mrb[2].mxu0 }
  0xf0   :  { %v124_v16 = vmax.f32 %v119_v13, 0.0  ;;  %v236_v17 = vpop.f32.mrb[3].mxu0 }
  0xf2   :  { %v125_v18 = vpack.c.bf16 %v124_v16, %v124_v16 }
  0xf4   :  { %242 = vmatmul.mubr.msk.bf16.vlgmr.msra.gmra.mrb[0].mxu1 %vm149_vm3, %v125_v18 }
 0x1c7   :  { %v187_v20 = vpop.f32.mrb[0].mxu1 }
 0x1c8   :  { %v188_v21 = vadd.f32 %v207_v19, %v187_v20  ;;  %v243_v22 = vpop.f32.mrb[1].mxu1 }
 0x1c9   :  { %v190_v23 = vpop.f32.mrb[2].mxu1 }
 0x1ca   :  { %194 = vst.msk [vmem:[%s328_s5] sm:$0x3] %vm193_vm4, %v188_v21  ;;  %v244_v24 = vpop.f32.mrb[3].mxu1 }

// kernel: forward.10
= control target key start
LH: loop header
LB: loop body
LE: loop exit
PB: predicated region body
PF: predicated region fallthrough
CT: control target
= control target key end

     0   :  { %7 = vsyncpa [#allocation3], 0  ;;  %s1548_s9 = smov 0   ;;  %s2258_s0 = inlined_call_operand.vmem [shape: f32[2,6], index: 0, kind: input, shape index: {}]   ;;  %s2259_s1 = inlined_call_operand.vmem [shape: f32[2,1,28,28], index: 1, kind: input, shape index: {}]   ;;  %s2260_s2 = inlined_call_operand.vmem [shape: f32[2,1,896], index: 2, kind: output, shape index: {}]  }
   0x1 LB: > { %s1554_s10 = sadd.s32 4294967295, %s1527_s9   ;;  %p1355_p0 = scmp.ge.s32.totalorder %s1527_s9, 1  ;;  %s1527_s9 = sphi %s1548_s9, %s13_s9  }
   0x2   : > { %p91_p1 = scmp.lt.s32.totalorder %s1527_s9, 3  ;;  %s104_s13 = sshll.u32 %s2258_s0, 4  ;;  %s105_s13 = int_to_ptr.vmem [resolvable:$true] %s104_s13 }
   0x3   : > { %p1488_p3 = scmp.eq.s32.totalorder %s1554_s10, 0  ;;  %s1502_s15 = scalar_lea.vmem %s105_s13, 32 }
   0x4   : > { %p1561_p2 = pnand %p1355_p0, %p91_p1  ;;  %p1503_p6 = scmp.ne.s32.totalorder %s105_s13, %s1502_s15 }
   0x5   : > { %p1510_p10 = scmp.lt.s32.totalorder %s105_s13, %s105_s13  ;;  %p1511_p11 = scmp.lt.s32.totalorder %s1502_s15, %s1502_s15 }
   0x6   : > { %p1484_p4 = pneg %p1561_p2 }
   0x7   : > { %p1512_p12 = por %p1511_p11, %p1510_p10 }
   0x8   : > { %p1485_p5 = pnand %p1488_p3, %p1484_p4 }
   0xa   : > { %p1504_p7 = pneg %p1485_p5 }
   0xc   : > { %p1505_p8 = pnand %p1504_p7, %p1503_p6 }
   0xe   : > { %p1506_p9 = pneg %p1505_p8 }
  0x10   : > { %p1513_p13 = pnand %p1512_p12, %p1506_p9 }
  0x12   : > { %1516 = shalt.err (!%p1513_p13)
}
  0x13   : > { %s1529_s16 = smov [#allocation2]   ;;  %125 = sbr.rel (%p1561_p2) target bundleno = 394 (0x18a), region = 28 }
  0x14   : > { %1487 = dma.vmem_to_smem (!%p1485_p5), %s105_s13, 32, %s1529_s16, [#allocation3]  }
  0x1a   : > { %1522 = dma.done.wait (%p1488_p3), [#allocation3], 32  }
  0x1b   : > { %1524 = vsyncadd (%p1488_p3), [#allocation3], 4294967264 }
  0x1c   : > { %131 = sfence }
  0x1d   : > { %s1577_s17 = sshll.u32 %s1554_s10, 7  ;;  %v168_v0 = vlaneseq  ;;  %v1530_v1 = vmov 0.0   ;;  %vm755_vm10 = vcmask 1043456   ;;  %p147_p0 = scmp.lt.s32.totalorder %s1554_s10, 1 }
  0x1e   : > { %s157_s18 = sld [smem:[#allocation2 + %s1577_s17]]  ;;  %s158_s19 = sadd.s32 1, %s1577_s17  ;;  %841 = vmatprep.mubr.f32.mxu0 %v1530_v1  ;;  %930 = vmatprep.mubr.f32.mxu1 %v1530_v1 }
  0x1f   : > { %s159_s20 = sld [smem:[#allocation2 + %s158_s19]]  ;;  %s160_s21 = sadd.s32 2, %s1577_s17  ;;  %v169_v2 = vand.u32 127, %v168_v0  ;;  %v1586_v3 = vshrl.u32 %v168_v0, 7 }
  0x20   : > { %s161_s22 = sld [smem:[#allocation2 + %s160_s21]]  ;;  %s162_s23 = sadd.s32 3, %s1577_s17 }
  0x21   : > { %v170_v4 = vadd.s32 128, %v169_v2  ;;  %v336_v5 = vadd.s32 8, %v1586_v3  ;;  %v337_v6 = vadd.s32 16, %v1586_v3  ;;  %v338_v7 = vadd.s32 24, %v1586_v3  ;;  %s163_s24 = sld [smem:[#allocation2 + %s162_s23]]  ;;  %s164_s25 = sadd.s32 4, %s1577_s17 }
  0x22   : > { %v1593_v8 = vcvt.s32.f32 %v1586_v3  ;;  %v172_v9 = vadd.s32 384, %v169_v2  ;;  %v176_v10 = vcvt.s32.f32 %v169_v2  ;;  %v171_v11 = vadd.s32 256, %v169_v2  ;;  %s1658_s26 = sld [smem:[#allocation2 + %s164_s25]]  ;;  %s166_s27 = sadd.s32 5, %s1577_s17 }
  0x23   : > { %v177_v12 = vcvt.s32.f32 %v170_v4  ;;  %v1595_v13 = vcvt.s32.f32 %v336_v5  ;;  %v1597_v14 = vcvt.s32.f32 %v337_v6  ;;  %v1599_v15 = vcvt.s32.f32 %v338_v7  ;;  %s2265_s10 = smov (!%p147_p0, %s1554_s10), 1  ;;  %s1811_s28 = sld [smem:[#allocation2 + %s166_s27]] }
  0x24   : > { %v1601_v16 = vstv %s157_s18  ;;  %v179_v17 = vcvt.s32.f32 %v172_v9  ;;  %v183_v18 = vadd.f32 0.5, %v176_v10  ;;  %v178_v19 = vcvt.s32.f32 %v171_v11  ;;  %s1416_s29 = sshll.u32 %s2265_s10, 5  ;;  %s1479_s5 = smul.u32 7, %s2265_s10 }
  0x25   : > { %v184_v20 = vadd.f32 0.5, %v177_v12  ;;  %v1603_v21 = vstv %s159_s20  ;;  %v1605_v22 = vadd.s32 640, %v169_v2  ;;  %v1607_v23 = vadd.s32 512, %v169_v2  ;;  %s1834_s4 = scalar_lea.vmem %s2259_s1, %s1416_s29 }
  0x26   : > { %v1609_v24 = vstv %s161_s22  ;;  %v186_v25 = vadd.f32 0.5, %v179_v17  ;;  %v190_v26 = vmul.f32 0.035714287, %v183_v18  ;;  %v185_v27 = vadd.f32 0.5, %v178_v19  ;;  %s155_s8 = scalar_lea.vmem %s2260_s2, %s1479_s5 }
  0x27   : > { %v191_v28 = vmul.f32 0.035714287, %v184_v20  ;;  %v181_v29 = vcvt.s32.f32 %v1605_v22  ;;  %v180_v30 = vcvt.s32.f32 %v1607_v23  ;;  %v1613_v31 = vadd.s32 768, %v169_v2 }
  0x28   : > { %v193_v32 = vmul.f32 0.035714287, %v186_v25  ;;  %v197_v33 = vfloor.f32 %v190_v26  ;;  %v192_v34 = vmul.f32 0.035714287, %v185_v27  ;;  %v1615_v35 = vstv %s163_s24 }
  0x29   : > { %v198_v36 = vfloor.f32 %v191_v28  ;;  %v188_v37 = vadd.f32 0.5, %v181_v29  ;;  %v187_v38 = vadd.f32 0.5, %v180_v30  ;;  %v182_v39 = vcvt.s32.f32 %v1613_v31 }
  0x2a   : > { %v200_v40 = vfloor.f32 %v193_v32  ;;  %v204_v41 = vmul.f32 28.0, %v197_v33  ;;  %v247_v42 = vmul.f32 2.0, %v197_v33  ;;  %v199_v43 = vfloor.f32 %v192_v34 }
  0x2b   : > { %v205_v44 = vmul.f32 28.0, %v198_v36  ;;  %v248_v45 = vmul.f32 2.0, %v198_v36  ;;  %v195_v46 = vmul.f32 0.035714287, %v188_v37  ;;  %v194_v47 = vmul.f32 0.035714287, %v187_v38 }
  0x2c   : > { %v207_v48 = vmul.f32 28.0, %v200_v40  ;;  %v250_v49 = vmul.f32 2.0, %v200_v40  ;;  %v211_v50 = vsub.f32 %v176_v10, %v204_v41  ;;  %v254_v51 = vadd.f32 1.0, %v247_v42 }
  0x2d   : > { %v212_v52 = vsub.f32 %v177_v12, %v205_v44  ;;  %v255_v53 = vadd.f32 1.0, %v248_v45  ;;  %v206_v54 = vmul.f32 28.0, %v199_v43  ;;  %v249_v55 = vmul.f32 2.0, %v199_v43 }
  0x2e   : > { %v214_v56 = vsub.f32 %v179_v17, %v207_v48  ;;  %v257_v57 = vadd.f32 1.0, %v250_v49  ;;  %v218_v58 = vmul.f32 2.0, %v211_v50  ;;  %v261_v59 = vmul.f32 0.035714287, %v254_v51 }
  0x2f   : > { %v219_v60 = vmul.f32 2.0, %v212_v52  ;;  %v262_v61 = vmul.f32 0.035714287, %v255_v53  ;;  %v213_v62 = vsub.f32 %v178_v19, %v206_v54  ;;  %v256_v63 = vadd.f32 1.0, %v249_v55 }
  0x30   : > { %v221_v2 = vmul.f32 2.0, %v214_v56  ;;  %v264_v4 = vmul.f32 0.035714287, %v257_v57  ;;  %v225_v5 = vadd.f32 1.0, %v218_v58  ;;  %v1622_v6 = vadd.f32 -1.0, %v261_v59 }
  0x31   : > { %v226_v7 = vadd.f32 1.0, %v219_v60  ;;  %v1624_v9 = vadd.f32 -1.0, %v262_v61  ;;  %v220_v10 = vmul.f32 2.0, %v213_v62  ;;  %v263_v11 = vmul.f32 0.035714287, %v256_v63 }
  0x32   : > { %v228_v12 = vadd.f32 1.0, %v221_v2  ;;  %v1626_v18 = vadd.f32 -1.0, %v264_v4  ;;  %v233_v17 = vmul.f32 0.035714287, %v225_v5  ;;  %v284_v20 = vmul.f32 %v1622_v6, %v1603_v21 }
  0x33   : > { %v234_v25 = vmul.f32 0.035714287, %v226_v7  ;;  %v285_v19 = vmul.f32 %v1624_v9, %v1603_v21  ;;  %v227_v26 = vadd.f32 1.0, %v220_v10  ;;  %v1632_v27 = vadd.f32 -1.0, %v263_v11 }
  0x34   : > { %v236_v28 = vmul.f32 0.035714287, %v228_v12  ;;  %v287_v32 = vmul.f32 %v1626_v18, %v1603_v21  ;;  %v1363_v33 = vadd.f32 -1.0, %v233_v17  ;;  %v202_v34 = vfloor.f32 %v195_v46 }
  0x35   : > { %v1636_v36 = vadd.f32 -1.0, %v234_v25  ;;  %v235_v37 = vmul.f32 0.035714287, %v227_v26  ;;  %v286_v38 = vmul.f32 %v1632_v27, %v1603_v21  ;;  %v201_v40 = vfloor.f32 %v194_v47 }
  0x36   : > { %v1640_v41 = vadd.f32 -1.0, %v236_v28  ;;  %v276_v42 = vmul.f32 %v1363_v33, %v1601_v16  ;;  %v209_v43 = vmul.f32 28.0, %v202_v34  ;;  %v252_v44 = vmul.f32 2.0, %v202_v34 }
  0x37   : > { %v277_v45 = vmul.f32 %v1636_v36, %v1601_v16  ;;  %v1645_v48 = vadd.f32 -1.0, %v235_v37  ;;  %v208_v46 = vmul.f32 28.0, %v201_v40  ;;  %v251_v49 = vmul.f32 2.0, %v201_v40 }
  0x38   : > { %v279_v50 = vmul.f32 %v1640_v41, %v1601_v16  ;;  %v291_v51 = vadd.f32 %v284_v20, %v276_v42  ;;  %v216_v47 = vsub.f32 %v181_v29, %v209_v43  ;;  %v259_v52 = vadd.f32 1.0, %v252_v44 }
  0x39   : > { %v292_v53 = vadd.f32 %v285_v19, %v277_v45  ;;  %v278_v54 = vmul.f32 %v1645_v48, %v1601_v16  ;;  %v215_v55 = vsub.f32 %v180_v30, %v208_v46  ;;  %v258_v56 = vadd.f32 1.0, %v251_v49 }
  0x3a   : > { %v294_v57 = vadd.f32 %v287_v32, %v279_v50  ;;  %v299_v58 = vadd.f32 %v1609_v24, %v291_v51  ;;  %v223_v59 = vmul.f32 2.0, %v216_v47  ;;  %v266_v60 = vmul.f32 0.035714287, %v259_v52 }
  0x3b   : > { %v300_v61 = vadd.f32 %v1609_v24, %v292_v53  ;;  %v293_v62 = vadd.f32 %v286_v38, %v278_v54  ;;  %v222_v22 = vmul.f32 2.0, %v215_v55  ;;  %v265_v29 = vmul.f32 0.035714287, %v258_v56 }
  0x3c   : > { %v302_v63 = vadd.f32 %v1609_v24, %v294_v57  ;;  %v306_v2 = vadd.f32 1.0, %v299_v58  ;;  %v230_v4 = vadd.f32 1.0, %v223_v59  ;;  %v1661_v5 = vadd.f32 -1.0, %v266_v60 }
  0x3d   : > { %v307_v23 = vadd.f32 1.0, %v300_v61  ;;  %v301_v30 = vadd.f32 %v1609_v24, %v293_v62  ;;  %v229_v7 = vadd.f32 1.0, %v222_v22  ;;  %v1664_v10 = vadd.f32 -1.0, %v265_v29 }
  0x3e   : > { %v309_v11 = vadd.f32 1.0, %v302_v63  ;;  %v313_v12 = vmul.f32 28.0, %v306_v2  ;;  %v238_v17 = vmul.f32 0.035714287, %v230_v4  ;;  %v289_v20 = vmul.f32 %v1661_v5, %v1603_v21 }
  0x3f   : > { %v314_v25 = vmul.f32 28.0, %v307_v23  ;;  %v308_v19 = vadd.f32 1.0, %v301_v30  ;;  %v237_v26 = vmul.f32 0.035714287, %v229_v7  ;;  %v288_v28 = vmul.f32 %v1664_v10, %v1603_v21 }
  0x40   : > { %v316_v32 = vmul.f32 28.0, %v309_v11  ;;  %v1377_v34 = vadd.f32 -1.0, %v313_v12  ;;  %v1670_v37 = vadd.f32 -1.0, %v238_v17  ;;  %v189_v38 = vadd.f32 0.5, %v182_v39 }
  0x41   : > { %v1378_v40 = vadd.f32 -1.0, %v314_v25  ;;  %v315_v42 = vmul.f32 28.0, %v308_v19  ;;  %v1674_v43 = vadd.f32 -1.0, %v237_v26  ;;  %v1677_v44 = vmul.f32 %v1363_v33, %v1615_v35 }
  0x42   : > { %v1380_v45 = vadd.f32 -1.0, %v316_v32  ;;  %v327_v46 = vmul.f32 0.5, %v1377_v34  ;;  %v281_v49 = vmul.f32 %v1670_v37, %v1601_v16  ;;  %v1681_v50 = vmul.f32 0.035714287, %v189_v38 }
  0x43   : > { %v328_v51 = vmul.f32 0.5, %v1378_v40  ;;  %v1379_v47 = vadd.f32 -1.0, %v315_v42  ;;  %v280_v52 = vmul.f32 %v1674_v43, %v1601_v16  ;;  %v1686_v53 = vstv %s1658_s26 }
  0x44   : > { %v330_v54 = vmul.f32 0.5, %v1380_v45  ;;  %v1688_v55 = vfloor.f32 %v327_v46  ;;  %v1690_v56 = vadd.f32 %v289_v20, %v281_v49  ;;  %v203_v33 = vfloor.f32 %v1681_v50 }
  0x45   : > { %v344_v57 = vfloor.f32 %v328_v51  ;;  %v329_v58 = vmul.f32 0.5, %v1379_v47  ;;  %v1693_v59 = vadd.f32 %v288_v28, %v280_v52  ;;  %v1697_v60 = vmul.f32 %v1622_v6, %v1686_v53 }
  0x46   : > { %v1699_v61 = vfloor.f32 %v330_v54  ;;  %v1702_v62 = vsub.f32 %v327_v46, %v1688_v55  ;;  %vm357_vm0 = vcmp.eq.f32.partialorder %v1593_v8, %v1688_v55  ;;  %vm364_vm1 = vcmp.eq.f32.partialorder %v1595_v13, %v1688_v55 }
  0x47   : > { %v351_v22 = vsub.f32 %v328_v51, %v344_v57  ;;  %vm358_vm2 = vcmp.eq.f32.partialorder %v1593_v8, %v344_v57  ;;  %vm365_vm3 = vcmp.eq.f32.partialorder %v1595_v13, %v344_v57  ;;  %v421_v29 = vadd.f32 1.0, %v344_v57 }
  0x48   : > { %v1711_v6 = vsub.f32 %v330_v54, %v1699_v61  ;;  %vm360_vm4 = vcmp.eq.f32.partialorder %v1593_v8, %v1699_v61  ;;  %vm367_vm5 = vcmp.eq.f32.partialorder %v1595_v13, %v1699_v61  ;;  %v1718_v63 = vadd.f32 1.0, %v1699_v61 }
  0x49   : > { %v386_v2 = vsub.f32 1.0, %v351_v22  ;;  %vm428_vm6 = vcmp.eq.f32.partialorder %v1593_v8, %v421_v29  ;;  %vm435_vm7 = vcmp.eq.f32.partialorder %v1595_v13, %v421_v29  ;;  %v1723_v4 = vsub.f32 1.0, %v1702_v62 }
  0x4a   : > { %v456_v23 = vsel %vm428_vm6, %v351_v22, 0.0  ;;  %v463_v30 = vsel %vm435_vm7, %v351_v22, 0.0  ;;  %v388_v7 = vsub.f32 1.0, %v1711_v6  ;;  %vm430_vm8 = vcmp.eq.f32.partialorder %v1593_v8, %v1718_v63 }
  0x4b   : > { %v393_v11 = vsel %vm358_vm2, %v386_v2, 0.0  ;;  %v400_v12 = vsel %vm365_vm3, %v386_v2, 0.0  ;;  %vm437_vm9 = vcmp.eq.f32.partialorder %v1595_v13, %v1718_v63  ;;  %v458_v17 = vsel %vm430_vm8, %v1711_v6, 0.0 }
  0x4c   : > { %v484_v20 = vadd.f32 %v456_v23, %v393_v11  ;;  %v491_v25 = vadd.f32 %v463_v30, %v400_v12  ;;  %v395_v19 = vsel %vm360_vm4, %v388_v7, 0.0  ;;  %v402_v26 = vsel %vm367_vm5, %v388_v7, 0.0 }
  0x4d   : > { %v465_v28 = vsel %vm437_vm9, %v1711_v6, 0.0  ;;  %v486_v32 = vadd.f32 %v458_v17, %v395_v19  ;;  %v392_v34 = vsel %vm357_vm0, %v1723_v4, 0.0  ;;  %v399_v38 = vsel %vm364_vm1, %v1723_v4, 0.0 }
  0x4e   : > { %v1439_v40 = vpack.c.bf16 %v491_v25, %v484_v20  ;;  %v493_v42 = vadd.f32 %v465_v28, %v402_v26  ;;  %v1747_v45 = vadd.f32 1.0, %v1688_v55  ;;  %v1749_v46 = vfloor.f32 %v329_v58 }
  0x4f   : > { %vm372_vm11 = vcmp.eq.f32.partialorder %v1597_v14, %v344_v57  ;;  %vm379_vm12 = vcmp.eq.f32.partialorder %v1599_v15, %v344_v57  ;;  %vm442_vm13 = vcmp.eq.f32.partialorder %v1597_v14, %v421_v29  ;;  %vm449_vm14 = vcmp.eq.f32.partialorder %v1599_v15, %v421_v29 }
  0x50   : > { %1440 = vmatprep.subr.bf16.mxu0 %v1439_v40  ;;  %v1449_v49 = vpack.c.bf16 %v493_v42, %v486_v32  ;;  %vm427_vm15 = vcmp.eq.f32.partialorder %v1593_v8, %v1747_v45  ;;  %vm434_vm0 = vcmp.eq.f32.partialorder %v1595_v13, %v1747_v45  ;;  %v1760_v51 = vsub.f32 %v329_v58, %v1749_v46 }
  0x51   : > { %v455_v47 = vsel %vm427_vm15, %v1702_v62, 0.0  ;;  %v462_v52 = vsel %vm434_vm0, %v1702_v62, 0.0  ;;  %vm359_vm1 = vcmp.eq.f32.partialorder %v1593_v8, %v1749_v46  ;;  %vm366_vm2 = vcmp.eq.f32.partialorder %v1595_v13, %v1749_v46 }
  0x52   : > { %1450 = vmatprep.subr.bf16.mxu1 %v1449_v49  ;;  %v483_v54 = vadd.f32 %v455_v47, %v392_v34  ;;  %v490_v23 = vadd.f32 %v462_v52, %v399_v38  ;;  %v387_v30 = vsub.f32 1.0, %v1760_v51  ;;  %v422_v11 = vadd.f32 1.0, %v1749_v46 }
  0x53   : > { %v407_v58 = vsel %vm372_vm11, %v386_v2, 0.0  ;;  %v414_v12 = vsel %vm379_vm12, %v386_v2, 0.0  ;;  %v470_v17 = vsel %vm442_vm13, %v351_v22, 0.0  ;;  %v477_v20 = vsel %vm449_vm14, %v351_v22, 0.0 }
  0x54   : > { %v1441_v25 = vpack.c.bf16 %v490_v23, %v483_v54  ;;  %v394_v19 = vsel %vm359_vm1, %v387_v30, 0.0  ;;  %v401_v26 = vsel %vm366_vm2, %v387_v30, 0.0  ;;  %vm429_vm3 = vcmp.eq.f32.partialorder %v1593_v8, %v422_v11 }
  0x55   : > { %vm436_vm4 = vcmp.eq.f32.partialorder %v1595_v13, %v422_v11  ;;  %v457_v57 = vsel %vm429_vm3, %v1760_v51, 0.0  ;;  %v498_v2 = vadd.f32 %v470_v17, %v407_v58  ;;  %v505_v28 = vadd.f32 %v477_v20, %v414_v12 }
  0x56   : > { %1442 = vmatpush1.bf16.msra.mxu0 %v1441_v25  ;;  %v464_v32 = vsel %vm436_vm4, %v1760_v51, 0.0  ;;  %v485_v29 = vadd.f32 %v457_v57, %v394_v19  ;;  %vm1531_vm5 = vmmov 1   ;;  %vm374_vm7 = vcmp.eq.f32.partialorder %v1597_v14, %v1699_v61 }
  0x57   : > { %vm1784_vm6 = vmpackc.low %vm755_vm10, %vm1531_vm5  ;;  %vm381_vm8 = vcmp.eq.f32.partialorder %v1599_v15, %v1699_v61  ;;  %v492_v34 = vadd.f32 %v464_v32, %v401_v26  ;;  %v1443_v38 = vpack.c.bf16 %v505_v28, %v498_v2  ;;  %v409_v40 = vsel %vm374_vm7, %v388_v7, 0.0 }
  0x58   : > { %v416_v42 = vsel %vm381_vm8, %v388_v7, 0.0  ;;  %vm444_vm9 = vcmp.eq.f32.partialorder %v1597_v14, %v1718_v63  ;;  %vm451_vm11 = vcmp.eq.f32.partialorder %v1599_v15, %v1718_v63  ;;  %vm371_vm12 = vcmp.eq.f32.partialorder %v1597_v14, %v1688_v55 }
  0x59   : > { %vm378_vm13 = vcmp.eq.f32.partialorder %v1599_v15, %v1688_v55  ;;  %v1451_v61 = vpack.c.bf16 %v492_v34, %v485_v29  ;;  %1445 = vmatprep.subr.msk.bf16.mxu0 %vm1784_vm6, %v1443_v38  ;;  %v472_v7 = vsel %vm444_vm9, %v1711_v6, 0.0  ;;  %v479_v49 = vsel %vm451_vm11, %v1711_v6, 0.0 }
  0x5a   : > { %v406_v47 = vsel %vm371_vm12, %v1723_v4, 0.0  ;;  %v500_v63 = vadd.f32 %v472_v7, %v409_v40  ;;  %v507_v52 = vadd.f32 %v479_v49, %v416_v42  ;;  %v413_v54 = vsel %vm378_vm13, %v1723_v4, 0.0 }
  0x5b   : > { %vm441_vm14 = vcmp.eq.f32.partialorder %v1597_v14, %v1747_v45  ;;  %1452 = vmatpush1.bf16.msra.mxu1 %v1451_v61  ;;  %vm448_vm15 = vcmp.eq.f32.partialorder %v1599_v15, %v1747_v45  ;;  %vm373_vm0 = vcmp.eq.f32.partialorder %v1597_v14, %v1749_v46  ;;  %vm380_vm1 = vcmp.eq.f32.partialorder %v1599_v15, %v1749_v46 }
  0x5c   : > { %v469_v55 = vsel %vm441_vm14, %v1702_v62, 0.0  ;;  %v1453_v6 = vpack.c.bf16 %v507_v52, %v500_v63  ;;  %v476_v23 = vsel %vm448_vm15, %v1702_v62, 0.0  ;;  %v408_v58 = vsel %vm373_vm0, %v387_v30, 0.0  ;;  %v1876_v52 = vld [vmem:[%s1834_s4 + $0x10] sm:$0xff] }
  0x5d   : > { %v497_v4 = vadd.f32 %v469_v55, %v406_v47  ;;  %v504_v12 = vadd.f32 %v476_v23, %v413_v54  ;;  %v415_v17 = vsel %vm380_vm1, %v387_v30, 0.0  ;;  %vm443_vm2 = vcmp.eq.f32.partialorder %v1597_v14, %v422_v11 }
  0x5e   : > { %vm450_vm3 = vcmp.eq.f32.partialorder %v1599_v15, %v422_v11  ;;  %1455 = vmatprep.subr.msk.bf16.mxu1 %vm1784_vm6, %v1453_v6  ;;  %v471_v45 = vsel %vm443_vm2, %v1760_v51, 0.0  ;;  %v304_v62 = vadd.f32 %v1609_v24, %v1690_v56  ;;  %v303_v46 = vadd.f32 %v1609_v24, %v1693_v59  ;;  %v1849_v59 = vld [vmem:[%s1834_s4] sm:$0xff] }
  0x5f   : > { %v478_v20 = vsel %vm450_vm3, %v1760_v51, 0.0  ;;  %v1446_v30 = vpack.c.bf16 %v504_v12, %v497_v4  ;;  %v499_v11 = vadd.f32 %v471_v45, %v408_v58  ;;  %v210_v19 = vmul.f32 28.0, %v203_v33 }
  0x60   : > { %v506_v25 = vadd.f32 %v478_v20, %v415_v17  ;;  %v311_v51 = vadd.f32 1.0, %v304_v62  ;;  %v310_v26 = vadd.f32 1.0, %v303_v46  ;;  %v253_v57 = vmul.f32 2.0, %v203_v33  ;;  %v1899_v20 = vld [vmem:[%s1834_s4 + $0x18] sm:$0xf] }
  0x61   : > { %v527_v2 = vadd.f32 %v1697_v60, %v1677_v44  ;;  %1448 = vmatpush1.bf16.msk.msra.mxu0 %vm1784_vm6, %v1446_v30  ;;  %vm742_vm4 = vcmask 228352   ;;  %v217_v28 = vsub.f32 %v182_v39, %v210_v19  ;;  %v1854_v32 = vstv %s1811_s28  ;;  %v1865_v39 = vld [vmem:[%s1834_s4 + $0x8] sm:$0xff] }
  0x62   : > { %v1456_v56 = vpack.c.bf16 %v506_v25, %v499_v11  ;;  %v318_v29 = vmul.f32 28.0, %v311_v51  ;;  %v317_v34 = vmul.f32 28.0, %v310_v26  ;;  %v260_v50 = vadd.f32 1.0, %v253_v57 }
  0x63   : > { %v1857_v33 = vadd.f32 %v1854_v32, %v527_v2  ;;  %v224_v44 = vmul.f32 2.0, %v217_v28  ;;  %v514_v22 = vmul.f32 %v1645_v48, %v1615_v35 }
  0x64   : > { %1458 = vmatpush1.bf16.msk.msra.mxu1 %vm1784_vm6, %v1456_v56  ;;  %1393 = vmatmul.mubr.msk.f32.vlgmr.msra.gmra.mrb[0].mxu0 %vm742_vm4, %v1849_v59  ;;  %v1382_v60 = vadd.f32 -1.0, %v318_v29  ;;  %v1381_v38 = vadd.f32 -1.0, %v317_v34  ;;  %v267_v31 = vmul.f32 0.035714287, %v260_v50 }
  0x65   : > { %847 = vmatprep.mubr.f32.mxu0 %v1530_v1  ;;  %v231_v40 = vadd.f32 1.0, %v224_v44 }
  0x66   : > { %v332_v42 = vmul.f32 0.5, %v1382_v60  ;;  %v331_v61 = vmul.f32 0.5, %v1381_v38  ;;  %v1869_v7 = vadd.f32 -1.0, %v267_v31 }
  0x67   : > { %1399 = vmatmul.mubr.msk.f32.vlgmr.msra.gmra.mrb[0].mxu1 %vm742_vm4, %v1849_v59  ;;  %v239_v49 = vmul.f32 0.035714287, %v231_v40 }
  0x68   : > { %936 = vmatprep.mubr.f32.mxu1 %v1530_v1  ;;  %v348_v47 = vfloor.f32 %v332_v42  ;;  %v347_v63 = vfloor.f32 %v331_v61  ;;  %1394 = vmatmul.mubr.msk.f32.gmra.mrb[2].mxu0 %vm742_vm4, %v1865_v39  ;;  %v1882_v55 = vmul.f32 %v1869_v7, %v1603_v21 }
  0x69   : > { %853 = vmatprep.mubr.f32.mxu0 %v1530_v1  ;;  %v1878_v54 = vadd.f32 -1.0, %v239_v49 }
  0x6a   : > { %v355_v6 = vsub.f32 %v332_v42, %v348_v47  ;;  %vm362_vm5 = vcmp.eq.f32.partialorder %v1593_v8, %v348_v47  ;;  %vm369_vm7 = vcmp.eq.f32.partialorder %v1595_v13, %v348_v47  ;;  %v425_v23 = vadd.f32 1.0, %v348_v47 }
  0x6b   : > { %1400 = vmatmul.mubr.msk.f32.gmra.mrb[2].mxu1 %vm742_vm4, %v1865_v39  ;;  %v354_v4 = vsub.f32 %v331_v61, %v347_v63  ;;  %vm361_vm8 = vcmp.eq.f32.partialorder %v1593_v8, %v347_v63  ;;  %vm368_vm9 = vcmp.eq.f32.partialorder %v1595_v13, %v347_v63  ;;  %v424_v58 = vadd.f32 1.0, %v347_v63 }
  0x6c   : > { %942 = vmatprep.mubr.f32.mxu1 %v1530_v1  ;;  %v390_v21 = vsub.f32 1.0, %v355_v6  ;;  %vm432_vm11 = vcmp.eq.f32.partialorder %v1593_v8, %v425_v23  ;;  %vm439_vm12 = vcmp.eq.f32.partialorder %v1595_v13, %v425_v23  ;;  %1395 = vmatmul.mubr.msk.f32.gmra.mrb[4].mxu0 %vm742_vm4, %v1876_v52  ;;  %vm376_vm13 = vcmp.eq.f32.partialorder %v1597_v14, %v348_v47 }
  0x6d   : > { %v460_v12 = vsel %vm432_vm11, %v355_v6, 0.0  ;;  %v467_v17 = vsel %vm439_vm12, %v355_v6, 0.0  ;;  %v389_v45 = vsub.f32 1.0, %v354_v4  ;;  %vm431_vm14 = vcmp.eq.f32.partialorder %v1593_v8, %v424_v58  ;;  %859 = vmatprep.mubr.f32.mxu0 %v1530_v1 }
  0x6e   : > { %v397_v62 = vsel %vm362_vm5, %v390_v21, 0.0  ;;  %v404_v46 = vsel %vm369_vm7, %v390_v21, 0.0  ;;  %vm438_vm15 = vcmp.eq.f32.partialorder %v1595_v13, %v424_v58  ;;  %v459_v30 = vsel %vm431_vm14, %v354_v4, 0.0 }
  0x6f   : > { %1401 = vmatmul.mubr.msk.f32.gmra.mrb[4].mxu1 %vm742_vm4, %v1876_v52  ;;  %v488_v11 = vadd.f32 %v460_v12, %v397_v62  ;;  %v495_v25 = vadd.f32 %v467_v17, %v404_v46  ;;  %v396_v19 = vsel %vm361_vm8, %v389_v45, 0.0  ;;  %v403_v51 = vsel %vm368_vm9, %v389_v45, 0.0 }
  0x70   : > { %948 = vmatprep.mubr.f32.mxu1 %v1530_v1  ;;  %v466_v26 = vsel %vm438_vm15, %v354_v4, 0.0  ;;  %v487_v57 = vadd.f32 %v459_v30, %v396_v19  ;;  %vm383_vm0 = vcmp.eq.f32.partialorder %v1599_v15, %v348_v47  ;;  %v411_v2 = vsel %vm376_vm13, %v390_v21, 0.0  ;;  %1396 = vmatmul.mubr.msk.f32.gmra.mrb[6].mxu0 %vm742_vm4, %v1899_v20 }
  0x71   : > { %v1459_v56 = vpack.c.bf16 %v495_v25, %v488_v11  ;;  %v494_v28 = vadd.f32 %v466_v26, %v403_v51  ;;  %v418_v29 = vsel %vm383_vm0, %v390_v21, 0.0  ;;  %vm446_vm1 = vcmp.eq.f32.partialorder %v1597_v14, %v425_v23  ;;  %1019 = vmatprep.mubr.f32.mxu0 %v1530_v1 }
  0x72   : > { %vm453_vm2 = vcmp.eq.f32.partialorder %v1599_v15, %v425_v23  ;;  %v474_v34 = vsel %vm446_vm1, %v355_v6, 0.0  ;;  %vm375_vm3 = vcmp.eq.f32.partialorder %v1597_v14, %v347_v63  ;;  %vm382_vm5 = vcmp.eq.f32.partialorder %v1599_v15, %v347_v63 }
  0x73   : > { %1402 = vmatmul.mubr.msk.f32.gmra.mrb[6].mxu1 %vm742_vm4, %v1899_v20  ;;  %1460 = vmatprep.subr.bf16.mxu0 %v1459_v56  ;;  %v1461_v50 = vpack.c.bf16 %v494_v28, %v487_v57  ;;  %v481_v44 = vsel %vm453_vm2, %v355_v6, 0.0  ;;  %v502_v60 = vadd.f32 %v474_v34, %v411_v2  ;;  %v410_v38 = vsel %vm375_vm3, %v389_v45, 0.0 }
  0x74   : > { %1433 = vmatprep.mubr.msk.f32.mxu1 %vm742_vm4, %v1849_v59  ;;  %v509_v31 = vadd.f32 %v481_v44, %v418_v29  ;;  %v417_v40 = vsel %vm382_vm5, %v389_v45, 0.0  ;;  %vm445_vm7 = vcmp.eq.f32.partialorder %v1597_v14, %v424_v58  ;;  %vm452_vm8 = vcmp.eq.f32.partialorder %v1599_v15, %v424_v58 }
  0x75   : > { %1462 = vmatpush1.bf16.msra.mxu0 %v1461_v50  ;;  %v473_v42 = vsel %vm445_vm7, %v354_v4, 0.0  ;;  %v480_v61 = vsel %vm452_vm8, %v354_v4, 0.0  ;;  %v282_v49 = vmul.f32 %v1878_v54, %v1601_v16  ;;  %v513_v34 = vmul.f32 %v1636_v36, %v1615_v35 }
  0x76   : > { %v1463_v47 = vpack.c.bf16 %v509_v31, %v502_v60  ;;  %v501_v63 = vadd.f32 %v473_v42, %v410_v38  ;;  %v508_v6 = vadd.f32 %v480_v61, %v417_v40  ;;  %v521_v50 = vmul.f32 %v1624_v9, %v1686_v53 }
  0x77   : > { %v297_v23 = vadd.f32 %v1882_v55, %v282_v49  ;;  %v542_v44 = vadd.f32 1.0, %v1857_v33 }
  0x78   : > { %1465 = vmatprep.subr.msk.bf16.mxu0 %vm1784_vm6, %v1463_v47  ;;  %v1466_v21 = vpack.c.bf16 %v508_v6, %v501_v63  ;;  %v528_v60 = vadd.f32 %v521_v50, %v513_v34 }
  0x79   : > { %v305_v12 = vadd.f32 %v1609_v24, %v297_v23  ;;  %v549_v38 = vmul.f32 28.0, %v542_v44 }
  0x7a   : > { %1468 = vmatpush1.bf16.msk.msra.mxu0 %vm1784_vm6, %v1466_v21  ;;  %v536_v36 = vadd.f32 %v1854_v32, %v528_v60 }
  0x7b   : > { %v312_v58 = vadd.f32 1.0, %v305_v12  ;;  %v1384_v9 = vadd.f32 -1.0, %v549_v38 }
  0x7c   : > { %v543_v33 = vadd.f32 1.0, %v536_v36 }
  0x7d   : > { %v319_v17 = vmul.f32 28.0, %v312_v58  ;;  %1405 = vmatmul.mubr.msk.f32.vlgmr.msra.gmra.mrb[8].mxu0 %vm742_vm4, %v1849_v59  ;;  %v563_v61 = vmul.f32 0.5, %v1384_v9 }
  0x7e   : > { %1025 = vmatprep.mubr.f32.mxu0 %v1530_v1  ;;  %v550_v49 = vmul.f32 28.0, %v543_v33 }
  0x7f   : > { %v1383_v16 = vadd.f32 -1.0, %v319_v17  ;;  %v570_v47 = vfloor.f32 %v563_v61 }
  0x80   : > { %v1385_v6 = vadd.f32 -1.0, %v550_v49 }
  0x81   : > { %v333_v4 = vmul.f32 0.5, %v1383_v16  ;;  %1406 = vmatmul.mubr.msk.f32.gmra.mrb[10].mxu0 %vm742_vm4, %v1865_v39  ;;  %v577_v23 = vsub.f32 %v563_v61, %v570_v47  ;;  %v647_v21 = vadd.f32 1.0, %v570_v47  ;;  %vm591_vm2 = vcmp.eq.f32.partialorder %v1595_v13, %v570_v47 }
  0x82   : > { %1031 = vmatprep.mubr.f32.mxu0 %v1530_v1  ;;  %v564_v12 = vmul.f32 0.5, %v1385_v6  ;;  %vm598_vm5 = vcmp.eq.f32.partialorder %v1597_v14, %v570_v47  ;;  %vm605_vm8 = vcmp.eq.f32.partialorder %v1599_v15, %v570_v47 }
  0x83   : > { %v349_v55 = vfloor.f32 %v333_v4  ;;  %v612_v17 = vsub.f32 1.0, %v577_v23  ;;  %vm661_vm3 = vcmp.eq.f32.partialorder %v1595_v13, %v647_v21  ;;  %vm668_vm7 = vcmp.eq.f32.partialorder %v1597_v14, %v647_v21 }
  0x85   : > { %v356_v45 = vsub.f32 %v333_v4, %v349_v55  ;;  %v426_v24 = vadd.f32 1.0, %v349_v55  ;;  %1407 = vmatmul.mubr.msk.f32.gmra.mrb[12].mxu0 %vm742_vm4, %v1876_v52  ;;  %vm363_vm9 = vcmp.eq.f32.partialorder %v1593_v8, %v349_v55  ;;  %vm370_vm11 = vcmp.eq.f32.partialorder %v1595_v13, %v349_v55 }
  0x86   : > { %vm377_vm12 = vcmp.eq.f32.partialorder %v1597_v14, %v349_v55  ;;  %vm384_vm13 = vcmp.eq.f32.partialorder %v1599_v15, %v349_v55  ;;  %1037 = vmatprep.mubr.f32.mxu0 %v1530_v1  ;;  %v516_v4 = vmul.f32 %v1674_v43, %v1615_v35  ;;  %v524_v55 = vmul.f32 %v1664_v10, %v1686_v53 }
  0x87   : > { %v391_v59 = vsub.f32 1.0, %v356_v45  ;;  %vm433_vm14 = vcmp.eq.f32.partialorder %v1593_v8, %v426_v24  ;;  %vm440_vm15 = vcmp.eq.f32.partialorder %v1595_v13, %v426_v24  ;;  %vm447_vm0 = vcmp.eq.f32.partialorder %v1597_v14, %v426_v24 }
  0x88   : > { %v461_v62 = vsel %vm433_vm14, %v356_v45, 0.0  ;;  %v468_v46 = vsel %vm440_vm15, %v356_v45, 0.0  ;;  %vm454_vm1 = vcmp.eq.f32.partialorder %v1599_v15, %v426_v24  ;;  %v475_v30 = vsel %vm447_vm0, %v356_v45, 0.0 }
  0x89   : > { %v398_v11 = vsel %vm363_vm9, %v391_v59, 0.0  ;;  %v405_v25 = vsel %vm370_vm11, %v391_v59, 0.0  ;;  %v412_v19 = vsel %vm377_vm12, %v391_v59, 0.0  ;;  %v419_v51 = vsel %vm384_vm13, %v391_v59, 0.0  ;;  %1408 = vmatmul.mubr.msk.f32.gmra.mrb[14].mxu0 %vm742_vm4, %v1899_v20 }
  0x8a   : > { %v489_v1 = vadd.f32 %v461_v62, %v398_v11  ;;  %v496_v26 = vadd.f32 %v468_v46, %v405_v25  ;;  %v482_v57 = vsel %vm454_vm1, %v356_v45, 0.0  ;;  %v503_v2 = vadd.f32 %v475_v30, %v412_v19 }
  0x8b   : > { %v510_v56 = vadd.f32 %v482_v57, %v419_v51  ;;  %v1989_v45 = vfloor.f32 %v564_v12  ;;  %v517_v59 = vmul.f32 %v1670_v37, %v1615_v35  ;;  %v525_v62 = vmul.f32 %v1661_v5, %v1686_v53 }
  0x8c   : > { %v1469_v28 = vpack.c.bf16 %v496_v26, %v489_v1  ;;  %v626_v11 = vsel %vm591_vm2, %v612_v17, 0.0  ;;  %v689_v25 = vsel %vm661_vm3, %v577_v23, 0.0  ;;  %v531_v43 = vadd.f32 %v524_v55, %v516_v4 }
  0x8d   : > { %v1473_v29 = vpack.c.bf16 %v510_v56, %v503_v2  ;;  %v1998_v10 = vsub.f32 %v564_v12, %v1989_v45  ;;  %v2001_v51 = vadd.f32 1.0, %v1989_v45  ;;  %vm675_vm9 = vcmp.eq.f32.partialorder %v1599_v15, %v647_v21 }
  0x8e   : > { %1470 = vmatprep.subr.bf16.mxu1 %v1469_v28  ;;  %v532_v5 = vadd.f32 %v525_v62, %v517_v59  ;;  %v2010_v26 = vadd.f32 %v689_v25, %v626_v11  ;;  %v633_v57 = vsel %vm598_vm5, %v612_v17, 0.0  ;;  %v696_v56 = vsel %vm668_vm7, %v577_v23, 0.0 }
  0x8f   : > { %1472 = vmatpush3.bf16.msra.mxu1 %v1469_v28  ;;  %v640_v28 = vsel %vm605_vm8, %v612_v17, 0.0  ;;  %vm585_vm11 = vcmp.eq.f32.partialorder %v1593_v8, %v1989_v45  ;;  %v2018_v34 = vsub.f32 1.0, %v1998_v10  ;;  %vm655_vm12 = vcmp.eq.f32.partialorder %v1593_v8, %v2001_v51 }
  0x90   : > { %1475 = vmatprep.subr.msk.bf16.mxu1 %vm1784_vm6, %v1473_v29  ;;  %v703_v50 = vsel %vm675_vm9, %v577_v23, 0.0  ;;  %vm592_vm13 = vcmp.eq.f32.partialorder %v1595_v13, %v1989_v45  ;;  %vm662_vm14 = vcmp.eq.f32.partialorder %v1595_v13, %v2001_v51  ;;  %v540_v60 = vadd.f32 %v1854_v32, %v532_v5 }
  0x91   : > { %vm599_vm15 = vcmp.eq.f32.partialorder %v1597_v14, %v1989_v45  ;;  %vm669_vm0 = vcmp.eq.f32.partialorder %v1597_v14, %v2001_v51  ;;  %v683_v38 = vsel %vm655_vm12, %v1998_v10, 0.0  ;;  %v627_v9 = vsel %vm592_vm13, %v2018_v34, 0.0 }
  0x92   : > { %v634_v61 = vsel %vm599_vm15, %v2018_v34, 0.0  ;;  %v547_v49 = vadd.f32 1.0, %v540_v60 }
  0x93   : > { %1478 = vmatpush3.bf16.msk.msra.mxu1 %vm1784_vm6, %v1473_v29  ;;  %vm584_vm6 = vcmp.eq.f32.partialorder %v1593_v8, %v570_v47  ;;  %v539_v29 = vadd.f32 %v1854_v32, %v531_v43  ;;  %v526_v47 = vmul.f32 %v1869_v7, %v1686_v53 }
  0x94   : > { %v619_v46 = vsel %vm584_vm6, %v612_v17, 0.0  ;;  %v554_v7 = vmul.f32 28.0, %v547_v49 }
  0x95   : > { %v546_v36 = vadd.f32 1.0, %v539_v29 }
  0x96   : > { %1434 = vmatmul.mubr.msk.f32.vlgmr.msra.gmra.mrb[8].mxu1 %vm742_vm4, %v1865_v39  ;;  %v522_v39 = vmul.f32 %v1632_v27, %v1686_v53  ;;  %v1389_v62 = vadd.f32 -1.0, %v554_v7 }
  0x97   : > { %1436 = vmatprep.mubr.msk.f32.mxu1 %vm742_vm4, %v1876_v52  ;;  %v515_v52 = vmul.f32 %v1640_v41, %v1615_v35 }
  0x98   : > { %v529_v31 = vadd.f32 %v522_v39, %v514_v22  ;;  %v2033_v39 = vadd.f32 %v696_v56, %v633_v57 }
  0x9a   : > { %1437 = vmatmul.mubr.msk.f32.gmra.mrb[10].mxu1 %vm742_vm4, %v1899_v20  ;;  %v523_v20 = vmul.f32 %v1626_v18, %v1686_v53  ;;  %v537_v42 = vadd.f32 %v1854_v32, %v529_v31  ;;  %vm654_vm4 = vcmp.eq.f32.partialorder %v1593_v8, %v647_v21  ;;  %v620_v31 = vsel %vm585_vm11, %v2018_v34, 0.0 }
  0x9b   : > { %v682_v30 = vsel %vm654_vm4, %v577_v23, 0.0 }
  0x9c   : > { %v530_v40 = vadd.f32 %v523_v20, %v515_v52  ;;  %v544_v27 = vadd.f32 1.0, %v537_v42  ;;  %v2008_v1 = vadd.f32 %v682_v30, %v619_v46  ;;  %v2043_v20 = vadd.f32 %v703_v50, %v640_v28 }
  0x9d   : > { %v1532_v50 = vmov 1966171168  }
  0x9e   : > { %v538_v48 = vadd.f32 %v1854_v32, %v530_v40  ;;  %v551_v41 = vmul.f32 28.0, %v544_v27  ;;  %v690_v40 = vsel %vm662_vm14, %v1998_v10, 0.0  ;;  %v518_v27 = vmul.f32 %v1878_v54, %v1615_v35 }
  0x9f   : > { %v718_v17 = vadd.f32 %v690_v40, %v627_v9  ;;  %v1238_v60 = vunpack.c.l.s4 %v1532_v50 }
  0xa0   : > { %v545_v63 = vadd.f32 1.0, %v538_v48  ;;  %v1386_v58 = vadd.f32 -1.0, %v551_v41  ;;  %v697_v48 = vsel %vm669_vm0, %v1998_v10, 0.0  ;;  %v553_v41 = vmul.f32 28.0, %v546_v36 }
  0xa1   : > { %v533_v23 = vadd.f32 %v526_v47, %v518_v27  ;;  %v2088_v55 = vadd.f32 %v697_v48, %v634_v61  ;;  %vm606_vm0 = vcmp.eq.f32.partialorder %v1599_v15, %v1989_v45 }
  0xa2   : > { %v552_v18 = vmul.f32 28.0, %v545_v63  ;;  %v565_v24 = vmul.f32 0.5, %v1386_v58  ;;  %v711_v63 = vadd.f32 %v683_v38, %v620_v31  ;;  %v1388_v58 = vadd.f32 -1.0, %v553_v41 }
  0xa3   : > { %v541_v25 = vadd.f32 %v1854_v32, %v533_v23  ;;  %v568_v32 = vmul.f32 0.5, %v1389_v62  ;;  %v641_v27 = vsel %vm606_vm0, %v2018_v34, 0.0  ;;  %v1239_v34 = vunpack.c.0.s8 %v1238_v60 }
  0xa4   : > { %v1387_v16 = vadd.f32 -1.0, %v552_v18  ;;  %v2005_v37 = vfloor.f32 %v565_v24  ;;  %v567_v5 = vmul.f32 0.5, %v1388_v58 }
  0xa5   : > { %v548_v38 = vadd.f32 1.0, %v541_v25 }
  0xa6   : > { %v566_v19 = vmul.f32 0.5, %v1387_v16  ;;  %v2027_v44 = vsub.f32 %v565_v24, %v2005_v37  ;;  %v2031_v22 = vadd.f32 1.0, %v2005_v37  ;;  %vm586_vm4 = vcmp.eq.f32.partialorder %v1593_v8, %v2005_v37 }
  0xa7   : > { %vm593_vm5 = vcmp.eq.f32.partialorder %v1595_v13, %v2005_v37  ;;  %vm600_vm9 = vcmp.eq.f32.partialorder %v1597_v14, %v2005_v37  ;;  %vm607_vm14 = vcmp.eq.f32.partialorder %v1599_v15, %v2005_v37  ;;  %v2114_v61 = vfloor.f32 %v567_v5 }
  0xa8   : > { %v2012_v2 = vfloor.f32 %v566_v19  ;;  %v614_v42 = vsub.f32 1.0, %v2027_v44  ;;  %vm656_vm1 = vcmp.eq.f32.partialorder %v1593_v8, %v2031_v22  ;;  %vm663_vm6 = vcmp.eq.f32.partialorder %v1595_v13, %v2031_v22 }
  0xa9   : > { %v684_v35 = vsel %vm656_vm1, %v2027_v44, 0.0  ;;  %v691_v53 = vsel %vm663_vm6, %v2027_v44, 0.0  ;;  %vm670_vm11 = vcmp.eq.f32.partialorder %v1597_v14, %v2031_v22  ;;  %vm677_vm15 = vcmp.eq.f32.partialorder %v1599_v15, %v2031_v22 }
  0xaa   : > { %v2041_v52 = vsub.f32 %v566_v19, %v2012_v2  ;;  %v2052_v33 = vadd.f32 1.0, %v2012_v2  ;;  %vm587_vm2 = vcmp.eq.f32.partialorder %v1593_v8, %v2012_v2  ;;  %vm594_vm7 = vcmp.eq.f32.partialorder %v1595_v13, %v2012_v2 }
  0xab   : > { %v621_v54 = vsel %vm586_vm4, %v614_v42, 0.0  ;;  %v628_v12 = vsel %vm593_vm5, %v614_v42, 0.0  ;;  %vm601_vm12 = vcmp.eq.f32.partialorder %v1597_v14, %v2012_v2  ;;  %v635_v24 = vsel %vm600_vm9, %v614_v42, 0.0 }
  0xac   : > { %v615_v6 = vsub.f32 1.0, %v2041_v52  ;;  %vm657_vm3 = vcmp.eq.f32.partialorder %v1593_v8, %v2052_v33  ;;  %vm664_vm8 = vcmp.eq.f32.partialorder %v1595_v13, %v2052_v33  ;;  %v698_v59 = vsel %vm670_vm11, %v2027_v44, 0.0 }
  0xad   : > { %v685_v18 = vsel %vm657_vm3, %v2041_v52, 0.0  ;;  %v692_v4 = vsel %vm664_vm8, %v2041_v52, 0.0  ;;  %v712_v46 = vadd.f32 %v684_v35, %v621_v54  ;;  %v719_v11 = vadd.f32 %v691_v53, %v628_v12 }
  0xae   : > { %v622_v21 = vsel %vm587_vm2, %v615_v6, 0.0  ;;  %v629_v16 = vsel %vm594_vm7, %v615_v6, 0.0  ;;  %v636_v43 = vsel %vm601_vm12, %v615_v6, 0.0  ;;  %v726_v57 = vadd.f32 %v698_v59, %v635_v24 }
  0xaf   : > { %v713_v30 = vadd.f32 %v685_v18, %v622_v21  ;;  %v720_v19 = vadd.f32 %v692_v4, %v629_v16  ;;  %vm671_vm13 = vcmp.eq.f32.partialorder %v1597_v14, %v2052_v33  ;;  %vm676_vm1 = vcmp.eq.f32.partialorder %v1599_v15, %v2001_v51 }
  0xb0   : > { %vm608_vm6 = vcmp.eq.f32.partialorder %v1599_v15, %v2012_v2  ;;  %vm678_vm4 = vcmp.eq.f32.partialorder %v1599_v15, %v2052_v33  ;;  %v699_v9 = vsel %vm671_vm13, %v2041_v52, 0.0  ;;  %v642_v40 = vsel %vm607_vm14, %v614_v42, 0.0 }
  0xb1   : > { %v705_v49 = vsel %vm677_vm15, %v2027_v44, 0.0  ;;  %v704_v37 = vsel %vm676_vm1, %v1998_v10, 0.0  ;;  %v643_v47 = vsel %vm608_vm6, %v615_v6, 0.0  ;;  %v2132_v22 = vfloor.f32 %v568_v32 }
  0xb2   : > { %v727_v45 = vadd.f32 %v699_v9, %v636_v43  ;;  %v555_v35 = vmul.f32 28.0, %v548_v38  ;;  %v733_v51 = vadd.f32 %v705_v49, %v642_v40  ;;  %v732_v10 = vadd.f32 %v704_v37, %v641_v27 }
  0xb3   : > { %v2136_v54 = vsub.f32 %v567_v5, %v2114_v61  ;;  %v2142_v58 = vsub.f32 %v568_v32, %v2132_v22  ;;  %v2149_v59 = vsub.s32 %v1239_v34, %v1586_v3  ;;  %vm588_vm2 = vcmp.eq.f32.partialorder %v1593_v8, %v2114_v61 }
  0xb4   : > { %v1390_v62 = vadd.f32 -1.0, %v555_v35  ;;  %vm595_vm5 = vcmp.eq.f32.partialorder %v1595_v13, %v2114_v61  ;;  %vm589_vm8 = vcmp.eq.f32.partialorder %v1593_v8, %v2132_v22  ;;  %vm596_vm11 = vcmp.eq.f32.partialorder %v1595_v13, %v2132_v22 }
  0xb5   : > { %v2155_v25 = vsub.f32 1.0, %v2136_v54  ;;  %vm602_vm13 = vcmp.eq.f32.partialorder %v1597_v14, %v2114_v61  ;;  %vm603_vm15 = vcmp.eq.f32.partialorder %v1597_v14, %v2132_v22  ;;  %vm609_vm1 = vcmp.eq.f32.partialorder %v1599_v15, %v2114_v61 }
 0x137   : > { %v843_v56 = vpop.f32.mrb[0].mxu0 }
 0x138   : > { %v1129_v28 = vmul.f32 %v843_v56, %v2008_v1  ;;  %v845_v29 = vpop.f32.mrb[1].mxu0  ;;  %v2162_v56 = vsub.f32 1.0, %v2142_v58 }
 0x139   : > { %v1130_v36 = vmul.f32 %v845_v29, %v711_v63  ;;  %v706_v63 = vsel %vm678_vm4, %v2041_v52, 0.0  ;;  %v2139_v52 = vadd.f32 1.0, %v2114_v61  ;;  %v2169_v29 = vmul.f32 0.5, %v1390_v62 }
 0x13a   : > { %v932_v31 = vpop.f32.mrb[0].mxu1  ;;  %v734_v21 = vadd.f32 %v706_v63, %v643_v47  ;;  %vm610_vm4 = vcmp.eq.f32.partialorder %v1599_v15, %v2132_v22  ;;  %v644_v61 = vsel %vm609_vm1, %v2155_v25, 0.0 }
 0x13b   : > { %v1131_v1 = vmul.f32 %v932_v31, %v712_v46  ;;  %v934_v48 = vpop.f32.mrb[1].mxu1  ;;  %v849_v33 = vpop.f32.mrb[2].mxu0  ;;  %vm658_vm3 = vcmp.eq.f32.partialorder %v1593_v8, %v2139_v52  ;;  %vm665_vm9 = vcmp.eq.f32.partialorder %v1595_v13, %v2139_v52  ;;  %vm672_vm14 = vcmp.eq.f32.partialorder %v1597_v14, %v2139_v52 }
 0x13c   : > { %v1132_v42 = vmul.f32 %v934_v48, %v713_v30  ;;  %v1136_v44 = vmul.f32 %v849_v33, %v2010_v26  ;;  %v851_v41 = vpop.f32.mrb[3].mxu0  ;;  %v686_v31 = vsel %vm658_vm3, %v2136_v54, 0.0  ;;  %v630_v48 = vsel %vm595_vm5, %v2155_v25, 0.0 }
 0x13d   : > { %v1137_v53 = vmul.f32 %v851_v41, %v718_v17  ;;  %v2145_v17 = vadd.f32 1.0, %v2132_v22  ;;  %v624_v33 = vsel %vm589_vm8, %v2162_v56, 0.0  ;;  %vm679_vm6 = vcmp.eq.f32.partialorder %v1599_v15, %v2139_v52 }
 0x13e   : > { %v938_v7 = vpop.f32.mrb[2].mxu1  ;;  %v1157_v23 = vadd.f32 %v1136_v44, %v1129_v28  ;;  %v707_v52 = vsel %vm679_vm6, %v2136_v54, 0.0 }
 0x13f   : > { %v1138_v2 = vmul.f32 %v938_v7, %v719_v11  ;;  %v940_v6 = vpop.f32.mrb[3].mxu1  ;;  %v1167_v18 = vadd.f32 %v1137_v53, %v1130_v36  ;;  %v855_v26 = vpop.f32.mrb[4].mxu0  ;;  %vm659_vm7 = vcmp.eq.f32.partialorder %v1593_v8, %v2145_v17  ;;  %v623_v36 = vsel %vm588_vm2, %v2155_v25, 0.0 }
 0x140   : > { %v1139_v12 = vmul.f32 %v940_v6, %v720_v19  ;;  %v1143_v16 = vmul.f32 %v855_v26, %v2033_v39  ;;  %v857_v24 = vpop.f32.mrb[5].mxu0  ;;  %vm666_vm12 = vcmp.eq.f32.partialorder %v1595_v13, %v2145_v17  ;;  %v714_v35 = vadd.f32 %v686_v31, %v623_v36 }
 0x141   : > { %v1177_v4 = vadd.f32 %v1138_v2, %v1131_v1  ;;  %v1144_v46 = vmul.f32 %v857_v24, %v2088_v55  ;;  %v687_v1 = vsel %vm659_vm7, %v2142_v58, 0.0  ;;  %vm673_vm0 = vcmp.eq.f32.partialorder %v1597_v14, %v2145_v17 }
 0x142   : > { %v1187_v30 = vadd.f32 %v1139_v12, %v1132_v42  ;;  %v944_v11 = vpop.f32.mrb[4].mxu1  ;;  %v1158_v19 = vadd.f32 %v1157_v23, %v1143_v16  ;;  %v715_v53 = vadd.f32 %v687_v1, %v624_v33  ;;  %v631_v23 = vsel %vm596_vm11, %v2162_v56, 0.0 }
 0x143   : > { %v1145_v43 = vmul.f32 %v944_v11, %v726_v57  ;;  %v946_v5 = vpop.f32.mrb[5].mxu1  ;;  %v1168_v3 = vadd.f32 %v1167_v18, %v1144_v46  ;;  %v861_v55 = vpop.f32.mrb[6].mxu0  ;;  %vm680_vm2 = vcmp.eq.f32.partialorder %v1599_v15, %v2145_v17 }
 0x144   : > { %v1146_v39 = vmul.f32 %v946_v5, %v727_v45  ;;  %v1150_v28 = vmul.f32 %v861_v55, %v2043_v20  ;;  %v863_v57 = vpop.f32.mrb[7].mxu0  ;;  %v700_v5 = vsel %vm672_vm14, %v2136_v54, 0.0  ;;  %v708_v22 = vsel %vm680_vm2, %v2142_v58, 0.0 }
 0x145   : > { %v1178_v32 = vadd.f32 %v1177_v4, %v1145_v43  ;;  %v1151_v38 = vmul.f32 %v863_v57, %v732_v10  ;;  %v693_v10 = vsel %vm665_vm9, %v2136_v54, 0.0  ;;  %v701_v57 = vsel %vm673_vm0, %v2142_v58, 0.0 }
 0x146   : > { %v1188_v50 = vadd.f32 %v1187_v30, %v1146_v39  ;;  %v950_v60 = vpop.f32.mrb[6].mxu1  ;;  %v1159_v20 = vsel %vm755_vm10, %v1150_v28, 0.0  ;;  %v721_v4 = vadd.f32 %v693_v10, %v630_v48  ;;  %v637_v30 = vsel %vm602_vm13, %v2155_v25, 0.0 }
 0x147   : > { %v1152_v9 = vmul.f32 %v950_v60, %v733_v51  ;;  %v952_v40 = vpop.f32.mrb[7].mxu1  ;;  %v1160_v49 = vadd.f32 %v1159_v20, %v1158_v19  ;;  %v1169_v27 = vsel %vm755_vm10, %v1151_v38, 0.0  ;;  %v728_v20 = vadd.f32 %v700_v5, %v637_v30 }
 0x148   : > { %v1153_v37 = vmul.f32 %v952_v40, %v734_v21  ;;  %v1170_v47 = vadd.f32 %v1169_v27, %v1168_v3  ;;  %v694_v21 = vsel %vm666_vm12, %v2142_v58, 0.0  ;;  %v638_v3 = vsel %vm603_vm15, %v2162_v56, 0.0 }
 0x149   : > { %v1179_v42 = vsel %vm755_vm10, %v1152_v9, 0.0  ;;  %v1161_v63 = vrot.slane %v1160_v49, 4  ;;  %v722_v46 = vadd.f32 %v694_v21, %v631_v23 }
 0x14a   : > { %v1180_v44 = vadd.f32 %v1179_v42, %v1178_v32  ;;  %v1189_v41 = vsel %vm755_vm10, %v1153_v37, 0.0  ;;  %v1171_v45 = vrot.slane %v1170_v47, 4  ;;  %v729_v37 = vadd.f32 %v701_v57, %v638_v3 }
 0x14b   : > { %v1190_v34 = vadd.f32 %v1189_v41, %v1188_v50  ;;  %v1162_v7 = vadd.f32 %v1161_v63, %v1160_v49  ;;  %v576_v63 = vfloor.f32 %v2169_v29  ;;  %v645_v41 = vsel %vm610_vm4, %v2162_v56, 0.0 }
 0x14c   : > { %v1181_v51 = vrot.slane %v1180_v44, 4  ;;  %v1172_v2 = vadd.f32 %v1171_v45, %v1170_v47  ;;  %v736_v10 = vadd.f32 %v708_v22, %v645_v41 }
 0x14d   : > { %v1191_v6 = vrot.slane %v1190_v34, 4  ;;  %v1163_v18 = vrot.slane %v1162_v7, 2  ;;  %v583_v23 = vsub.f32 %v2169_v29, %v576_v63  ;;  %v653_v56 = vadd.f32 1.0, %v576_v63 }
 0x14e   : > { %v1182_v26 = vadd.f32 %v1181_v51, %v1180_v44  ;;  %v1173_v12 = vrot.slane %v1172_v2, 2  ;;  %vm597_vm3 = vcmp.eq.f32.partialorder %v1595_v13, %v576_v63  ;;  %vm590_vm7 = vcmp.eq.f32.partialorder %v1593_v8, %v576_v63 }
 0x14f   : > { %v1192_v16 = vadd.f32 %v1191_v6, %v1190_v34  ;;  %v1164_v24 = vadd.f32 %v1163_v18, %v1162_v7  ;;  %v735_v7 = vadd.f32 %v707_v52, %v644_v61  ;;  %vm667_vm5 = vcmp.eq.f32.partialorder %v1595_v13, %v653_v56 }
 0x150   : > { %v1183_v62 = vrot.slane %v1182_v26, 2  ;;  %v1174_v11 = vadd.f32 %v1173_v12, %v1172_v2  ;;  %v1021_v43 = vpop.f32.mrb[8].mxu0  ;;  %vm660_vm8 = vcmp.eq.f32.partialorder %v1593_v8, %v653_v56  ;;  %vm611_vm9 = vcmp.eq.f32.partialorder %v1599_v15, %v576_v63 }
 0x151   : > { %v1193_v19 = vrot.slane %v1192_v16, 2  ;;  %v1165_v39 = vrot.slane %v1164_v24, 1  ;;  %v1133_v32 = vmul.f32 %v1021_v43, %v714_v35  ;;  %v1023_v28 = vpop.f32.mrb[9].mxu0  ;;  %v688_v5 = vsel %vm660_vm8, %v583_v23, 0.0 }
 0x152   : > { %v1184_v55 = vadd.f32 %v1183_v62, %v1182_v26  ;;  %v1175_v50 = vrot.slane %v1174_v11, 1  ;;  %v1134_v38 = vmul.f32 %v1023_v28, %v715_v53  ;;  %vm681_vm11 = vcmp.eq.f32.partialorder %v1599_v15, %v653_v56 }
 0x153   : > { %v1194_v60 = vadd.f32 %v1193_v19, %v1192_v16  ;;  %v1166_v36 = vadd.f32 %v1165_v39, %v1164_v24  ;;  %v618_v16 = vsub.f32 1.0, %v583_v23  ;;  %vm604_vm12 = vcmp.eq.f32.partialorder %v1597_v14, %v576_v63 }
 0x154   : > { %v1185_v31 = vrot.slane %v1184_v55, 1  ;;  %v1176_v9 = vadd.f32 %v1175_v50, %v1174_v11  ;;  %v1027_v1 = vpop.f32.mrb[10].mxu0  ;;  %v695_v11 = vsel %vm667_vm5, %v583_v23, 0.0  ;;  %vm674_vm13 = vcmp.eq.f32.partialorder %v1597_v14, %v653_v56 }
 0x155   : > { %v1195_v40 = vrot.slane %v1194_v60, 1  ;;  %v1140_v49 = vmul.f32 %v1027_v1, %v721_v4  ;;  %v1029_v27 = vpop.f32.mrb[11].mxu0  ;;  %v632_v30 = vsel %vm597_vm3, %v618_v16, 0.0  ;;  %v625_v19 = vsel %vm590_vm7, %v618_v16, 0.0 }
 0x156   : > { %v1186_v48 = vadd.f32 %v1185_v31, %v1184_v55  ;;  %v1234_v33 = vcombine.low %v1166_v36, %v1176_v9  ;;  %v1141_v47 = vmul.f32 %v1029_v27, %v722_v46  ;;  %v723_v39 = vadd.f32 %v695_v11, %v632_v30 }
 0x157   : > { %v1196_v42 = vadd.f32 %v1195_v40, %v1194_v60  ;;  %v1197_v44 = vadd.f32 %v1140_v49, %v1133_v32  ;;  %v716_v8 = vadd.f32 %v688_v5, %v625_v19  ;;  %v646_v32 = vsel %vm611_vm9, %v618_v16, 0.0 }
 0x158   : > { %v2224_v17 = vrot.slane %v1234_v33, %v2149_v59  ;;  %v1207_v34 = vadd.f32 %v1141_v47, %v1134_v38  ;;  %v1033_v35 = vpop.f32.mrb[12].mxu0  ;;  %v709_v28 = vsel %vm681_vm11, %v583_v23, 0.0  ;;  %v639_v50 = vsel %vm604_vm12, %v618_v16, 0.0 }
 0x159   : > { %v1235_v45 = vcombine.low %v1186_v48, %v1196_v42  ;;  %v1147_v53 = vmul.f32 %v1033_v35, %v728_v20  ;;  %v1035_v25 = vpop.f32.mrb[13].mxu0  ;;  %v702_v60 = vsel %vm674_vm13, %v583_v23, 0.0  ;;  %v737_v15 = vadd.f32 %v709_v28, %v646_v32 }
 0x15a   : > { %v1148_v54 = vmul.f32 %v1035_v25, %v729_v37  ;;  %v730_v48 = vadd.f32 %v702_v60, %v639_v50 }
 0x15b   : > { %v2227_v51 = vrot.slane %v1235_v45, %v2149_v59  ;;  %v1198_v2 = vadd.f32 %v1197_v44, %v1147_v53 }
 0x15c   : > { %v1208_v6 = vadd.f32 %v1207_v34, %v1148_v54  ;;  %v1039_v21 = vpop.f32.mrb[14].mxu0 }
 0x15d   : > { %v1265_v58 = vcombine.low %v2224_v17, %v2227_v51  ;;  %v1154_v18 = vmul.f32 %v1039_v21, %v735_v7  ;;  %v1041_v26 = vpop.f32.mrb[15].mxu0 }
 0x15e   : > { %v1155_v12 = vmul.f32 %v1041_v26, %v736_v10 }
 0x15f   : > { %v1199_v4 = vsel %vm755_vm10, %v1154_v18, 0.0  ;;  %v1273_v23 = vrot.slane %v1265_v58, %v2149_v59 }
 0x160   : > { %v1200_v29 = vadd.f32 %v1199_v4, %v1198_v2  ;;  %v1209_v24 = vsel %vm755_vm10, %v1155_v12, 0.0 }
 0x161   : > { %v1210_v62 = vadd.f32 %v1209_v24, %v1208_v6 }
 0x162   : > { %v1201_v46 = vrot.slane %v1200_v29, 4 }
 0x163   : > { %v1211_v43 = vrot.slane %v1210_v62, 4 }
 0x164   : > { %v1202_v3 = vadd.f32 %v1201_v46, %v1200_v29 }
 0x165   : > { %v1212_v13 = vadd.f32 %v1211_v43, %v1210_v62 }
 0x166   : > { %v1203_v55 = vrot.slane %v1202_v3, 2 }
 0x167   : > { %v1213_v57 = vrot.slane %v1212_v13, 2 }
 0x168   : > { %v1204_v38 = vadd.f32 %v1203_v55, %v1202_v3 }
 0x169   : > { %v1435_v36 = vpop.f32.mrb[8].mxu1  ;;  %v1214_v31 = vadd.f32 %v1213_v57, %v1212_v13 }
 0x16a   : > { %v1142_v20 = vmul.f32 %v1435_v36, %v723_v39  ;;  %v1110_v9 = vpop.f32.mrb[9].mxu1  ;;  %v1205_v40 = vrot.slane %v1204_v38, 1 }
 0x16b   : > { %v1135_v1 = vmul.f32 %v1110_v9, %v716_v8  ;;  %v1215_v49 = vrot.slane %v1214_v31, 1 }
 0x16c   : > { %v1206_v14 = vadd.f32 %v1205_v40, %v1204_v38 }
 0x16d   : > { %v1217_v27 = vadd.f32 %v1142_v20, %v1135_v1  ;;  %v1438_v37 = vpop.f32.mrb[10].mxu1  ;;  %v1216_v61 = vadd.f32 %v1215_v49, %v1214_v31 }
 0x16e   : > { %v1156_v33 = vmul.f32 %v1438_v37, %v737_v15  ;;  %v1120_v42 = vpop.f32.mrb[11].mxu1 }
 0x16f   : > { %v1149_v47 = vmul.f32 %v1120_v42, %v730_v48  ;;  %v1236_v52 = vcombine.low %v1206_v14, %v1216_v61 }
 0x170   : > { %v1219_v63 = vsel %vm755_vm10, %v1156_v33, 0.0  ;;  %vm1285_vm10 = vcmp.lt.s32.totalorder %v168_v0, 896 }
 0x171   : > { %v1218_v44 = vadd.f32 %v1217_v27, %v1149_v47  ;;  %v1257_v7 = vrot.slane %v1236_v52, %v2149_v59 }
 0x173   : > { %v1220_v41 = vadd.f32 %v1219_v63, %v1218_v44 }
 0x175   : > { %v1221_v22 = vrot.slane %v1220_v41, 4 }
 0x177   : > { %v1222_v45 = vadd.f32 %v1221_v22, %v1220_v41 }
 0x179   : > { %v1223_v34 = vrot.slane %v1222_v45, 2 }
 0x17b   : > { %v1224_v35 = vadd.f32 %v1223_v34, %v1222_v45 }
 0x17d   : > { %v1225_v53 = vrot.slane %v1224_v35, 1 }
 0x17f   : > { %v1226_v25 = vadd.f32 %v1225_v53, %v1224_v35 }
 0x181   : > { %v1264_v54 = vrot.slane %v1226_v25, %v2149_v59 }
 0x183   : > { %v1266_v10 = vcombine.low %v1257_v7, %v1264_v54 }
 0x185   : > { %v1280_v2 = vrot.slane %v1266_v10, %v2149_v59 }
 0x187   : > { %v1281_v56 = vcombine.low %v1273_v23, %v1280_v2 }
 0x189   : > { %1287 = vst.msk [vmem:[%s155_s8] sm:$0x7f] %vm1285_vm10, %v1281_v56 }
 0x18a PF: > { %s13_s9 = sadd.s32 1, %s1527_s9  }
 0x18b   : > { %p10_p1 = scmp.ge.s32.totalorder %s13_s9, 4  }
 0x18d   :  { %12 = sbr.rel (!%p10_p1) target bundleno = 1 (0x1), region = 63 }
 0x194   :  { %1307 = vsyncpa [#allocation3], 1 }
 0x195   :  { %1309 = vsyncpa [#allocation3 + $0x1], 1 }

// kernel: forward.11
= control target key start
LH: loop header
LB: loop body
LE: loop exit
PB: predicated region body
PF: predicated region fallthrough
CT: control target
= control target key end

     0   :  { %s838_s12 = smov 0   ;;  %s840_s13 = smov 0   ;;  %s951_s0 = inlined_call_operand.vmem [shape: bf16[4,25,512], index: 0, kind: input, shape index: {}]   ;;  %s952_s1 = inlined_call_operand.vmem [shape: bf16[10,25], index: 1, kind: input, shape index: {}]   ;;  %s953_s2 = inlined_call_operand.vmem [shape: f32[10,1], index: 2, kind: input, shape index: {}]   ;;  %s954_s3 = inlined_call_operand.vmem [shape: f32[10,512], index: 3, kind: output, shape index: {}]  }
   0x1   :  { %s842_s14 = smov 0  }
   0x2 LB: > { %s690_s15 = sadd.s32 4294967295, %s814_s14   ;;  %s855_s16 = sadd.s32 1, %s814_s14   ;;  %s814_s14 = sphi %s842_s14, %s958_s14   ;;  %s810_s13 = sphi %s840_s13, %s957_s13   ;;  %s806_s12 = sphi %s838_s12, %s956_s12  }
   0x3   : > { %s17_s17 = ssub.s32 %s814_s14, %s855_s16  ;;  %s20_s18 = sadd.s32 1, %s810_s13 }
   0x4   : > { %p18_p0 = scmp.eq.s32.totalorder %s17_s17, 0  ;;  %p27_p1 = scmp.ne.s32.totalorder %s810_s13, %s806_s12 }
   0x5   : > { %p28_p2 = scmp.eq.s32.totalorder %s814_s14, 0  ;;  %p99_p3 = scmp.eq.s32.totalorder %s690_s15, 1 }
   0x6   : > { %s866_s19 = scalar_select %p18_p0, %s810_s13, %s20_s18  }
   0x7   : > { %p29_p4 = por %p28_p2, %p27_p1  ;;  %p868_p5 = por %p99_p3, %p27_p1 }
   0x8   : > { %p693_p6 = scmp.ge.s32.totalorder %s814_s14, 2 }
   0xa   : > { %127 = sbr.rel (%p693_p6) target bundleno = 29 (0x1d), region = 24 }
  0x11   : > { %130 = sbr.rel (!%p29_p4) target bundleno = 29 (0x1d), region = 28  ;;  %s132_s21 = sand.u32 (%p29_p4), 1, %s810_s13  }
  0x12   : > { %s738_s22 = sshll.u32 (%p29_p4), %s814_s14, 3  ;;  %s694_s23 = sshll.u32 (%p29_p4), %s132_s21, 7 }
  0x13   : > { %s878_s26 = scalar_lea.vmem (%p29_p4), %s951_s0, %s738_s22  ;;  %s134_s27 = scalar_lea.vmem (%p29_p4), [#allocation2], %s694_s23 }
  0x14   : > { %v195_v0 = vld [vmem:[%s878_s26] sm:$0xff] (%p29_p4)  ;;  %v197_v1 = vld [vmem:[%s878_s26 + $0x10] sm:$0xff] (%p29_p4) }
  0x15   : > { %v199_v2 = vld [vmem:[%s878_s26 + $0x20] sm:$0xff] (%p29_p4)  ;;  %196 = vst [vmem:[%s134_s27] sm:$0xff] (%p29_p4), %v195_v0  ;;  %198 = vst [vmem:[%s134_s27 + $0x8] sm:$0xff] (%p29_p4), %v197_v1  ;;  %v201_v3 = vld [vmem:[%s878_s26 + $0x30] sm:$0xff] (%p29_p4) }
  0x16   : > { %200 = vst [vmem:[%s134_s27 + $0x10] sm:$0xff] (%p29_p4), %v199_v2  ;;  %v203_v4 = vld [vmem:[%s878_s26 + $0x40] sm:$0xff] (%p29_p4)  ;;  %v205_v5 = vld [vmem:[%s878_s26 + $0x50] sm:$0xff] (%p29_p4)  ;;  %202 = vst [vmem:[%s134_s27 + $0x18] sm:$0xff] (%p29_p4), %v201_v3 }
  0x17   : > { %204 = vst [vmem:[%s134_s27 + $0x20] sm:$0xff] (%p29_p4), %v203_v4  ;;  %206 = vst [vmem:[%s134_s27 + $0x28] sm:$0xff] (%p29_p4), %v205_v5  ;;  %v207_v6 = vld [vmem:[%s878_s26 + $0x60] sm:$0xff] (%p29_p4)  ;;  %v209_v7 = vld [vmem:[%s878_s26 + $0x70] sm:$0xff] (%p29_p4) }
  0x18   : > { %v211_v8 = vld [vmem:[%s878_s26 + $0x80] sm:$0xff]  ;;  %208 = vst [vmem:[%s134_s27 + $0x30] sm:$0xff] %v207_v6  ;;  %210 = vst [vmem:[%s134_s27 + $0x38] sm:$0xff] %v209_v7  ;;  %v213_v9 = vld [vmem:[%s878_s26 + $0x90] sm:$0xff] }
  0x19   : > { %212 = vst [vmem:[%s134_s27 + $0x40] sm:$0xff] %v211_v8  ;;  %v215_v10 = vld [vmem:[%s878_s26 + $0xa0] sm:$0xff]  ;;  %v217_v11 = vld [vmem:[%s878_s26 + $0xb0] sm:$0xff]  ;;  %214 = vst [vmem:[%s134_s27 + $0x48] sm:$0xff] %v213_v9 }
  0x1a   : > { %216 = vst [vmem:[%s134_s27 + $0x50] sm:$0xff] %v215_v10  ;;  %218 = vst [vmem:[%s134_s27 + $0x58] sm:$0xff] %v217_v11  ;;  %v219_v12 = vld [vmem:[%s878_s26 + $0xc0] sm:$0xff]  ;;  %v221_v13 = vld [vmem:[%s878_s26 + $0xd0] sm:$0xff] }
  0x1b   : > { %v223_v14 = vld [vmem:[%s878_s26 + $0xe0] sm:$0xff]  ;;  %220 = vst [vmem:[%s134_s27 + $0x60] sm:$0xff] %v219_v12  ;;  %222 = vst [vmem:[%s134_s27 + $0x68] sm:$0xff] %v221_v13  ;;  %v225_v15 = vld [vmem:[%s878_s26 + $0xf0] sm:$0xff] }
  0x1c   : > { %224 = vst [vmem:[%s134_s27 + $0x70] sm:$0xff] %v223_v14  ;;  %226 = vst [vmem:[%s134_s27 + $0x78] sm:$0xff] %v225_v15 }
  0x1d PF: > { %p697_p7 = scmp.ge.s32.totalorder %s814_s14, 1  ;;  %p231_p8 = scmp.lt.s32.totalorder %s814_s14, 3 }
  0x1f   : > { %p232_p9 = pnand %p697_p7, %p231_p8 }
  0x20   : > { %s238_s28 = sand.u32 (!%p232_p9), 1, %s806_s12   ;;  %vm296_vm0 = vcmask (!%p232_p9), 1043456   ;;  %v577_v16 = vld [vmem:[%s953_s2] sm:$0xff] (!%p232_p9)  ;;  %v816_v17 = vmov (!%p232_p9), 0   ;;  %vm297_vm1 = vcmask (!%p232_p9), 1044480   ;;  %v817_v18 = vmov (!%p232_p9), 65535  }
  0x21   : > { %235 = sbr.rel (%p232_p9) target bundleno = 284 (0x11c), region = 66  ;;  %s698_s4 = sshll.u32 (!%p232_p9), %s238_s28, 7  ;;  %338 = vmatprep.mubr.bf16.mxu0 (!%p232_p9), %v816_v17  ;;  %410 = vmatprep.mubr.bf16.mxu1 (!%p232_p9), %v816_v17  ;;  %v298_v19 = vsel (!%p232_p9), %vm296_vm0, 4294967295, %v817_v18  ;;  %v779_v31 = vld [vmem:[%s952_s1] sm:$0x1f] (!%p232_p9)   ;;  %vm292_vm2 = vcmask (!%p232_p9), 203776  }
  0x22   : > { %766 = vset.pattern.permute.xlu0 (!%p232_p9), %v816_v17  ;;  %s904_s5 = scalar_lea.vmem (!%p232_p9), [#allocation2], %s698_s4  ;;  %v299_v24 = vsel (!%p232_p9), %vm297_vm1, %v298_v19, 0  ;;  %v578_v46 = vld [vmem:[%s953_s2 + $0x8] sm:$0x3] (!%p232_p9)  ;;  %s699_s10 = sshll.u32 (!%p232_p9), %s238_s28, 5 }
  0x23   : > { %v767_v20 = vld [vmem:[%s904_s5 + $0x4] ss:$8 sps:$4 sm:$0xff] (!%p232_p9)   ;;  %581 = vperm.xlu0 (!%p232_p9), %766, %v577_v16   ;;  %v771_v22 = vld [vmem:[%s904_s5] ss:$8 sps:$4 sm:$0xff] (!%p232_p9)   ;;  %s259_s11 = scalar_lea.vmem (!%p232_p9), [#allocation3], %s699_s10 }
  0x24   : > { %v769_v21 = vld [vmem:[%s904_s5 + $0x24] ss:$8 sps:$4 sm:$0xff] (!%p232_p9)   ;;  %306 = vmatprep.subr.bf16.mxu0 (!%p232_p9), %v767_v20  ;;  %v772_v23 = vld [vmem:[%s904_s5 + $0x20] ss:$8 sps:$4 sm:$0xff] (!%p232_p9)  }
  0x25   : > { %378 = vmatprep.subr.bf16.mxu1 (!%p232_p9), %v769_v21  ;;  %v773_v25 = vld [vmem:[%s904_s5 + $0x14] ss:$8 sps:$4 sm:$0x1f] (!%p232_p9)   ;;  %307 = vmatpush1.bf16.msra.mxu0 (!%p232_p9), %v771_v22  ;;  %v777_v28 = vld [vmem:[%s904_s5 + $0x10] ss:$8 sps:$4 sm:$0x1f] (!%p232_p9)  }
  0x26   : > { %379 = vmatpush1.bf16.msra.mxu1 (!%p232_p9), %v772_v23  ;;  %v775_v26 = vld [vmem:[%s904_s5 + $0x34] ss:$8 sps:$4 sm:$0x1f] (!%p232_p9)   ;;  %v304_v27 = vand.u32 (!%p232_p9), %v773_v25, %v299_v24  ;;  %v778_v29 = vld [vmem:[%s904_s5 + $0x30] ss:$8 sps:$4 sm:$0x1f] (!%p232_p9)   ;;  %v301_v33 = vand.u32 (!%p232_p9), %v777_v28, %v299_v24 }
  0x27   : > { %v376_v30 = vand.u32 (!%p232_p9), %v775_v26, %v299_v24  ;;  %v782_v32 = vld [vmem:[%s904_s5 + $0x44] ss:$8 sps:$4 sm:$0xff] (!%p232_p9)   ;;  %v373_v34 = vand.u32 (!%p232_p9), %v778_v29, %v299_v24  ;;  %v780_v35 = vld [vmem:[%s904_s5 + $0x40] ss:$8 sps:$4 sm:$0xff] (!%p232_p9)   ;;  %586 = vperm.xlu0 (!%p232_p9), %766, %v578_v46  }
  0x28   : > { %308 = vmatprep.subr.bf16.mxu0 %v304_v27  ;;  %v783_v36 = vld [vmem:[%s904_s5 + $0x60] ss:$8 sps:$4 sm:$0xff]   ;;  %v785_v37 = vld [vmem:[%s904_s5 + $0x64] ss:$8 sps:$4 sm:$0xff]   ;;  %s739_s12 = sshll.u32 (%p868_p5), %s690_s15, 4 }
  0x29   : > { %380 = vmatprep.subr.bf16.mxu1 %v376_v30  ;;  %309 = vmatpush1.bf16.msra.mxu0 %v301_v33  ;;  %v786_v38 = vld [vmem:[%s904_s5 + $0x50] ss:$8 sps:$4 sm:$0x1f]   ;;  %v788_v39 = vld [vmem:[%s904_s5 + $0x54] ss:$8 sps:$4 sm:$0x1f]   ;;  %s610_s21 = scalar_lea.vmem (%p868_p5), %s954_s3, %s739_s12 }
  0x2a   : > { %381 = vmatpush1.bf16.msra.mxu1 %v373_v34  ;;  %454 = vmatprep.subr.bf16.mxu0 %v782_v32  ;;  %v789_v40 = vld [vmem:[%s904_s5 + $0x70] ss:$8 sps:$4 sm:$0x1f]   ;;  %v452_v41 = vand.u32 %v788_v39, %v299_v24  ;;  %v791_v42 = vld [vmem:[%s904_s5 + $0x74] ss:$8 sps:$4 sm:$0x1f]   ;;  %v449_v44 = vand.u32 %v786_v38, %v299_v24 }
  0x2b   : > { %530 = vmatprep.subr.bf16.mxu1 %v785_v37  ;;  %v528_v43 = vand.u32 %v791_v42, %v299_v24  ;;  %v525_v45 = vand.u32 %v789_v40, %v299_v24 }
  0x2c   : > { %705 = vmatmul.mubr.msk.bf16.vlgmr.msra.gmra.mrb[0].mxu0 %vm292_vm2, %v779_v31 }
  0x2d   : > { %714 = vmatmul.mubr.msk.bf16.vlgmr.msra.gmra.mrb[0].mxu1 %vm292_vm2, %v779_v31  ;;  %455 = vmatpush1.bf16.msra.mxu0 %v780_v35 }
  0x2e   : > { %531 = vmatpush1.bf16.msra.mxu1 %v783_v36  ;;  %456 = vmatprep.subr.bf16.mxu0 %v452_v41 }
  0x2f   : > { %486 = vmatprep.mubr.bf16.mxu0 %v816_v17  ;;  %532 = vmatprep.subr.bf16.mxu1 %v528_v43 }
  0x30   : > { %562 = vmatprep.mubr.bf16.mxu1 %v816_v17 }
  0x31   : > { %457 = vmatpush1.bf16.msra.mxu0 %v449_v44 }
  0x32   : > { %533 = vmatpush1.bf16.msra.mxu1 %v525_v45 }
  0x34   : > { %723 = vmatmul.mubr.msk.bf16.vlgmr.msra.gmra.mrb[4].mxu0 %vm292_vm2, %v779_v31 }
  0x35   : > { %732 = vmatmul.mubr.msk.bf16.vlgmr.msra.gmra.mrb[4].mxu1 %vm292_vm2, %v779_v31 }
  0xa2   : > { %v582_v59 = vpop.permute.xlu0 %581 }
  0xa6   : > { %v587_v14 = vpop.permute.xlu0 %586 }
  0xff   : > { %v340_v47 = vpop.f32.mrb[0].mxu0 }
 0x100   : > { %v412_v48 = vpop.f32.mrb[0].mxu1  ;;  %v342_v50 = vpop.f32.mrb[1].mxu0 }
 0x101   : > { %v421_v49 = vmax.f32 %v340_v47, %v412_v48  ;;  %v414_v51 = vpop.f32.mrb[1].mxu1  ;;  %v344_v53 = vpop.f32.mrb[2].mxu0 }
 0x102   : > { %v422_v52 = vmax.f32 %v342_v50, %v414_v51  ;;  %v416_v54 = vpop.f32.mrb[2].mxu1  ;;  %v346_v56 = vpop.f32.mrb[3].mxu0 }
 0x103   : > { %v423_v55 = vmax.f32 %v344_v53, %v416_v54  ;;  %v418_v57 = vpop.f32.mrb[3].mxu1 }
 0x104   : > { %v424_v58 = vmax.f32 %v346_v56, %v418_v57 }
 0x107   : > { %v488_v60 = vpop.f32.mrb[4].mxu0 }
 0x108   : > { %v564_v61 = vpop.f32.mrb[4].mxu1  ;;  %v497_v62 = vmax.f32 %v421_v49, %v488_v60  ;;  %v490_v63 = vpop.f32.mrb[5].mxu0 }
 0x109   : > { %v566_v0 = vpop.f32.mrb[5].mxu1  ;;  %v498_v1 = vmax.f32 %v422_v52, %v490_v63  ;;  %v492_v2 = vpop.f32.mrb[6].mxu0 }
 0x10a   : > { %v568_v3 = vpop.f32.mrb[6].mxu1  ;;  %v573_v4 = vmax.f32 %v497_v62, %v564_v61  ;;  %v499_v5 = vmax.f32 %v423_v55, %v492_v2  ;;  %v494_v6 = vpop.f32.mrb[7].mxu0 }
 0x10b   : > { %v570_v7 = vpop.f32.mrb[7].mxu1  ;;  %v574_v8 = vmax.f32 %v498_v1, %v566_v0  ;;  %v500_v9 = vmax.f32 %v424_v58, %v494_v6 }
 0x10c   : > { %v589_v10 = vadd.f32 %v582_v59, %v573_v4  ;;  %v575_v11 = vmax.f32 %v499_v5, %v568_v3 }
 0x10d   : > { %v590_v12 = vadd.f32 %v582_v59, %v574_v8  ;;  %v576_v13 = vmax.f32 %v500_v9, %v570_v7  ;;  %607 = sbr.rel (!%p868_p5) target bundleno = 284 (0x11c), region = 74 }
 0x10e   : > { %v593_v15 = vmax.f32 %v589_v10, 0.0  ;;  %v591_v16 = vadd.f32 %v587_v14, %v575_v11 }
 0x10f   : > { %v594_v17 = vmax.f32 %v590_v12, 0.0  ;;  %v592_v18 = vadd.f32 %v587_v14, %v576_v13 }
 0x110   : > { %597 = vst [vmem:[%s259_s11] sm:$0xff] %v593_v15  ;;  %v595_v19 = vmax.f32 %v591_v16, 0.0 }
 0x111   : > { %598 = vst [vmem:[%s259_s11 + $0x8] sm:$0xff] %v594_v17  ;;  %v596_v20 = vmax.f32 %v592_v18, 0.0 }
 0x112   : > { %599 = vst [vmem:[%s259_s11 + $0x10] sm:$0x3] %v595_v19 }
 0x113   : > { %600 = vst [vmem:[%s259_s11 + $0x18] sm:$0x3] %v596_v20 }
 0x117   : > { %v623_v21 = vld [vmem:[%s259_s11] sm:$0xff] }
 0x118   : > { %v625_v22 = vld [vmem:[%s259_s11 + $0x8] sm:$0xff]  ;;  %624 = vst [vmem:[%s610_s21] sm:$0xff] %v623_v21 }
 0x119   : > { %v627_v23 = vld [vmem:[%s259_s11 + $0x10] sm:$0xff]  ;;  %626 = vst [vmem:[%s610_s21 + $0x8] sm:$0xff] %v625_v22 }
 0x11a   : > { %v629_v24 = vld [vmem:[%s259_s11 + $0x18] sm:$0xff]  ;;  %628 = vst [vmem:[%s610_s21 + $0x20] sm:$0xff] %v627_v23 }
 0x11b   : > { %630 = vst [vmem:[%s610_s21 + $0x28] sm:$0xff] %v629_v24 }
 0x11c PF: > { %p10_p10 = scmp.ge.s32.totalorder %s855_s16, 4   ;;  %s956_s12 = smov %s810_s13 }
 0x11d   : > { %s957_s13 = smov %s866_s19  ;;  %s958_s14 = smov %s855_s16 }
 0x11e   :  { %12 = sbr.rel (!%p10_p10) target bundleno = 2 (0x2), region = 131 }

// kernel: forward.12
= control target key start
LH: loop header
LB: loop body
LE: loop exit
PB: predicated region body
PF: predicated region fallthrough
CT: control target
= control target key end

     0   :  { %v1156_v1 = vmov 0   ;;  %vm167_vm0 = vcmask 1044480   ;;  %vm160_vm1 = vcmask 998400   ;;  %s1420_s0 = inlined_call_operand.vmem [shape: bf16[4,250,128], index: 0, kind: input, shape index: {}]   ;;  %s1421_s1 = inlined_call_operand.vmem [shape: bf16[20,250], index: 1, kind: input, shape index: {}]   ;;  %s1422_s2 = inlined_call_operand.vmem [shape: f32[20,1], index: 2, kind: input, shape index: {}]   ;;  %s1423_s3 = inlined_call_operand.vmem [shape: f32[20,128], index: 3, kind: output, shape index: {}]  }
   0x1   :  { %v1087_v0 = vld [vmem:[%s1420_s0 + $0x40] sm:$0xff]   ;;  %1085 = vset.pattern.permute.xlu0 %v1156_v1  ;;  %1086 = vset.pattern.permute.xlu1 %v1156_v1  ;;  %v1091_v5 = vld [vmem:[%s1420_s0 + $0x48] sm:$0xff]   ;;  %v1095_v9 = vld [vmem:[%s1420_s0 + $0x50] sm:$0xff]  }
   0x2   :  { %v1088_v2 = vld [vmem:[%s1420_s0 + $0xc0] sm:$0xff]   ;;  %968 = vmatprep.subr.bf16.mxu0 %v1087_v0  ;;  %v1092_v6 = vld [vmem:[%s1420_s0 + $0xc8] sm:$0xff]   ;;  %v1096_v10 = vld [vmem:[%s1420_s0 + $0xd0] sm:$0xff]  }
   0x3   :  { %v1089_v3 = vld [vmem:[%s1420_s0] sm:$0xff]   ;;  %996 = vmatprep.subr.bf16.mxu1 %v1088_v2  ;;  %v1093_v7 = vld [vmem:[%s1420_s0 + $0x8] sm:$0xff]   ;;  %v1097_v11 = vld [vmem:[%s1420_s0 + $0x10] sm:$0xff]  }
   0x4   :  { %v1090_v4 = vld [vmem:[%s1420_s0 + $0x80] sm:$0xff]   ;;  %969 = vmatpush3.bf16.msra.mxu0 %v1089_v3  ;;  %v1094_v8 = vld [vmem:[%s1420_s0 + $0x88] sm:$0xff]   ;;  %v1098_v12 = vld [vmem:[%s1420_s0 + $0x90] sm:$0xff]  }
   0x5   :  { %997 = vmatpush3.bf16.msra.mxu1 %v1090_v4  ;;  %970 = vmatprep.subr.bf16.mxu0 %v1091_v5  ;;  %v1099_v13 = vld [vmem:[%s1420_s0 + $0x58] sm:$0xff]   ;;  %v1103_v17 = vld [vmem:[%s1420_s0 + $0x60] sm:$0xff]   ;;  %v1107_v21 = vld [vmem:[%s1420_s0 + $0x68] sm:$0xff]  }
   0x6   :  { %998 = vmatprep.subr.bf16.mxu1 %v1092_v6  ;;  %v1100_v14 = vld [vmem:[%s1420_s0 + $0xd8] sm:$0xff]   ;;  %v1104_v18 = vld [vmem:[%s1420_s0 + $0xe0] sm:$0xff]   ;;  %v1108_v22 = vld [vmem:[%s1420_s0 + $0xe8] sm:$0xff]  }
   0x7   :  { %v1101_v15 = vld [vmem:[%s1420_s0 + $0x18] sm:$0xff]   ;;  %v1105_v19 = vld [vmem:[%s1420_s0 + $0x20] sm:$0xff]   ;;  %v1109_v23 = vld [vmem:[%s1420_s0 + $0x28] sm:$0xff]  }
   0x8   :  { %971 = vmatpush3.bf16.msra.mxu0 %v1093_v7  ;;  %v1102_v16 = vld [vmem:[%s1420_s0 + $0x98] sm:$0xff]   ;;  %v1106_v20 = vld [vmem:[%s1420_s0 + $0xa0] sm:$0xff]   ;;  %v1110_v24 = vld [vmem:[%s1420_s0 + $0xa8] sm:$0xff]  }
   0x9   :  { %999 = vmatpush3.bf16.msra.mxu1 %v1094_v8  ;;  %972 = vmatprep.subr.bf16.mxu0 %v1095_v9  ;;  %v1111_v25 = vld [vmem:[%s1420_s0 + $0x70] sm:$0xff]   ;;  %v1115_v29 = vld [vmem:[%s1420_s0 + $0x78] sm:$0x1f]   ;;  %v1278_v33 = vld [vmem:[%s1421_s1 + $0x4] ss:$8 sps:$4 sm:$0xff]  }
   0xa   :  { %1000 = vmatprep.subr.bf16.mxu1 %v1096_v10  ;;  %v1112_v26 = vld [vmem:[%s1420_s0 + $0xf0] sm:$0xff]   ;;  %v1116_v30 = vld [vmem:[%s1420_s0 + $0xf8] sm:$0x1f]   ;;  %v1283_v34 = vld [vmem:[%s1421_s1] ss:$8 sps:$4 sm:$0xff]   ;;  %816 = vmatprep.mubr.msk.bf16.mxu0 %vm160_vm1, %v1278_v33 }
   0xb   :  { %v1113_v27 = vld [vmem:[%s1420_s0 + $0x30] sm:$0xff]   ;;  %v1117_v31 = vld [vmem:[%s1420_s0 + $0x38] sm:$0xff]   ;;  %866 = vmatprep.mubr.msk.bf16.mxu1 %vm160_vm1, %v1278_v33  ;;  %v1122_v35 = vld [vmem:[%s1420_s0 + $0x140] sm:$0xff]  }
   0xc   :  { %973 = vmatpush3.bf16.msra.mxu0 %v1097_v11  ;;  %v1114_v28 = vld [vmem:[%s1420_s0 + $0xb0] sm:$0xff]   ;;  %v1118_v32 = vld [vmem:[%s1420_s0 + $0xb8] sm:$0xff]   ;;  %v1123_v36 = vld [vmem:[%s1420_s0 + $0x1c0] sm:$0xff]  }
   0xd   :  { %1001 = vmatpush3.bf16.msra.mxu1 %v1098_v12  ;;  %974 = vmatprep.subr.bf16.mxu0 %v1099_v13  ;;  %v1124_v37 = vld [vmem:[%s1420_s0 + $0x100] sm:$0xff]   ;;  %v1126_v39 = vld [vmem:[%s1420_s0 + $0x148] sm:$0xff]   ;;  %v1130_v43 = vld [vmem:[%s1420_s0 + $0x150] sm:$0xff]  }
   0xe   :  { %1002 = vmatprep.subr.bf16.mxu1 %v1100_v14  ;;  %v1125_v38 = vld [vmem:[%s1420_s0 + $0x180] sm:$0xff]   ;;  %v1127_v40 = vld [vmem:[%s1420_s0 + $0x1c8] sm:$0xff]   ;;  %v1131_v44 = vld [vmem:[%s1420_s0 + $0x1d0] sm:$0xff]  }
   0xf   :  { %v1128_v41 = vld [vmem:[%s1420_s0 + $0x108] sm:$0xff]   ;;  %v1132_v45 = vld [vmem:[%s1420_s0 + $0x110] sm:$0xff]   ;;  %v1134_v47 = vld [vmem:[%s1420_s0 + $0x158] sm:$0xff]  }
  0x10   :  { %975 = vmatpush3.bf16.msra.mxu0 %v1101_v15  ;;  %v1129_v42 = vld [vmem:[%s1420_s0 + $0x188] sm:$0xff]   ;;  %v1133_v46 = vld [vmem:[%s1420_s0 + $0x190] sm:$0xff]   ;;  %v1135_v48 = vld [vmem:[%s1420_s0 + $0x1d8] sm:$0xff]  }
  0x11   :  { %1003 = vmatpush3.bf16.msra.mxu1 %v1102_v16  ;;  %976 = vmatprep.subr.bf16.mxu0 %v1103_v17  ;;  %v1136_v49 = vld [vmem:[%s1420_s0 + $0x118] sm:$0xff]   ;;  %v1138_v51 = vld [vmem:[%s1420_s0 + $0x160] sm:$0xff]   ;;  %v17_v55 = vld [vmem:[%s1421_s1 + $0x10] sm:$0x33] }
  0x12   :  { %1004 = vmatprep.subr.bf16.mxu1 %v1104_v18  ;;  %v1137_v50 = vld [vmem:[%s1420_s0 + $0x198] sm:$0xff]   ;;  %v1139_v52 = vld [vmem:[%s1420_s0 + $0x1e0] sm:$0xff]   ;;  %v799_v56 = vcombine.high %v17_v55, %v17_v55  ;;  %v1143_v57 = vld [vmem:[%s1420_s0 + $0x168] sm:$0xff]   ;;  %v798_v58 = vcombine.low %v17_v55, %v17_v55 }
  0x13   :  { %v1140_v53 = vld [vmem:[%s1420_s0 + $0x120] sm:$0xff]   ;;  %v1144_v59 = vld [vmem:[%s1420_s0 + $0x1e8] sm:$0xff]   ;;  %v1148_v62 = vld [vmem:[%s1420_s0 + $0x170] sm:$0xff]  }
  0x14   :  { %977 = vmatpush3.bf16.msra.mxu0 %v1105_v19  ;;  %v1141_v54 = vld [vmem:[%s1420_s0 + $0x1a0] sm:$0xff]   ;;  %v1146_v60 = vld [vmem:[%s1420_s0 + $0x128] sm:$0xff]   ;;  %v1149_v63 = vld [vmem:[%s1420_s0 + $0x1f0] sm:$0xff]  }
  0x15   :  { %1005 = vmatpush3.bf16.msra.mxu1 %v1106_v20  ;;  %978 = vmatprep.subr.bf16.mxu0 %v1107_v21  ;;  %v1147_v61 = vld [vmem:[%s1420_s0 + $0x1a8] sm:$0xff]   ;;  %v1150_v0 = vld [vmem:[%s1420_s0 + $0x130] sm:$0xff]   ;;  %v1152_v2 = vld [vmem:[%s1420_s0 + $0x178] sm:$0x1f]  }
  0x16   :  { %1006 = vmatprep.subr.bf16.mxu1 %v1108_v22  ;;  %v1151_v1 = vld [vmem:[%s1420_s0 + $0x1b0] sm:$0xff]   ;;  %v1153_v3 = vld [vmem:[%s1420_s0 + $0x1f8] sm:$0x1f]   ;;  %v765_v6 = vld [vmem:[%s1422_s2] sm:$0xff] }
  0x17   :  { %v1154_v4 = vld [vmem:[%s1420_s0 + $0x138] sm:$0xff]   ;;  %770 = vperm.xlu0 %1085, %v765_v6   ;;  %v767_v7 = vld [vmem:[%s1422_s2 + $0x10] sm:$0xf]  ;;  %v766_v8 = vld [vmem:[%s1422_s2 + $0x8] sm:$0xff] }
  0x18   :  { %979 = vmatpush3.bf16.msra.mxu0 %v1109_v23  ;;  %v1155_v5 = vld [vmem:[%s1420_s0 + $0x1b8] sm:$0xff]   ;;  %780 = vperm.xlu1 %1086, %v767_v7  }
  0x19   :  { %1007 = vmatpush3.bf16.msra.mxu1 %v1110_v24  ;;  %980 = vmatprep.subr.bf16.mxu0 %v1111_v25 }
  0x1a   :  { %1008 = vmatprep.subr.bf16.mxu1 %v1112_v26 }
  0x1b   :  { %775 = vperm.xlu0 %1085, %v766_v8  }
  0x1c   :  { %981 = vmatpush3.bf16.msra.mxu0 %v1113_v27 }
  0x1d   :  { %1009 = vmatpush3.bf16.msra.mxu1 %v1114_v28  ;;  %1080 = vmatprep.subr.msk.bf16.mxu0 %vm167_vm0, %v1115_v29 }
  0x1e   :  { %1081 = vmatprep.subr.msk.bf16.mxu1 %vm167_vm0, %v1116_v30 }
  0x20   :  { %983 = vmatpush3.bf16.msra.mxu0 %v1117_v31 }
  0x21   :  { %1011 = vmatpush3.bf16.msra.mxu1 %v1118_v32  ;;  %1024 = vmatprep.subr.bf16.mxu0 %v1122_v35 }
  0x22   :  { %1052 = vmatprep.subr.bf16.mxu1 %v1123_v36 }
  0x23   :  { %204 = vmatmul.mubr.bf16.vlgmr.msra.gmra.mrb[0].mxu0 %v1283_v34 }
  0x24   :  { %383 = vmatmul.mubr.bf16.vlgmr.msra.gmra.mrb[0].mxu1 %v1283_v34  ;;  %1025 = vmatpush3.bf16.msra.mxu0 %v1124_v37 }
  0x25   :  { %1053 = vmatpush3.bf16.msra.mxu1 %v1125_v38  ;;  %1026 = vmatprep.subr.bf16.mxu0 %v1126_v39 }
  0x26   :  { %1054 = vmatprep.subr.bf16.mxu1 %v1127_v40  ;;  %817 = vmatprep.mubr.msk.bf16.mxu0 %vm160_vm1, %v799_v56 }
  0x27   :  { %867 = vmatprep.mubr.msk.bf16.mxu1 %vm160_vm1, %v799_v56 }
  0x28   :  { %1027 = vmatpush3.bf16.msra.mxu0 %v1128_v41 }
  0x29   :  { %1055 = vmatpush3.bf16.msra.mxu1 %v1129_v42  ;;  %1028 = vmatprep.subr.bf16.mxu0 %v1130_v43 }
  0x2a   :  { %1056 = vmatprep.subr.bf16.mxu1 %v1131_v44 }
  0x2b   :  { %212 = vmatmul.mubr.bf16.gmra.mrb[4].mxu0 %v798_v58 }
  0x2c   :  { %1029 = vmatpush3.bf16.msra.mxu0 %v1132_v45  ;;  %916 = vmatprep.mubr.msk.bf16.mxu0 %vm160_vm1, %v1278_v33 }
  0x2d   :  { %1057 = vmatpush3.bf16.msra.mxu1 %v1133_v46  ;;  %1030 = vmatprep.subr.bf16.mxu0 %v1134_v47 }
  0x2e   :  { %1058 = vmatprep.subr.bf16.mxu1 %v1135_v48  ;;  %391 = vmatmul.mubr.bf16.gmra.mrb[4].mxu1 %v798_v58 }
  0x2f   :  { %966 = vmatprep.mubr.msk.bf16.mxu1 %vm160_vm1, %v1278_v33 }
  0x30   :  { %1031 = vmatpush3.bf16.msra.mxu0 %v1136_v49 }
  0x31   :  { %1059 = vmatpush3.bf16.msra.mxu1 %v1137_v50  ;;  %1032 = vmatprep.subr.bf16.mxu0 %v1138_v51 }
  0x32   :  { %1060 = vmatprep.subr.bf16.mxu1 %v1139_v52 }
  0x34   :  { %1033 = vmatpush3.bf16.msra.mxu0 %v1140_v53 }
  0x35   :  { %1061 = vmatpush3.bf16.msra.mxu1 %v1141_v54  ;;  %1034 = vmatprep.subr.bf16.mxu0 %v1143_v57 }
  0x36   :  { %1062 = vmatprep.subr.bf16.mxu1 %v1144_v59 }
  0x38   :  { %1035 = vmatpush3.bf16.msra.mxu0 %v1146_v60 }
  0x39   :  { %1063 = vmatpush3.bf16.msra.mxu1 %v1147_v61  ;;  %1036 = vmatprep.subr.bf16.mxu0 %v1148_v62 }
  0x3a   :  { %1064 = vmatprep.subr.bf16.mxu1 %v1149_v63 }
  0x3c   :  { %1037 = vmatpush3.bf16.msra.mxu0 %v1150_v0 }
  0x3d   :  { %1065 = vmatpush3.bf16.msra.mxu1 %v1151_v1  ;;  %1082 = vmatprep.subr.msk.bf16.mxu0 %vm167_vm0, %v1152_v2 }
  0x3e   :  { %1083 = vmatprep.subr.msk.bf16.mxu1 %vm167_vm0, %v1153_v3 }
  0x40   :  { %1039 = vmatpush3.bf16.msra.mxu0 %v1154_v4 }
  0x41   :  { %1067 = vmatpush3.bf16.msra.mxu1 %v1155_v5 }
  0x43   :  { %565 = vmatmul.mubr.bf16.vlgmr.msra.gmra.mrb[8].mxu0 %v1283_v34 }
  0x44   :  { %747 = vmatmul.mubr.bf16.vlgmr.msra.gmra.mrb[8].mxu1 %v1283_v34  ;;  %917 = vmatprep.mubr.msk.bf16.mxu0 %vm160_vm1, %v799_v56 }
  0x45   :  { %967 = vmatprep.mubr.msk.bf16.mxu1 %vm160_vm1, %v799_v56 }
  0x4b   :  { %573 = vmatmul.mubr.bf16.gmra.mrb[12].mxu0 %v798_v58 }
  0x4c   :  { %755 = vmatmul.mubr.bf16.gmra.mrb[12].mxu1 %v798_v58 }
  0x96   :  { %v771_v35 = vpop.permute.xlu0 %770 }
  0x97   :  { %v781_v3 = vpop.permute.xlu1 %780 }
  0x9a   :  { %v776_v50 = vpop.permute.xlu0 %775 }
  0xf6   :  { %v984_v9 = vpop.f32.mrb[0].mxu0 }
  0xf7   :  { %v1012_v10 = vpop.f32.mrb[0].mxu1  ;;  %v985_v11 = vpop.f32.mrb[1].mxu0 }
  0xf8   :  { %v986_v12 = vadd.f32 %v985_v11, %v984_v9  ;;  %v1013_v13 = vpop.f32.mrb[1].mxu1  ;;  %v987_v14 = vpop.f32.mrb[2].mxu0 }
  0xf9   :  { %v1014_v15 = vadd.f32 %v1013_v13, %v1012_v10  ;;  %v1015_v16 = vpop.f32.mrb[2].mxu1  ;;  %v988_v17 = vpop.f32.mrb[3].mxu0 }
  0xfa   :  { %v989_v18 = vadd.f32 %v988_v17, %v987_v14  ;;  %v1016_v19 = vpop.f32.mrb[3].mxu1 }
  0xfb   :  { %v398_v20 = vmax.f32 %v986_v12, %v1014_v15  ;;  %v1017_v21 = vadd.f32 %v1016_v19, %v1015_v16 }
  0xfd   :  { %v399_v22 = vmax.f32 %v989_v18, %v1017_v21 }
  0xfe   :  { %v990_v23 = vpop.f32.mrb[4].mxu0 }
  0xff   :  { %v991_v24 = vpop.f32.mrb[5].mxu0 }
 0x100   :  { %v992_v25 = vadd.f32 %v991_v24, %v990_v23  ;;  %v993_v26 = vpop.f32.mrb[6].mxu0 }
 0x101   :  { %v1018_v27 = vpop.f32.mrb[4].mxu1  ;;  %v994_v28 = vpop.f32.mrb[7].mxu0 }
 0x102   :  { %v1019_v29 = vpop.f32.mrb[5].mxu1 }
 0x103   :  { %v1020_v30 = vadd.f32 %v1019_v29, %v1018_v27  ;;  %v1021_v31 = vpop.f32.mrb[6].mxu1 }
 0x104   :  { %v1022_v32 = vpop.f32.mrb[7].mxu1 }
 0x105   :  { %v400_v33 = vmax.f32 %v992_v25, %v1020_v30 }
 0x116   :  { %v1040_v34 = vpop.f32.mrb[8].mxu0 }
 0x117   :  { %v1068_v36 = vpop.f32.mrb[8].mxu1  ;;  %v1041_v37 = vpop.f32.mrb[9].mxu0 }
 0x118   :  { %v1042_v38 = vadd.f32 %v1041_v37, %v1040_v34  ;;  %v1069_v39 = vpop.f32.mrb[9].mxu1  ;;  %v1043_v40 = vpop.f32.mrb[10].mxu0 }
 0x119   :  { %v1070_v41 = vadd.f32 %v1069_v39, %v1068_v36  ;;  %v1071_v42 = vpop.f32.mrb[10].mxu1  ;;  %v1044_v43 = vpop.f32.mrb[11].mxu0 }
 0x11a   :  { %v580_v44 = vmax.f32 %v398_v20, %v1042_v38  ;;  %v1045_v45 = vadd.f32 %v1044_v43, %v1043_v40  ;;  %v1072_v46 = vpop.f32.mrb[11].mxu1 }
 0x11b   :  { %v1073_v47 = vadd.f32 %v1072_v46, %v1071_v42 }
 0x11c   :  { %v581_v48 = vmax.f32 %v399_v22, %v1045_v45  ;;  %v762_v49 = vmax.f32 %v580_v44, %v1070_v41 }
 0x11e   :  { %v783_v51 = vadd.f32 %v771_v35, %v762_v49  ;;  %v1046_v52 = vpop.f32.mrb[12].mxu0  ;;  %v763_v53 = vmax.f32 %v581_v48, %v1073_v47 }
 0x11f   :  { %v1074_v54 = vpop.f32.mrb[12].mxu1  ;;  %v1047_v55 = vpop.f32.mrb[13].mxu0 }
 0x120   :  { %v786_v56 = vmax.f32 %v783_v51, 0.0  ;;  %v784_v57 = vadd.f32 %v776_v50, %v763_v53  ;;  %v1048_v58 = vadd.f32 %v1047_v55, %v1046_v52  ;;  %v1075_v59 = vpop.f32.mrb[13].mxu1  ;;  %v1049_v60 = vpop.f32.mrb[14].mxu0 }
 0x121   :  { %v1076_v61 = vadd.f32 %v1075_v59, %v1074_v54  ;;  %v1077_v62 = vpop.f32.mrb[14].mxu1  ;;  %v1050_v63 = vpop.f32.mrb[15].mxu0 }
 0x122   :  { %789 = vst [vmem:[%s1423_s3] sm:$0xff] %v786_v56  ;;  %v787_v0 = vmax.f32 %v784_v57, 0.0  ;;  %v582_v1 = vmax.f32 %v400_v33, %v1048_v58  ;;  %v1078_v2 = vpop.f32.mrb[15].mxu1 }
 0x124   :  { %790 = vst [vmem:[%s1423_s3 + $0x8] sm:$0xff] %v787_v0  ;;  %v764_v4 = vmax.f32 %v582_v1, %v1076_v61 }
 0x126   :  { %v785_v5 = vadd.f32 %v781_v3, %v764_v4 }
 0x128   :  { %v788_v6 = vmax.f32 %v785_v5, 0.0 }
 0x12a   :  { %791 = vst [vmem:[%s1423_s3 + $0x10] sm:$0xf] %v788_v6 }

// kernel: forward.13
= control target key start
LH: loop header
LB: loop body
LE: loop exit
PB: predicated region body
PF: predicated region fallthrough
CT: control target
= control target key end

     0   :  { %v554_v2 = vmov 0.0   ;;  %vm555_vm0 = vmmov 0   ;;  %v82_v15 = vlaneseq  ;;  %v556_v19 = vmov 1966171168   ;;  %s696_s0 = inlined_call_operand.vmem [shape: bf16[2,320], index: 0, kind: input, shape index: {}]   ;;  %s697_s1 = inlined_call_operand.vmem [shape: bf16[320,50], index: 1, kind: input, shape index: {}]   ;;  %s698_s2 = inlined_call_operand.vmem [shape: f32[1,50], index: 2, kind: input, shape index: {}]   ;;  %s699_s3 = inlined_call_operand.vmem [shape: bf16[50,10], index: 3, kind: input, shape index: {}]   ;;  %s700_s4 = inlined_call_operand.vmem [shape: f32[1,10], index: 4, kind: input, shape index: {}]   ;;  %s701_s5 = inlined_call_operand.hbm [shape: f32[2,10], index: 5, kind: output, shape index: {}]  }
   0x1   :  { %v502_v0 = vld [vmem:[%s697_s1 + $0x40] sm:$0xff]   ;;  %474 = vmatprep.subr.bf16.mxu1 %v554_v2  ;;  %v504_v3 = vld [vmem:[%s697_s1 + $0x48] sm:$0xff]   ;;  %482 = vmatprep.mubr.msk.bf16.mxu1 %vm555_vm0, %v554_v2  ;;  %v506_v5 = vld [vmem:[%s697_s1 + $0x50] sm:$0xff]   ;;  %v80_v20 = vunpack.c.l.s4 %v556_v19 }
   0x2   :  { %v503_v1 = vld [vmem:[%s697_s1] sm:$0xff]   ;;  %442 = vmatprep.subr.bf16.mxu0 %v502_v0  ;;  %v505_v4 = vld [vmem:[%s697_s1 + $0x8] sm:$0xff]   ;;  %v507_v6 = vld [vmem:[%s697_s1 + $0x10] sm:$0xff]   ;;  %v83_v21 = vshrl.u32 %v82_v15, 7 }
   0x3   :  { %443 = vmatpush3.bf16.msra.mxu0 %v503_v1  ;;  %v508_v7 = vld [vmem:[%s697_s1 + $0x58] sm:$0xff]   ;;  %v512_v8 = vld [vmem:[%s697_s1 + $0x80] sm:$0xff]   ;;  %v515_v11 = vld [vmem:[%s697_s1 + $0x88] sm:$0xff]   ;;  %v81_v25 = vunpack.c.0.s8 %v80_v20 }
   0x4   :  { %444 = vmatprep.subr.bf16.mxu0 %v504_v3  ;;  %v509_v9 = vld [vmem:[%s697_s1 + $0x18] sm:$0xff]   ;;  %v510_v10 = vld [vmem:[%s697_s1 + $0x60] sm:$0xff]   ;;  %475 = vmatpush3.bf16.msra.mxu1 %v512_v8  ;;  %v513_v13 = vld [vmem:[%s697_s1 + $0x68] sm:$0xff]  }
   0x5   :  { %476 = vmatprep.subr.bf16.mxu1 %v554_v2  ;;  %v511_v12 = vld [vmem:[%s697_s1 + $0x20] sm:$0xff]   ;;  %v518_v14 = vld [vmem:[%s697_s1 + $0x90] sm:$0xff]   ;;  %v514_v16 = vld [vmem:[%s697_s1 + $0x28] sm:$0xff]  }
   0x6   :  { %v516_v17 = vld [vmem:[%s697_s1 + $0x70] sm:$0xff]   ;;  %v414_v18 = vld.sshfl [vmem:[%s696_s0] sm:$0x13 pattern:$0x75316420]  ;;  %v521_v22 = vld [vmem:[%s697_s1 + $0x98] sm:$0xff]  }
   0x7   :  { %445 = vmatpush3.bf16.msra.mxu0 %v505_v4  ;;  %v517_v23 = vld [vmem:[%s697_s1 + $0x30] sm:$0xff]   ;;  %v78_v24 = vcombine.high %v414_v18, %v414_v18 }
   0x8   :  { %446 = vmatprep.subr.bf16.mxu0 %v506_v5  ;;  %477 = vmatpush3.bf16.msra.mxu1 %v515_v11 }
   0x9   :  { %478 = vmatprep.subr.bf16.mxu1 %v554_v2 }
   0xb   :  { %447 = vmatpush3.bf16.msra.mxu0 %v507_v6 }
   0xc   :  { %448 = vmatprep.subr.bf16.mxu0 %v508_v7  ;;  %479 = vmatpush3.bf16.msra.mxu1 %v518_v14 }
   0xd   :  { %480 = vmatprep.subr.bf16.mxu1 %v554_v2 }
   0xf   :  { %449 = vmatpush3.bf16.msra.mxu0 %v509_v9 }
  0x10   :  { %450 = vmatprep.subr.bf16.mxu0 %v510_v10 }
  0x13   :  { %451 = vmatpush3.bf16.msra.mxu0 %v511_v12 }
  0x14   :  { %452 = vmatprep.subr.bf16.mxu0 %v513_v13 }
  0x17   :  { %453 = vmatpush3.bf16.msra.mxu0 %v514_v16 }
  0x18   :  { %10 = vsyncpa [#allocation3], 0  ;;  %454 = vmatprep.subr.bf16.mxu0 %v516_v17  ;;  %v519_v26 = vld [vmem:[%s697_s1 + $0x78] sm:$0xff]   ;;  %v84_v27 = vsub.s32 %v81_v25, %v83_v21  ;;  %481 = vmatpush3.bf16.msra.mxu1 %v521_v22  ;;  %vm216_vm1 = vcmask 523264   ;;  %v522_v31 = vld [vmem:[%s699_s3] sm:$0xff]   ;;  %vm341_vm2 = vcmask 1040384  }
  0x19   :  { %486 = vmatprep.subr.bf16.mxu1 %v554_v2  ;;  %v520_v30 = vld [vmem:[%s697_s1 + $0x38] sm:$0xff]   ;;  %v523_v33 = vld [vmem:[%s699_s3 + $0x8] sm:$0xff]   ;;  %v524_v34 = vld [vmem:[%s699_s3 + $0x10] sm:$0xff]   ;;  %vm337_vm3 = vcmask 408576   ;;  %vm385_vm4 = vcmask 74752  }
  0x1a   :  { %v92_v28 = vrot.slane %v78_v24, %v84_v27  ;;  %v85_v29 = vrot.slane %v414_v18, %v84_v27  ;;  %v525_v35 = vld [vmem:[%s699_s3 + $0x18] ss:$0 sps:$4 sm:$0x11]   ;;  %v413_v43 = vld [vmem:[%s698_s2] ss:$0 sm:$0xff]  ;;  %s557_s2 = smov [#allocation2]  }
  0x1b   :  { %455 = vmatpush3.bf16.msra.mxu0 %v517_v23  ;;  %v343_v36 = vsel %vm341_vm2, %v525_v35, 0  ;;  %v436_v51 = vld [vmem:[%s700_s4] ss:$0 sm:$0xff]  ;;  %s405_s4 = sshll.u32 %s557_s2, 4  ;;  %s406_s4 = int_to_ptr.vmem [resolvable:$true] %s405_s4 }
  0x1c   :  { %456 = vmatprep.subr.bf16.mxu0 %v519_v26  ;;  %252 = vmatprep.mubr.bf16.mxu0 %v92_v28  ;;  %v93_v32 = vcombine.high %v85_v29, %v85_v29  ;;  %s530_s19 = scalar_lea.vmem %s406_s4, 32  ;;  %p535_p1 = scmp.lt.s32.totalorder %s406_s4, %s406_s4 }
  0x1d   :  { %p531_p0 = scmp.ne.s32.totalorder %s406_s4, %s530_s19  ;;  %p536_p2 = scmp.lt.s32.totalorder %s530_s19, %s530_s19 }
  0x1e   :  { %483 = vmatmul.mubr.msk.bf16.vlgmr.msra.gmra.mrb[0].mxu1 %vm216_vm1, %v93_v32 }
  0x1f   :  { %457 = vmatpush3.bf16.msra.mxu0 %v520_v30  ;;  %487 = vmatpush3.bf16.msra.mxu1 %v522_v31  ;;  %p537_p3 = por %p536_p2, %p535_p1 }
  0x20   :  { %488 = vmatprep.subr.bf16.mxu1 %v554_v2  ;;  %494 = vmatprep.mubr.msk.bf16.mxu1 %vm555_vm0, %v554_v2 }
  0x21   :  { %p538_p4 = pnand %p537_p3, %p531_p0 }
  0x22   :  { %253 = vmatmul.mubr.bf16.vlgmr.msra.gmra.mrb[0].mxu0 %v85_v29 }
  0x23   :  { %489 = vmatpush3.bf16.msra.mxu1 %v523_v33 }
  0x24   :  { %490 = vmatprep.subr.bf16.mxu1 %v554_v2 }
  0x27   :  { %491 = vmatpush3.bf16.msra.mxu1 %v524_v34 }
  0x28   :  { %492 = vmatprep.subr.bf16.mxu1 %v554_v2 }
  0x2b   :  { %493 = vmatpush3.bf16.msra.mxu1 %v343_v36 }
  0xf1   :  { %v294_v37 = vpop.f32.mrb[0].mxu1 }
  0xf2   :  { %v484_v38 = vpop.f32.mrb[1].mxu1 }
  0xf3   :  { %v297_v39 = vpop.f32.mrb[2].mxu1 }
  0xf4   :  { %v485_v40 = vpop.f32.mrb[3].mxu1 }
  0xf5   :  { %v458_v41 = vpop.f32.mrb[0].mxu0 }
  0xf6   :  { %v459_v42 = vpop.f32.mrb[1].mxu0 }
  0xf7   :  { %v460_v44 = vadd.f32 %v459_v42, %v458_v41  ;;  %v461_v45 = vpop.f32.mrb[2].mxu0 }
  0xf8   :  { %v462_v46 = vpop.f32.mrb[3].mxu0 }
  0xf9   :  { %v255_v47 = vadd.f32 %v460_v44, %v413_v43 }
  0xfb   :  { %v295_v48 = vadd.f32 %v294_v37, %v255_v47 }
  0xfd   :  { %v300_v49 = vmax.f32 %v295_v48, 0.0 }
  0xff   :  { %v301_v50 = vpack.c.bf16 %v300_v49, %v300_v49 }
 0x101   :  { %495 = vmatmul.mubr.msk.bf16.vlgmr.msra.gmra.mrb[4].mxu1 %vm337_vm3, %v301_v50 }
 0x1d4   :  { %v379_v52 = vpop.f32.mrb[4].mxu1 }
 0x1d5   :  { %v380_v53 = vadd.f32 %v436_v51, %v379_v52  ;;  %v496_v54 = vpop.f32.mrb[5].mxu1 }
 0x1d6   :  { %v382_v55 = vpop.f32.mrb[6].mxu1 }
 0x1d7   :  { %v497_v56 = vpop.f32.mrb[7].mxu1  ;;  %v386_v57 = vsel %vm385_vm4, %v380_v53, -inf }
 0x1d8   :  { %387 = vmax.xlane.f32.xlu0 %v386_v57 }
 0x265   :  { %v388_v58 = vpop.xlane.xlu0 %387 }
 0x266   :  { %v389_v59 = vsub.f32 %v380_v53, %v388_v58 }
 0x268   :  { %v390_v60 = vmul.f32 1.442695, %v389_v59 }
 0x26a   :  { %526 = vpow2.f32 %v390_v60 }
 0x274   :  { %v527_v61 = vpop.eup %526 }
 0x275   :  { %v392_v62 = vsel %vm385_vm4, %v527_v61, 0.0 }
 0x276   :  { %393 = vadd.xlane.f32.xlu0 %v392_v62 }
 0x303   :  { %v394_v63 = vpop.xlane.xlu0 %393 }
 0x304   :  { %528 = vlog2.f32 %v394_v63 }
 0x30e   :  { %v529_v0 = vpop.eup %528 }
 0x30f   :  { %v396_v1 = vmul.f32 0.6931472, %v529_v0 }
 0x311   :  { %v397_v2 = vsub.f32 %v389_v59, %v396_v1 }
 0x313   :  { %398 = vst.msk [vmem:[#allocation2] sm:$0x3] %vm385_vm4, %v397_v2 }
 0x314   :  { %541 = shalt.err (!%p538_p4)
}
 0x315   :  { %s542_s22 = scalar_lea.hbm %s701_s5, 32 }
 0x316   :  { %p543_p5 = scmp.ne.s32.totalorder %s701_s5, %s542_s22  ;;  %p546_p6 = scmp.lt.u32.totalorder %s542_s22, %s701_s5 }
 0x318   :  { %p548_p7 = pnand %p546_p6, %p543_p5 }
 0x31a   :  { %551 = shalt.err (!%p548_p7)
}
 0x31b   :  { %408 = dma.vmem_to_hbm [thread:$0]  %s406_s4, 32, %s701_s5, [#allocation3]  }
 0x31c   :  { %552 = dma.done.wait [#allocation3], 32  }
 0x31d   :  { %553 = vsyncadd [#allocation3], 4294967264 }
 0x31e   :  { %412 = vsyncpa [#allocation3], 1 }

</bundles_post_ra>
